<compile_context>
chip_gen: v7x
topology: tpu7x:2x2x1
jax: 0.10.0
libtpu: 0.0.40
codegen_flags: <defaults>
</compile_context>

<pallas_src>
import functools

import jax
import jax.numpy as jnp
from jax.experimental import pallas as pl
from jax.experimental.pallas import tpu as pltpu

# MXU operand dtype.  f32 keeps the numerical self-check tight; set to jnp.bfloat16
# on v5e/v6e/v7x for ~2x MXU throughput (accumulation stays f32 via
# preferred_element_type) and loosen the test tolerance accordingly.
MXU_DTYPE = jnp.float32


# --------------------------------------------------------------------------- #
# Fused Pallas kernel (B images per grid step, everything resident in VMEM)
# --------------------------------------------------------------------------- #
def _fused_block_kernel(H, W, KH, KW,
                        xp_ref, w1_ref, b1_ref, w2_ref, b2_ref, wsc_ref, bsc_ref,
                        o_ref, h1p_ref, h2_ref):
    """ResSubsampleBlock forward for one batch-block of B images.

    xp_ref : (B, H+2, W+2, Cin)   pre-padded input tile (halo zeros from wrapper)
    w1_ref : (KH, KW, Cin, C)     b1_ref : (1, C)
    w2_ref : (KH, KW, C,   C)     b2_ref : (1, C)
    wsc_ref: (Cin, C)             bsc_ref: (1, C)
    o_ref  : (B, Ho, Wo, C)
    h1p_ref: VMEM (B, H+2, W+2, C) scratch -- conv1 output with zero halo
    h2_ref : VMEM (B, H, W, C)     scratch -- conv2 output (pool source)
    """
    B = xp_ref.shape[0]
    Hp, Wp = xp_ref.shape[1], xp_ref.shape[2]
    Cin = xp_ref.shape[3]
    C = o_ref.shape[3]
    Ho, Wo = o_ref.shape[1], o_ref.shape[2]

    # -- zero only the halo border of the conv1-output scratch (interior is fully
    #    overwritten below).  Every step: scratch is per-core and uninitialized.
    h1p_ref[:, 0:1, :, :] = jnp.zeros((B, 1, Wp, C), h1p_ref.dtype)
    h1p_ref[:, Hp - 1:Hp, :, :] = jnp.zeros((B, 1, Wp, C), h1p_ref.dtype)
    h1p_ref[:, :, 0:1, :] = jnp.zeros((B, Hp, 1, C), h1p_ref.dtype)
    h1p_ref[:, :, Wp - 1:Wp, :] = jnp.zeros((B, Hp, 1, C), h1p_ref.dtype)

    # -- conv1 + ReLU: 9 per-tap (B*H*W, Cin) x (Cin, C) MXU dots, f32 accumulate
    acc = jnp.zeros((B * H * W, C), jnp.float32)
    for kh in range(KH):
        for kw in range(KW):
            tap = xp_ref[:, pl.ds(kh, H), pl.ds(kw, W), :]           # (B, H, W, Cin)
            acc = acc + jnp.dot(
                tap.reshape(B * H * W, Cin).astype(MXU_DTYPE),
                w1_ref[kh, kw],
                preferred_element_type=jnp.float32)
    h1 = jnp.maximum(acc + b1_ref[...], 0.0)                         # (B*H*W, C)
    h1p_ref[:, pl.ds(1, H), pl.ds(1, W), :] = (
        h1.reshape(B, H, W, C).astype(h1p_ref.dtype))

    # -- conv2 + ReLU on the VMEM-resident conv1 output
    acc = jnp.zeros((B * H * W, C), jnp.float32)
    for kh in range(KH):
        for kw in range(KW):
            tap = h1p_ref[:, pl.ds(kh, H), pl.ds(kw, W), :]          # (B, H, W, C)
            acc = acc + jnp.dot(
                tap.reshape(B * H * W, C).astype(MXU_DTYPE),
                w2_ref[kh, kw],
                preferred_element_type=jnp.float32)
    h2 = jnp.maximum(acc + b2_ref[...], 0.0)                         # (B*H*W, C)
    h2_ref[...] = h2.reshape(B, H, W, C)

    # -- main path: 2x2 average pool on the VPU.
    #    W direction: strided sublane reads from VMEM; H direction: pair split.
    wsum = (h2_ref[:, :, pl.ds(0, Wo, stride=2), :] +
            h2_ref[:, :, pl.ds(1, Wo, stride=2), :])                 # (B, H, Wo, C)
    wsum = wsum.reshape(B, Ho, 2, Wo, C)
    main = (wsum[:, :, 0, :, :] + wsum[:, :, 1, :, :]) * 0.25        # (B, Ho, Wo, C)

    # -- shortcut: 2x2 avg-pool of x (read from the padded-input interior),
    #    then 1x1 conv + ReLU.
    xw = (xp_ref[:, pl.ds(1, H), pl.ds(1, Wo, stride=2), :] +
          xp_ref[:, pl.ds(1, H), pl.ds(2, Wo, stride=2), :]).astype(jnp.float32)
    xw = xw.reshape(B, Ho, 2, Wo, Cin)
    x_pool = (xw[:, :, 0, :, :] + xw[:, :, 1, :, :]) * 0.25          # (B, Ho, Wo, Cin)
    sc = jnp.dot(x_pool.reshape(B * Ho * Wo, Cin).astype(MXU_DTYPE), wsc_ref[...],
                 preferred_element_type=jnp.float32)
    sc = jnp.maximum(sc + bsc_ref[...], 0.0)                         # (B*Ho*Wo, C)

    # -- residual add + single store per step
    o_ref[...] = (main + sc.reshape(B, Ho, Wo, C)).astype(o_ref.dtype)


# --------------------------------------------------------------------------- #
# Wrapper
# --------------------------------------------------------------------------- #
def _pick_batch_block(N, per_image_bytes, budget_bytes=6 * 1024 * 1024):
    """Largest divisor B of N that keeps grid >= 2 (for v7x dual TC) and fits VMEM."""
    best = 1
    for b in range(1, N + 1):
        if N % b:
            continue
        if N >= 2 and N // b < 2:
            continue
        if b * per_image_bytes > budget_bytes:
            continue
        best = b
    return best


def res_subsample_block_nhwc(x_nhwc, params):
    N, H, W, Cin = x_nhwc.shape
    KH, KW, _, C = params["w1"].shape
    P = 1
    assert H % 2 == 0 and W % 2 == 0, "AvgPool2d(2) requires even spatial dims"
    assert KH == 2 * P + 1 and KW == 2 * P + 1, "module uses padding=1 'same' convs"
    Hp, Wp = H + 2 * P, W + 2 * P
    Ho, Wo = H // 2, W // 2

    # Pre-pad once in the wrapper; removes the in-kernel padded-x scratch entirely.
    xp = jnp.pad(x_nhwc, ((0, 0), (P, P), (P, P), (0, 0)))

    # Cast weights once (no per-tap casts inside the kernel).
    w1 = params["w1"].astype(MXU_DTYPE)
    w2 = params["w2"].astype(MXU_DTYPE)
    wsc = params["w_sc"].reshape(Cin, C).astype(MXU_DTYPE)
    b1 = params["b1"].reshape(1, C).astype(jnp.float32)
    b2 = params["b2"].reshape(1, C).astype(jnp.float32)
    bsc = params["b_sc"].reshape(1, C).astype(jnp.float32)

    # Batch several images per grid step to amortize per-step overhead.
    per_image_bytes = 4 * (2 * Hp * Wp * Cin + 2 * Ho * Wo * C
                           + Hp * Wp * C + H * W * C + 4 * H * W * C)
    B = _pick_batch_block(N, per_image_bytes)
    G = N // B

    kernel = functools.partial(_fused_block_kernel, H, W, KH, KW)

    flops = N * (2 * H * W * KH * KW * C * (Cin + C)     # conv1 + conv2
                 + 2 * Ho * Wo * Cin * C                 # 1x1 shortcut conv
                 + 4 * Ho * Wo * (C + Cin))              # VPU pooling adds
    bytes_accessed = 4 * (N * Hp * Wp * Cin + N * Ho * Wo * C
                          + w1.size + w2.size + wsc.size + 3 * C)

    return pl.pallas_call(
        kernel,
        out_shape=jax.ShapeDtypeStruct((N, Ho, Wo, C), x_nhwc.dtype),
        grid=(G,),
        in_specs=[
            pl.BlockSpec((B, Hp, Wp, Cin), lambda n: (n, 0, 0, 0)),
            pl.BlockSpec((KH, KW, Cin, C), lambda n: (0, 0, 0, 0)),
            pl.BlockSpec((1, C), lambda n: (0, 0)),
            pl.BlockSpec((KH, KW, C, C), lambda n: (0, 0, 0, 0)),
            pl.BlockSpec((1, C), lambda n: (0, 0)),
            pl.BlockSpec((Cin, C), lambda n: (0, 0)),
            pl.BlockSpec((1, C), lambda n: (0, 0)),
        ],
        out_specs=pl.BlockSpec((B, Ho, Wo, C), lambda n: (n, 0, 0, 0)),
        scratch_shapes=[
            pltpu.VMEM((B, Hp, Wp, C), MXU_DTYPE),    # conv1 output with zero halo
            pltpu.VMEM((B, H, W, C), jnp.float32),    # conv2 output (pool source)
        ],
        compiler_params=pltpu.CompilerParams(dimension_semantics=("parallel",)),
        cost_estimate=pl.CostEstimate(flops=flops, transcendentals=0,
                                      bytes_accessed=bytes_accessed),
    )(xp, w1, b1, w2, b2, wsc, bsc)


@jax.jit
def res_subsample_block(x_nchw, params):
    # Public API keeps the PyTorch NCHW convention; compute is NHWC (C on lanes).
    x = jnp.transpose(x_nchw, (0, 2, 3, 1))                   # NCHW -> NHWC
    y = res_subsample_block_nhwc(x, params)
    return jnp.transpose(y, (0, 3, 1, 2))                     # NHWC -> NCHW


def init_params(key, in_channels, out_channels, filter_size):
    ks = jax.random.split(key, 6)
    s1 = 1.0 / (in_channels * filter_size * filter_size) ** 0.5
    s2 = 1.0 / (out_channels * filter_size * filter_size) ** 0.5
    ssc = 1.0 / in_channels ** 0.5
    return {
        "w1": jax.random.normal(ks[0], (filter_size, filter_size, in_channels, out_channels), jnp.float32) * s1,
        "b1": jax.random.normal(ks[1], (out_channels,), jnp.float32) * s1,
        "w2": jax.random.normal(ks[2], (filter_size, filter_size, out_channels, out_channels), jnp.float32) * s2,
        "b2": jax.random.normal(ks[3], (out_channels,), jnp.float32) * s2,
        "w_sc": jax.random.normal(ks[4], (1, 1, in_channels, out_channels), jnp.float32) * ssc,
        "b_sc": jax.random.normal(ks[5], (out_channels,), jnp.float32) * ssc,
    }


# --------------------------------------------------------------------------- #
# Pure-JAX reference (same math) for a sanity check
# --------------------------------------------------------------------------- #
def _ref_conv_act(x, w, b, padding):
    y = jax.lax.conv_general_dilated(
        x, w, window_strides=(1, 1),
        padding=[(padding, padding), (padding, padding)],
        dimension_numbers=("NHWC", "HWIO", "NHWC"))
    return jax.nn.relu(y + b[None, None, None, :])


def _ref_avgpool2(x):
    N, H, W, C = x.shape
    return x.reshape(N, H // 2, 2, W // 2, 2, C).mean(axis=(2, 4))


def _ref_forward(x_nchw, params):
    x = jnp.transpose(x_nchw, (0, 2, 3, 1))
    shortcut = _ref_conv_act(_ref_avgpool2(x), params["w_sc"], params["b_sc"], 0)
    out = _ref_conv_act(x, params["w1"], params["b1"], 1)
    out = _ref_conv_act(out, params["w2"], params["b2"], 1)
    y = _ref_avgpool2(out) + shortcut
    return jnp.transpose(y, (0, 3, 1, 2))


# --------------------------------------------------------------------------- #
if __name__ == "__main__":
    key = jax.random.PRNGKey(0)
    k_x, k_p = jax.random.split(key)

    N, Cin, H, W = 2, 4, 16, 16            # NCHW, PyTorch convention
    Cout, filter_size = 8, 3

    x = jax.random.normal(k_x, (N, Cin, H, W), jnp.float32)
    params = init_params(k_p, Cin, Cout, filter_size)

    y = res_subsample_block(x, params)
    y = jax.block_until_ready(y)

    assert y.shape == (N, Cout, H // 2, W // 2), y.shape

    y_ref = _ref_forward(x, params)
    assert jnp.allclose(y, y_ref, atol=1e-4, rtol=1e-4), float(jnp.abs(y - y_ref).max())

    print("KERNEL_OK")
</pallas_src>

<mosaic_0001>
module attributes {stable_mosaic.version = 11 : i64} {
  func.func @_fused_block_kernel(%arg0: i32, %arg1: memref<1x18x18x4xf32, #tpu.memory_space<vmem>>, %arg2: memref<3x3x4x8xf32, #tpu.memory_space<vmem>>, %arg3: memref<1x8xf32, #tpu.memory_space<vmem>>, %arg4: memref<3x3x8x8xf32, #tpu.memory_space<vmem>>, %arg5: memref<1x8xf32, #tpu.memory_space<vmem>>, %arg6: memref<4x8xf32, #tpu.memory_space<vmem>>, %arg7: memref<1x8xf32, #tpu.memory_space<vmem>>, %arg8: memref<1x8x8x8xf32, #tpu.memory_space<vmem>>, %arg9: memref<1x18x18x8xf32, #tpu.memory_space<vmem>>, %arg10: memref<1x16x16x8xf32, #tpu.memory_space<vmem>>) attributes {dimension_semantics = [#tpu.dimension_semantics<parallel>], iteration_bounds = array<i64: 2>, scalar_prefetch = 0 : i64, scratch_operands = 2 : i64, tpu.core_type = #tpu.core_type<tc>, window_params = [{transform_indices = @transform_0, window_bounds = array<i64: 1, 18, 18, 4>}, {pipeline_mode = #tpu.pipeline_mode<synchronous>, transform_indices = @transform_1, window_bounds = array<i64: 3, 3, 4, 8>}, {pipeline_mode = #tpu.pipeline_mode<synchronous>, transform_indices = @transform_2, window_bounds = array<i64: 1, 8>}, {pipeline_mode = #tpu.pipeline_mode<synchronous>, transform_indices = @transform_3, window_bounds = array<i64: 3, 3, 8, 8>}, {pipeline_mode = #tpu.pipeline_mode<synchronous>, transform_indices = @transform_4, window_bounds = array<i64: 1, 8>}, {pipeline_mode = #tpu.pipeline_mode<synchronous>, transform_indices = @transform_5, window_bounds = array<i64: 4, 8>}, {pipeline_mode = #tpu.pipeline_mode<synchronous>, transform_indices = @transform_6, window_bounds = array<i64: 1, 8>}, {transform_indices = @transform_7, window_bounds = array<i64: 1, 8, 8, 8>}]} {
    %cst = arith.constant 0.000000e+00 : f32
    %0 = vector.broadcast %cst : f32 to vector<1x1x18x8xf32>
    %c0 = arith.constant 0 : index
    %c0_0 = arith.constant 0 : index
    %c0_1 = arith.constant 0 : index
    %c0_2 = arith.constant 0 : index
    %1 = vector.load %arg9[%c0, %c0_0, %c0_1, %c0_2] : memref<1x18x18x8xf32, #tpu.memory_space<vmem>>, vector<1x1x18x8xf32>
    tpu.vector_store %arg9[%c0, %c0_0, %c0_1, %c0_2], %0 {strides = array<i32>} : memref<1x18x18x8xf32, #tpu.memory_space<vmem>>, vector<1x1x18x8xf32>,
    %cst_3 = arith.constant 0.000000e+00 : f32
    %2 = vector.broadcast %cst_3 : f32 to vector<1x1x18x8xf32>
    %c0_4 = arith.constant 0 : index
    %c17 = arith.constant 17 : index
    %c0_5 = arith.constant 0 : index
    %c0_6 = arith.constant 0 : index
    %3 = vector.load %arg9[%c0_4, %c17, %c0_5, %c0_6] : memref<1x18x18x8xf32, #tpu.memory_space<vmem>>, vector<1x1x18x8xf32>
    tpu.vector_store %arg9[%c0_4, %c17, %c0_5, %c0_6], %2 {strides = array<i32>} : memref<1x18x18x8xf32, #tpu.memory_space<vmem>>, vector<1x1x18x8xf32>,
    %cst_7 = arith.constant 0.000000e+00 : f32
    %4 = vector.broadcast %cst_7 : f32 to vector<1x18x1x8xf32>
    %c0_8 = arith.constant 0 : index
    %c0_9 = arith.constant 0 : index
    %c0_10 = arith.constant 0 : index
    %c0_11 = arith.constant 0 : index
    %5 = vector.load %arg9[%c0_8, %c0_9, %c0_10, %c0_11] : memref<1x18x18x8xf32, #tpu.memory_space<vmem>>, vector<1x18x1x8xf32>
    tpu.vector_store %arg9[%c0_8, %c0_9, %c0_10, %c0_11], %4 {strides = array<i32>} : memref<1x18x18x8xf32, #tpu.memory_space<vmem>>, vector<1x18x1x8xf32>,
    %cst_12 = arith.constant 0.000000e+00 : f32
    %6 = vector.broadcast %cst_12 : f32 to vector<1x18x1x8xf32>
    %c0_13 = arith.constant 0 : index
    %c0_14 = arith.constant 0 : index
    %c17_15 = arith.constant 17 : index
    %c0_16 = arith.constant 0 : index
    %7 = vector.load %arg9[%c0_13, %c0_14, %c17_15, %c0_16] : memref<1x18x18x8xf32, #tpu.memory_space<vmem>>, vector<1x18x1x8xf32>
    tpu.vector_store %arg9[%c0_13, %c0_14, %c17_15, %c0_16], %6 {strides = array<i32>} : memref<1x18x18x8xf32, #tpu.memory_space<vmem>>, vector<1x18x1x8xf32>,
    %cst_17 = arith.constant 0.000000e+00 : f32
    %8 = vector.broadcast %cst_17 : f32 to vector<256x8xf32>
    %c0_18 = arith.constant 0 : index
    %c0_19 = arith.constant 0 : index
    %c0_20 = arith.constant 0 : index
    %c0_21 = arith.constant 0 : index
    %9 = vector.load %arg1[%c0_18, %c0_19, %c0_20, %c0_21] : memref<1x18x18x4xf32, #tpu.memory_space<vmem>>, vector<1x16x16x4xf32>
    %10 = vector.shape_cast %9 : vector<1x16x16x4xf32> to vector<256x4xf32>
    %c0_22 = arith.constant 0 : index
    %c0_23 = arith.constant 0 : index
    %c0_24 = arith.constant 0 : index
    %c0_25 = arith.constant 0 : index
    %11 = vector.load %arg2[%c0_22, %c0_23, %c0_24, %c0_25] : memref<3x3x4x8xf32, #tpu.memory_space<vmem>>, vector<1x1x4x8xf32>
    %12 = vector.shape_cast %11 : vector<1x1x4x8xf32> to vector<4x8xf32>
    %cst_26 = arith.constant dense<0.000000e+00> : vector<256x8xf32>
    %13 = tpu.matmul %10, %12, %cst_26 {dimension_numbers = #tpu.dot_dimension_numbers<[1], [0], [0], [1], [0, 0, 1, 1], [], []>} : vector<256x4xf32>, vector<4x8xf32>, vector<256x8xf32> -> vector<256x8xf32>
    %14 = arith.addf %8, %13 : vector<256x8xf32>
    %c0_27 = arith.constant 0 : index
    %c0_28 = arith.constant 0 : index
    %c1 = arith.constant 1 : index
    %c0_29 = arith.constant 0 : index
    %15 = vector.load %arg1[%c0_27, %c0_28, %c1, %c0_29] : memref<1x18x18x4xf32, #tpu.memory_space<vmem>>, vector<1x16x16x4xf32>
    %16 = vector.shape_cast %15 : vector<1x16x16x4xf32> to vector<256x4xf32>
    %c0_30 = arith.constant 0 : index
    %c1_31 = arith.constant 1 : index
    %c0_32 = arith.constant 0 : index
    %c0_33 = arith.constant 0 : index
    %17 = vector.load %arg2[%c0_30, %c1_31, %c0_32, %c0_33] : memref<3x3x4x8xf32, #tpu.memory_space<vmem>>, vector<1x1x4x8xf32>
    %18 = vector.shape_cast %17 : vector<1x1x4x8xf32> to vector<4x8xf32>
    %cst_34 = arith.constant dense<0.000000e+00> : vector<256x8xf32>
    %19 = tpu.matmul %16, %18, %cst_34 {dimension_numbers = #tpu.dot_dimension_numbers<[1], [0], [0], [1], [0, 0, 1, 1], [], []>} : vector<256x4xf32>, vector<4x8xf32>, vector<256x8xf32> -> vector<256x8xf32>
    %20 = arith.addf %14, %19 : vector<256x8xf32>
    %c0_35 = arith.constant 0 : index
    %c0_36 = arith.constant 0 : index
    %c2 = arith.constant 2 : index
    %c0_37 = arith.constant 0 : index
    %21 = vector.load %arg1[%c0_35, %c0_36, %c2, %c0_37] : memref<1x18x18x4xf32, #tpu.memory_space<vmem>>, vector<1x16x16x4xf32>
    %22 = vector.shape_cast %21 : vector<1x16x16x4xf32> to vector<256x4xf32>
    %c0_38 = arith.constant 0 : index
    %c2_39 = arith.constant 2 : index
    %c0_40 = arith.constant 0 : index
    %c0_41 = arith.constant 0 : index
    %23 = vector.load %arg2[%c0_38, %c2_39, %c0_40, %c0_41] : memref<3x3x4x8xf32, #tpu.memory_space<vmem>>, vector<1x1x4x8xf32>
    %24 = vector.shape_cast %23 : vector<1x1x4x8xf32> to vector<4x8xf32>
    %cst_42 = arith.constant dense<0.000000e+00> : vector<256x8xf32>
    %25 = tpu.matmul %22, %24, %cst_42 {dimension_numbers = #tpu.dot_dimension_numbers<[1], [0], [0], [1], [0, 0, 1, 1], [], []>} : vector<256x4xf32>, vector<4x8xf32>, vector<256x8xf32> -> vector<256x8xf32>
    %26 = arith.addf %20, %25 : vector<256x8xf32>
    %c0_43 = arith.constant 0 : index
    %c1_44 = arith.constant 1 : index
    %c0_45 = arith.constant 0 : index
    %c0_46 = arith.constant 0 : index
    %27 = vector.load %arg1[%c0_43, %c1_44, %c0_45, %c0_46] : memref<1x18x18x4xf32, #tpu.memory_space<vmem>>, vector<1x16x16x4xf32>
    %28 = vector.shape_cast %27 : vector<1x16x16x4xf32> to vector<256x4xf32>
    %c1_47 = arith.constant 1 : index
    %c0_48 = arith.constant 0 : index
    %c0_49 = arith.constant 0 : index
    %c0_50 = arith.constant 0 : index
    %29 = vector.load %arg2[%c1_47, %c0_48, %c0_49, %c0_50] : memref<3x3x4x8xf32, #tpu.memory_space<vmem>>, vector<1x1x4x8xf32>
    %30 = vector.shape_cast %29 : vector<1x1x4x8xf32> to vector<4x8xf32>
    %cst_51 = arith.constant dense<0.000000e+00> : vector<256x8xf32>
    %31 = tpu.matmul %28, %30, %cst_51 {dimension_numbers = #tpu.dot_dimension_numbers<[1], [0], [0], [1], [0, 0, 1, 1], [], []>} : vector<256x4xf32>, vector<4x8xf32>, vector<256x8xf32> -> vector<256x8xf32>
    %32 = arith.addf %26, %31 : vector<256x8xf32>
    %c0_52 = arith.constant 0 : index
    %c1_53 = arith.constant 1 : index
    %c1_54 = arith.constant 1 : index
    %c0_55 = arith.constant 0 : index
    %33 = vector.load %arg1[%c0_52, %c1_53, %c1_54, %c0_55] : memref<1x18x18x4xf32, #tpu.memory_space<vmem>>, vector<1x16x16x4xf32>
    %34 = vector.shape_cast %33 : vector<1x16x16x4xf32> to vector<256x4xf32>
    %c1_56 = arith.constant 1 : index
    %c1_57 = arith.constant 1 : index
    %c0_58 = arith.constant 0 : index
    %c0_59 = arith.constant 0 : index
    %35 = vector.load %arg2[%c1_56, %c1_57, %c0_58, %c0_59] : memref<3x3x4x8xf32, #tpu.memory_space<vmem>>, vector<1x1x4x8xf32>
    %36 = vector.shape_cast %35 : vector<1x1x4x8xf32> to vector<4x8xf32>
    %cst_60 = arith.constant dense<0.000000e+00> : vector<256x8xf32>
    %37 = tpu.matmul %34, %36, %cst_60 {dimension_numbers = #tpu.dot_dimension_numbers<[1], [0], [0], [1], [0, 0, 1, 1], [], []>} : vector<256x4xf32>, vector<4x8xf32>, vector<256x8xf32> -> vector<256x8xf32>
    %38 = arith.addf %32, %37 : vector<256x8xf32>
    %c0_61 = arith.constant 0 : index
    %c1_62 = arith.constant 1 : index
    %c2_63 = arith.constant 2 : index
    %c0_64 = arith.constant 0 : index
    %39 = vector.load %arg1[%c0_61, %c1_62, %c2_63, %c0_64] : memref<1x18x18x4xf32, #tpu.memory_space<vmem>>, vector<1x16x16x4xf32>
    %40 = vector.shape_cast %39 : vector<1x16x16x4xf32> to vector<256x4xf32>
    %c1_65 = arith.constant 1 : index
    %c2_66 = arith.constant 2 : index
    %c0_67 = arith.constant 0 : index
    %c0_68 = arith.constant 0 : index
    %41 = vector.load %arg2[%c1_65, %c2_66, %c0_67, %c0_68] : memref<3x3x4x8xf32, #tpu.memory_space<vmem>>, vector<1x1x4x8xf32>
    %42 = vector.shape_cast %41 : vector<1x1x4x8xf32> to vector<4x8xf32>
    %cst_69 = arith.constant dense<0.000000e+00> : vector<256x8xf32>
    %43 = tpu.matmul %40, %42, %cst_69 {dimension_numbers = #tpu.dot_dimension_numbers<[1], [0], [0], [1], [0, 0, 1, 1], [], []>} : vector<256x4xf32>, vector<4x8xf32>, vector<256x8xf32> -> vector<256x8xf32>
    %44 = arith.addf %38, %43 : vector<256x8xf32>
    %c0_70 = arith.constant 0 : index
    %c2_71 = arith.constant 2 : index
    %c0_72 = arith.constant 0 : index
    %c0_73 = arith.constant 0 : index
    %45 = vector.load %arg1[%c0_70, %c2_71, %c0_72, %c0_73] : memref<1x18x18x4xf32, #tpu.memory_space<vmem>>, vector<1x16x16x4xf32>
    %46 = vector.shape_cast %45 : vector<1x16x16x4xf32> to vector<256x4xf32>
    %c2_74 = arith.constant 2 : index
    %c0_75 = arith.constant 0 : index
    %c0_76 = arith.constant 0 : index
    %c0_77 = arith.constant 0 : index
    %47 = vector.load %arg2[%c2_74, %c0_75, %c0_76, %c0_77] : memref<3x3x4x8xf32, #tpu.memory_space<vmem>>, vector<1x1x4x8xf32>
    %48 = vector.shape_cast %47 : vector<1x1x4x8xf32> to vector<4x8xf32>
    %cst_78 = arith.constant dense<0.000000e+00> : vector<256x8xf32>
    %49 = tpu.matmul %46, %48, %cst_78 {dimension_numbers = #tpu.dot_dimension_numbers<[1], [0], [0], [1], [0, 0, 1, 1], [], []>} : vector<256x4xf32>, vector<4x8xf32>, vector<256x8xf32> -> vector<256x8xf32>
    %50 = arith.addf %44, %49 : vector<256x8xf32>
    %c0_79 = arith.constant 0 : index
    %c2_80 = arith.constant 2 : index
    %c1_81 = arith.constant 1 : index
    %c0_82 = arith.constant 0 : index
    %51 = vector.load %arg1[%c0_79, %c2_80, %c1_81, %c0_82] : memref<1x18x18x4xf32, #tpu.memory_space<vmem>>, vector<1x16x16x4xf32>
    %52 = vector.shape_cast %51 : vector<1x16x16x4xf32> to vector<256x4xf32>
    %c2_83 = arith.constant 2 : index
    %c1_84 = arith.constant 1 : index
    %c0_85 = arith.constant 0 : index
    %c0_86 = arith.constant 0 : index
    %53 = vector.load %arg2[%c2_83, %c1_84, %c0_85, %c0_86] : memref<3x3x4x8xf32, #tpu.memory_space<vmem>>, vector<1x1x4x8xf32>
    %54 = vector.shape_cast %53 : vector<1x1x4x8xf32> to vector<4x8xf32>
    %cst_87 = arith.constant dense<0.000000e+00> : vector<256x8xf32>
    %55 = tpu.matmul %52, %54, %cst_87 {dimension_numbers = #tpu.dot_dimension_numbers<[1], [0], [0], [1], [0, 0, 1, 1], [], []>} : vector<256x4xf32>, vector<4x8xf32>, vector<256x8xf32> -> vector<256x8xf32>
    %56 = arith.addf %50, %55 : vector<256x8xf32>
    %c0_88 = arith.constant 0 : index
    %c2_89 = arith.constant 2 : index
    %c2_90 = arith.constant 2 : index
    %c0_91 = arith.constant 0 : index
    %57 = vector.load %arg1[%c0_88, %c2_89, %c2_90, %c0_91] : memref<1x18x18x4xf32, #tpu.memory_space<vmem>>, vector<1x16x16x4xf32>
    %58 = vector.shape_cast %57 : vector<1x16x16x4xf32> to vector<256x4xf32>
    %c2_92 = arith.constant 2 : index
    %c2_93 = arith.constant 2 : index
    %c0_94 = arith.constant 0 : index
    %c0_95 = arith.constant 0 : index
    %59 = vector.load %arg2[%c2_92, %c2_93, %c0_94, %c0_95] : memref<3x3x4x8xf32, #tpu.memory_space<vmem>>, vector<1x1x4x8xf32>
    %60 = vector.shape_cast %59 : vector<1x1x4x8xf32> to vector<4x8xf32>
    %cst_96 = arith.constant dense<0.000000e+00> : vector<256x8xf32>
    %61 = tpu.matmul %58, %60, %cst_96 {dimension_numbers = #tpu.dot_dimension_numbers<[1], [0], [0], [1], [0, 0, 1, 1], [], []>} : vector<256x4xf32>, vector<4x8xf32>, vector<256x8xf32> -> vector<256x8xf32>
    %62 = arith.addf %56, %61 : vector<256x8xf32>
    %c0_97 = arith.constant 0 : index
    %c0_98 = arith.constant 0 : index
    %63 = vector.load %arg3[%c0_97, %c0_98] : memref<1x8xf32, #tpu.memory_space<vmem>>, vector<1x8xf32>
    %64 = vector.broadcast %63 : vector<1x8xf32> to vector<256x8xf32>
    %65 = arith.addf %62, %64 : vector<256x8xf32>
    %cst_99 = arith.constant 0.000000e+00 : f32
    %66 = vector.broadcast %cst_99 : f32 to vector<256x8xf32>
    %67 = arith.maximumf %65, %66 : vector<256x8xf32>
    %68 = vector.shape_cast %67 : vector<256x8xf32> to vector<1x16x16x8xf32>
    %c0_100 = arith.constant 0 : index
    %c1_101 = arith.constant 1 : index
    %c1_102 = arith.constant 1 : index
    %c0_103 = arith.constant 0 : index
    %69 = vector.load %arg9[%c0_100, %c1_101, %c1_102, %c0_103] : memref<1x18x18x8xf32, #tpu.memory_space<vmem>>, vector<1x16x16x8xf32>
    tpu.vector_store %arg9[%c0_100, %c1_101, %c1_102, %c0_103], %68 {strides = array<i32>} : memref<1x18x18x8xf32, #tpu.memory_space<vmem>>, vector<1x16x16x8xf32>,
    %cst_104 = arith.constant 0.000000e+00 : f32
    %70 = vector.broadcast %cst_104 : f32 to vector<256x8xf32>
    %c0_105 = arith.constant 0 : index
    %c0_106 = arith.constant 0 : index
    %c0_107 = arith.constant 0 : index
    %c0_108 = arith.constant 0 : index
    %71 = vector.load %arg9[%c0_105, %c0_106, %c0_107, %c0_108] : memref<1x18x18x8xf32, #tpu.memory_space<vmem>>, vector<1x16x16x8xf32>
    %72 = vector.shape_cast %71 : vector<1x16x16x8xf32> to vector<256x8xf32>
    %c0_109 = arith.constant 0 : index
    %c0_110 = arith.constant 0 : index
    %c0_111 = arith.constant 0 : index
    %c0_112 = arith.constant 0 : index
    %73 = vector.load %arg4[%c0_109, %c0_110, %c0_111, %c0_112] : memref<3x3x8x8xf32, #tpu.memory_space<vmem>>, vector<1x1x8x8xf32>
    %74 = vector.shape_cast %73 : vector<1x1x8x8xf32> to vector<8x8xf32>
    %cst_113 = arith.constant dense<0.000000e+00> : vector<256x8xf32>
    %75 = tpu.matmul %72, %74, %cst_113 {dimension_numbers = #tpu.dot_dimension_numbers<[1], [0], [0], [1], [0, 0, 1, 1], [], []>} : vector<256x8xf32>, vector<8x8xf32>, vector<256x8xf32> -> vector<256x8xf32>
    %76 = arith.addf %70, %75 : vector<256x8xf32>
    %c0_114 = arith.constant 0 : index
    %c0_115 = arith.constant 0 : index
    %c1_116 = arith.constant 1 : index
    %c0_117 = arith.constant 0 : index
    %77 = vector.load %arg9[%c0_114, %c0_115, %c1_116, %c0_117] : memref<1x18x18x8xf32, #tpu.memory_space<vmem>>, vector<1x16x16x8xf32>
    %78 = vector.shape_cast %77 : vector<1x16x16x8xf32> to vector<256x8xf32>
    %c0_118 = arith.constant 0 : index
    %c1_119 = arith.constant 1 : index
    %c0_120 = arith.constant 0 : index
    %c0_121 = arith.constant 0 : index
    %79 = vector.load %arg4[%c0_118, %c1_119, %c0_120, %c0_121] : memref<3x3x8x8xf32, #tpu.memory_space<vmem>>, vector<1x1x8x8xf32>
    %80 = vector.shape_cast %79 : vector<1x1x8x8xf32> to vector<8x8xf32>
    %cst_122 = arith.constant dense<0.000000e+00> : vector<256x8xf32>
    %81 = tpu.matmul %78, %80, %cst_122 {dimension_numbers = #tpu.dot_dimension_numbers<[1], [0], [0], [1], [0, 0, 1, 1], [], []>} : vector<256x8xf32>, vector<8x8xf32>, vector<256x8xf32> -> vector<256x8xf32>
    %82 = arith.addf %76, %81 : vector<256x8xf32>
    %c0_123 = arith.constant 0 : index
    %c0_124 = arith.constant 0 : index
    %c2_125 = arith.constant 2 : index
    %c0_126 = arith.constant 0 : index
    %83 = vector.load %arg9[%c0_123, %c0_124, %c2_125, %c0_126] : memref<1x18x18x8xf32, #tpu.memory_space<vmem>>, vector<1x16x16x8xf32>
    %84 = vector.shape_cast %83 : vector<1x16x16x8xf32> to vector<256x8xf32>
    %c0_127 = arith.constant 0 : index
    %c2_128 = arith.constant 2 : index
    %c0_129 = arith.constant 0 : index
    %c0_130 = arith.constant 0 : index
    %85 = vector.load %arg4[%c0_127, %c2_128, %c0_129, %c0_130] : memref<3x3x8x8xf32, #tpu.memory_space<vmem>>, vector<1x1x8x8xf32>
    %86 = vector.shape_cast %85 : vector<1x1x8x8xf32> to vector<8x8xf32>
    %cst_131 = arith.constant dense<0.000000e+00> : vector<256x8xf32>
    %87 = tpu.matmul %84, %86, %cst_131 {dimension_numbers = #tpu.dot_dimension_numbers<[1], [0], [0], [1], [0, 0, 1, 1], [], []>} : vector<256x8xf32>, vector<8x8xf32>, vector<256x8xf32> -> vector<256x8xf32>
    %88 = arith.addf %82, %87 : vector<256x8xf32>
    %c0_132 = arith.constant 0 : index
    %c1_133 = arith.constant 1 : index
    %c0_134 = arith.constant 0 : index
    %c0_135 = arith.constant 0 : index
    %89 = vector.load %arg9[%c0_132, %c1_133, %c0_134, %c0_135] : memref<1x18x18x8xf32, #tpu.memory_space<vmem>>, vector<1x16x16x8xf32>
    %90 = vector.shape_cast %89 : vector<1x16x16x8xf32> to vector<256x8xf32>
    %c1_136 = arith.constant 1 : index
    %c0_137 = arith.constant 0 : index
    %c0_138 = arith.constant 0 : index
    %c0_139 = arith.constant 0 : index
    %91 = vector.load %arg4[%c1_136, %c0_137, %c0_138, %c0_139] : memref<3x3x8x8xf32, #tpu.memory_space<vmem>>, vector<1x1x8x8xf32>
    %92 = vector.shape_cast %91 : vector<1x1x8x8xf32> to vector<8x8xf32>
    %cst_140 = arith.constant dense<0.000000e+00> : vector<256x8xf32>
    %93 = tpu.matmul %90, %92, %cst_140 {dimension_numbers = #tpu.dot_dimension_numbers<[1], [0], [0], [1], [0, 0, 1, 1], [], []>} : vector<256x8xf32>, vector<8x8xf32>, vector<256x8xf32> -> vector<256x8xf32>
    %94 = arith.addf %88, %93 : vector<256x8xf32>
    %c0_141 = arith.constant 0 : index
    %c1_142 = arith.constant 1 : index
    %c1_143 = arith.constant 1 : index
    %c0_144 = arith.constant 0 : index
    %95 = vector.load %arg9[%c0_141, %c1_142, %c1_143, %c0_144] : memref<1x18x18x8xf32, #tpu.memory_space<vmem>>, vector<1x16x16x8xf32>
    %96 = vector.shape_cast %95 : vector<1x16x16x8xf32> to vector<256x8xf32>
    %c1_145 = arith.constant 1 : index
    %c1_146 = arith.constant 1 : index
    %c0_147 = arith.constant 0 : index
    %c0_148 = arith.constant 0 : index
    %97 = vector.load %arg4[%c1_145, %c1_146, %c0_147, %c0_148] : memref<3x3x8x8xf32, #tpu.memory_space<vmem>>, vector<1x1x8x8xf32>
    %98 = vector.shape_cast %97 : vector<1x1x8x8xf32> to vector<8x8xf32>
    %cst_149 = arith.constant dense<0.000000e+00> : vector<256x8xf32>
    %99 = tpu.matmul %96, %98, %cst_149 {dimension_numbers = #tpu.dot_dimension_numbers<[1], [0], [0], [1], [0, 0, 1, 1], [], []>} : vector<256x8xf32>, vector<8x8xf32>, vector<256x8xf32> -> vector<256x8xf32>
    %100 = arith.addf %94, %99 : vector<256x8xf32>
    %c0_150 = arith.constant 0 : index
    %c1_151 = arith.constant 1 : index
    %c2_152 = arith.constant 2 : index
    %c0_153 = arith.constant 0 : index
    %101 = vector.load %arg9[%c0_150, %c1_151, %c2_152, %c0_153] : memref<1x18x18x8xf32, #tpu.memory_space<vmem>>, vector<1x16x16x8xf32>
    %102 = vector.shape_cast %101 : vector<1x16x16x8xf32> to vector<256x8xf32>
    %c1_154 = arith.constant 1 : index
    %c2_155 = arith.constant 2 : index
    %c0_156 = arith.constant 0 : index
    %c0_157 = arith.constant 0 : index
    %103 = vector.load %arg4[%c1_154, %c2_155, %c0_156, %c0_157] : memref<3x3x8x8xf32, #tpu.memory_space<vmem>>, vector<1x1x8x8xf32>
    %104 = vector.shape_cast %103 : vector<1x1x8x8xf32> to vector<8x8xf32>
    %cst_158 = arith.constant dense<0.000000e+00> : vector<256x8xf32>
    %105 = tpu.matmul %102, %104, %cst_158 {dimension_numbers = #tpu.dot_dimension_numbers<[1], [0], [0], [1], [0, 0, 1, 1], [], []>} : vector<256x8xf32>, vector<8x8xf32>, vector<256x8xf32> -> vector<256x8xf32>
    %106 = arith.addf %100, %105 : vector<256x8xf32>
    %c0_159 = arith.constant 0 : index
    %c2_160 = arith.constant 2 : index
    %c0_161 = arith.constant 0 : index
    %c0_162 = arith.constant 0 : index
    %107 = vector.load %arg9[%c0_159, %c2_160, %c0_161, %c0_162] : memref<1x18x18x8xf32, #tpu.memory_space<vmem>>, vector<1x16x16x8xf32>
    %108 = vector.shape_cast %107 : vector<1x16x16x8xf32> to vector<256x8xf32>
    %c2_163 = arith.constant 2 : index
    %c0_164 = arith.constant 0 : index
    %c0_165 = arith.constant 0 : index
    %c0_166 = arith.constant 0 : index
    %109 = vector.load %arg4[%c2_163, %c0_164, %c0_165, %c0_166] : memref<3x3x8x8xf32, #tpu.memory_space<vmem>>, vector<1x1x8x8xf32>
    %110 = vector.shape_cast %109 : vector<1x1x8x8xf32> to vector<8x8xf32>
    %cst_167 = arith.constant dense<0.000000e+00> : vector<256x8xf32>
    %111 = tpu.matmul %108, %110, %cst_167 {dimension_numbers = #tpu.dot_dimension_numbers<[1], [0], [0], [1], [0, 0, 1, 1], [], []>} : vector<256x8xf32>, vector<8x8xf32>, vector<256x8xf32> -> vector<256x8xf32>
    %112 = arith.addf %106, %111 : vector<256x8xf32>
    %c0_168 = arith.constant 0 : index
    %c2_169 = arith.constant 2 : index
    %c1_170 = arith.constant 1 : index
    %c0_171 = arith.constant 0 : index
    %113 = vector.load %arg9[%c0_168, %c2_169, %c1_170, %c0_171] : memref<1x18x18x8xf32, #tpu.memory_space<vmem>>, vector<1x16x16x8xf32>
    %114 = vector.shape_cast %113 : vector<1x16x16x8xf32> to vector<256x8xf32>
    %c2_172 = arith.constant 2 : index
    %c1_173 = arith.constant 1 : index
    %c0_174 = arith.constant 0 : index
    %c0_175 = arith.constant 0 : index
    %115 = vector.load %arg4[%c2_172, %c1_173, %c0_174, %c0_175] : memref<3x3x8x8xf32, #tpu.memory_space<vmem>>, vector<1x1x8x8xf32>
    %116 = vector.shape_cast %115 : vector<1x1x8x8xf32> to vector<8x8xf32>
    %cst_176 = arith.constant dense<0.000000e+00> : vector<256x8xf32>
    %117 = tpu.matmul %114, %116, %cst_176 {dimension_numbers = #tpu.dot_dimension_numbers<[1], [0], [0], [1], [0, 0, 1, 1], [], []>} : vector<256x8xf32>, vector<8x8xf32>, vector<256x8xf32> -> vector<256x8xf32>
    %118 = arith.addf %112, %117 : vector<256x8xf32>
    %c0_177 = arith.constant 0 : index
    %c2_178 = arith.constant 2 : index
    %c2_179 = arith.constant 2 : index
    %c0_180 = arith.constant 0 : index
    %119 = vector.load %arg9[%c0_177, %c2_178, %c2_179, %c0_180] : memref<1x18x18x8xf32, #tpu.memory_space<vmem>>, vector<1x16x16x8xf32>
    %120 = vector.shape_cast %119 : vector<1x16x16x8xf32> to vector<256x8xf32>
    %c2_181 = arith.constant 2 : index
    %c2_182 = arith.constant 2 : index
    %c0_183 = arith.constant 0 : index
    %c0_184 = arith.constant 0 : index
    %121 = vector.load %arg4[%c2_181, %c2_182, %c0_183, %c0_184] : memref<3x3x8x8xf32, #tpu.memory_space<vmem>>, vector<1x1x8x8xf32>
    %122 = vector.shape_cast %121 : vector<1x1x8x8xf32> to vector<8x8xf32>
    %cst_185 = arith.constant dense<0.000000e+00> : vector<256x8xf32>
    %123 = tpu.matmul %120, %122, %cst_185 {dimension_numbers = #tpu.dot_dimension_numbers<[1], [0], [0], [1], [0, 0, 1, 1], [], []>} : vector<256x8xf32>, vector<8x8xf32>, vector<256x8xf32> -> vector<256x8xf32>
    %124 = arith.addf %118, %123 : vector<256x8xf32>
    %c0_186 = arith.constant 0 : index
    %c0_187 = arith.constant 0 : index
    %125 = vector.load %arg5[%c0_186, %c0_187] : memref<1x8xf32, #tpu.memory_space<vmem>>, vector<1x8xf32>
    %126 = vector.broadcast %125 : vector<1x8xf32> to vector<256x8xf32>
    %127 = arith.addf %124, %126 : vector<256x8xf32>
    %cst_188 = arith.constant 0.000000e+00 : f32
    %128 = vector.broadcast %cst_188 : f32 to vector<256x8xf32>
    %129 = arith.maximumf %127, %128 : vector<256x8xf32>
    %130 = vector.shape_cast %129 : vector<256x8xf32> to vector<1x16x16x8xf32>
    %c0_189 = arith.constant 0 : index
    %c0_190 = arith.constant 0 : index
    %c0_191 = arith.constant 0 : index
    %c0_192 = arith.constant 0 : index
    %131 = vector.load %arg10[%c0_189, %c0_190, %c0_191, %c0_192] : memref<1x16x16x8xf32, #tpu.memory_space<vmem>>, vector<1x16x16x8xf32>
    tpu.vector_store %arg10[%c0_189, %c0_190, %c0_191, %c0_192], %130 {strides = array<i32>} : memref<1x16x16x8xf32, #tpu.memory_space<vmem>>, vector<1x16x16x8xf32>,
    %c0_193 = arith.constant 0 : index
    %c0_194 = arith.constant 0 : index
    %c0_195 = arith.constant 0 : index
    %c0_196 = arith.constant 0 : index
    %132 = tpu.strided_load %arg10[%c0_193, %c0_194, %c0_195, %c0_196] {strides = array<i32: 1, 1, 2, 1>} : memref<1x16x16x8xf32, #tpu.memory_space<vmem>>, vector<1x16x8x8xf32>
    %c0_197 = arith.constant 0 : index
    %c0_198 = arith.constant 0 : index
    %c1_199 = arith.constant 1 : index
    %c0_200 = arith.constant 0 : index
    %133 = tpu.strided_load %arg10[%c0_197, %c0_198, %c1_199, %c0_200] {strides = array<i32: 1, 1, 2, 1>} : memref<1x16x16x8xf32, #tpu.memory_space<vmem>>, vector<1x16x8x8xf32>
    %134 = arith.addf %132, %133 : vector<1x16x8x8xf32>
    %135 = vector.shape_cast %134 : vector<1x16x8x8xf32> to vector<1x8x2x8x8xf32>
    %136 = vector.extract_strided_slice %135 {offsets = [0, 0, 0, 0, 0], sizes = [1, 8, 1, 8, 8], strides = [1, 1, 1, 1, 1]} : vector<1x8x2x8x8xf32> to vector<1x8x1x8x8xf32>
    %137 = vector.shape_cast %136 : vector<1x8x1x8x8xf32> to vector<1x8x8x8xf32>
    %138 = vector.extract_strided_slice %135 {offsets = [0, 0, 1, 0, 0], sizes = [1, 8, 1, 8, 8], strides = [1, 1, 1, 1, 1]} : vector<1x8x2x8x8xf32> to vector<1x8x1x8x8xf32>
    %139 = vector.shape_cast %138 : vector<1x8x1x8x8xf32> to vector<1x8x8x8xf32>
    %140 = arith.addf %137, %139 : vector<1x8x8x8xf32>
    %cst_201 = arith.constant 2.500000e-01 : f32
    %141 = vector.broadcast %cst_201 : f32 to vector<1x8x8x8xf32>
    %142 = arith.mulf %140, %141 : vector<1x8x8x8xf32>
    %c0_202 = arith.constant 0 : index
    %c1_203 = arith.constant 1 : index
    %c1_204 = arith.constant 1 : index
    %c0_205 = arith.constant 0 : index
    %143 = tpu.strided_load %arg1[%c0_202, %c1_203, %c1_204, %c0_205] {strides = array<i32: 1, 1, 2, 1>} : memref<1x18x18x4xf32, #tpu.memory_space<vmem>>, vector<1x16x8x4xf32>
    %c0_206 = arith.constant 0 : index
    %c1_207 = arith.constant 1 : index
    %c2_208 = arith.constant 2 : index
    %c0_209 = arith.constant 0 : index
    %144 = tpu.strided_load %arg1[%c0_206, %c1_207, %c2_208, %c0_209] {strides = array<i32: 1, 1, 2, 1>} : memref<1x18x18x4xf32, #tpu.memory_space<vmem>>, vector<1x16x8x4xf32>
    %145 = arith.addf %143, %144 : vector<1x16x8x4xf32>
    %146 = vector.shape_cast %145 : vector<1x16x8x4xf32> to vector<1x8x2x8x4xf32>
    %147 = vector.extract_strided_slice %146 {offsets = [0, 0, 0, 0, 0], sizes = [1, 8, 1, 8, 4], strides = [1, 1, 1, 1, 1]} : vector<1x8x2x8x4xf32> to vector<1x8x1x8x4xf32>
    %148 = vector.shape_cast %147 : vector<1x8x1x8x4xf32> to vector<1x8x8x4xf32>
    %149 = vector.extract_strided_slice %146 {offsets = [0, 0, 1, 0, 0], sizes = [1, 8, 1, 8, 4], strides = [1, 1, 1, 1, 1]} : vector<1x8x2x8x4xf32> to vector<1x8x1x8x4xf32>
    %150 = vector.shape_cast %149 : vector<1x8x1x8x4xf32> to vector<1x8x8x4xf32>
    %151 = arith.addf %148, %150 : vector<1x8x8x4xf32>
    %cst_210 = arith.constant 2.500000e-01 : f32
    %152 = vector.broadcast %cst_210 : f32 to vector<1x8x8x4xf32>
    %153 = arith.mulf %151, %152 : vector<1x8x8x4xf32>
    %154 = vector.shape_cast %153 : vector<1x8x8x4xf32> to vector<64x4xf32>
    %c0_211 = arith.constant 0 : index
    %c0_212 = arith.constant 0 : index
    %155 = vector.load %arg6[%c0_211, %c0_212] : memref<4x8xf32, #tpu.memory_space<vmem>>, vector<4x8xf32>
    %cst_213 = arith.constant dense<0.000000e+00> : vector<64x8xf32>
    %156 = tpu.matmul %154, %155, %cst_213 {dimension_numbers = #tpu.dot_dimension_numbers<[1], [0], [0], [1], [0, 0, 1, 1], [], []>} : vector<64x4xf32>, vector<4x8xf32>, vector<64x8xf32> -> vector<64x8xf32>
    %c0_214 = arith.constant 0 : index
    %c0_215 = arith.constant 0 : index
    %157 = vector.load %arg7[%c0_214, %c0_215] : memref<1x8xf32, #tpu.memory_space<vmem>>, vector<1x8xf32>
    %158 = vector.broadcast %157 : vector<1x8xf32> to vector<64x8xf32>
    %159 = arith.addf %156, %158 : vector<64x8xf32>
    %cst_216 = arith.constant 0.000000e+00 : f32
    %160 = vector.broadcast %cst_216 : f32 to vector<64x8xf32>
    %161 = arith.maximumf %159, %160 : vector<64x8xf32>
    %162 = vector.shape_cast %161 : vector<64x8xf32> to vector<1x8x8x8xf32>
    %163 = arith.addf %142, %162 : vector<1x8x8x8xf32>
    %c0_217 = arith.constant 0 : index
    %c0_218 = arith.constant 0 : index
    %c0_219 = arith.constant 0 : index
    %c0_220 = arith.constant 0 : index
    %164 = vector.load %arg8[%c0_217, %c0_218, %c0_219, %c0_220] : memref<1x8x8x8xf32, #tpu.memory_space<vmem>>, vector<1x8x8x8xf32>
    tpu.vector_store %arg8[%c0_217, %c0_218, %c0_219, %c0_220], %163 {strides = array<i32>} : memref<1x8x8x8xf32, #tpu.memory_space<vmem>>, vector<1x8x8x8xf32>,
    return
  }
  func.func @transform_0(%arg0: i32) -> (i32, i32, i32, i32) {
    %c0_i32 = arith.constant 0 : i32
    %c0_i32_0 = arith.constant 0 : i32
    %c0_i32_1 = arith.constant 0 : i32
    %c0_i32_2 = arith.constant 0 : i32
    return %arg0, %c0_i32, %c0_i32_0, %c0_i32_1 : i32, i32, i32, i32
  }
  func.func @transform_1(%arg0: i32) -> (i32, i32, i32, i32) {
    %c0_i32 = arith.constant 0 : i32
    %c0_i32_0 = arith.constant 0 : i32
    %c0_i32_1 = arith.constant 0 : i32
    %c0_i32_2 = arith.constant 0 : i32
    %c0_i32_3 = arith.constant 0 : i32
    return %c0_i32, %c0_i32_0, %c0_i32_1, %c0_i32_2 : i32, i32, i32, i32
  }
  func.func @transform_2(%arg0: i32) -> (i32, i32) {
    %c0_i32 = arith.constant 0 : i32
    %c0_i32_0 = arith.constant 0 : i32
    %c0_i32_1 = arith.constant 0 : i32
    return %c0_i32, %c0_i32_0 : i32, i32
  }
  func.func @transform_3(%arg0: i32) -> (i32, i32, i32, i32) {
    %c0_i32 = arith.constant 0 : i32
    %c0_i32_0 = arith.constant 0 : i32
    %c0_i32_1 = arith.constant 0 : i32
    %c0_i32_2 = arith.constant 0 : i32
    %c0_i32_3 = arith.constant 0 : i32
    return %c0_i32, %c0_i32_0, %c0_i32_1, %c0_i32_2 : i32, i32, i32, i32
  }
  func.func @transform_4(%arg0: i32) -> (i32, i32) {
    %c0_i32 = arith.constant 0 : i32
    %c0_i32_0 = arith.constant 0 : i32
    %c0_i32_1 = arith.constant 0 : i32
    return %c0_i32, %c0_i32_0 : i32, i32
  }
  func.func @transform_5(%arg0: i32) -> (i32, i32) {
    %c0_i32 = arith.constant 0 : i32
    %c0_i32_0 = arith.constant 0 : i32
    %c0_i32_1 = arith.constant 0 : i32
    return %c0_i32, %c0_i32_0 : i32, i32
  }
  func.func @transform_6(%arg0: i32) -> (i32, i32) {
    %c0_i32 = arith.constant 0 : i32
    %c0_i32_0 = arith.constant 0 : i32
    %c0_i32_1 = arith.constant 0 : i32
    return %c0_i32, %c0_i32_0 : i32, i32
  }
  func.func @transform_7(%arg0: i32) -> (i32, i32, i32, i32) {
    %c0_i32 = arith.constant 0 : i32
    %c0_i32_0 = arith.constant 0 : i32
    %c0_i32_1 = arith.constant 0 : i32
    %c0_i32_2 = arith.constant 0 : i32
    return %arg0, %c0_i32, %c0_i32_0, %c0_i32_1 : i32, i32, i32, i32
  }
}

</mosaic_0001>

<bundles_post_ra>
// kernel: res_subsample_block.1
= control target key start
LH: loop header
LB: loop body
LE: loop exit
PB: predicated region body
PF: predicated region fallthrough
CT: control target
= control target key end

     0   :  { %s10780_s24 = smov 0   ;;  %s12788_s0 = inlined_call_operand.vmem [shape: f32[2,18,18,4], index: 0, kind: input, shape index: {}]   ;;  %s12789_s1 = inlined_call_operand.vmem [shape: f32[3,3,4,8], index: 1, kind: input, shape index: {}]   ;;  %s12790_s2 = inlined_call_operand.vmem [shape: f32[1,8], index: 2, kind: input, shape index: {}]   ;;  %s12791_s3 = inlined_call_operand.vmem [shape: f32[3,3,8,8], index: 3, kind: input, shape index: {}]   ;;  %s12792_s4 = inlined_call_operand.vmem [shape: f32[1,8], index: 4, kind: input, shape index: {}]   ;;  %s12793_s5 = inlined_call_operand.vmem [shape: f32[4,8], index: 5, kind: input, shape index: {}]   ;;  %s12794_s6 = inlined_call_operand.vmem [shape: f32[1,8], index: 6, kind: input, shape index: {}]   ;;  %s12795_s7 = inlined_call_operand.vmem [shape: f32[2,8,8,8], index: 7, kind: output, shape index: {}]  }
   0x1 LB: > { %s7842_s25 = sadd.s32 4294967295, %s10737_s24   ;;  %p7846_p0 = scmp.ge.s32.totalorder %s10737_s24, 1  ;;  %s10737_s24 = sphi %s10780_s24, %s17_s24  }
   0x2   : > { %p237_p1 = scmp.lt.s32.totalorder %s10737_s24, 3 }
   0x4   : > { %p238_p2 = pnand %p7846_p0, %p237_p1 }
   0x6   : > { %241 = sbr.rel (%p238_p2) target bundleno = 1555 (0x613), region = 48 }
   0xd   : > { %v7850_v0 = vld [vmem:[%s12789_s1 + $0x4] sm:$0xf]  ;;  %vm489_vm0 = vcmask 1043456   ;;  %p269_p3 = scmp.lt.s32.totalorder %s7842_s25, 1  ;;  %v357_v1 = vld [vmem:[%s12789_s1] sm:$0xf] }
   0xe   : > { %9293 = vmatprep.subr.msk.mxu0 %vm489_vm0, %v7850_v0  ;;  %10207 = vmatprep.subr.msk.mxu1 %vm489_vm0, %v7850_v0  ;;  %vm392_vm1 = vcmask 31744   ;;  %v7917_v5 = vld [vmem:[%s12789_s1 + $0x8] sm:$0xf]  ;;  %v10955_v34 = vld [vmem:[%s12789_s1 + $0xc] sm:$0xf]  ;;  %vm279_vm2 = vcmask 64512  }
   0xf   : > { %9294 = vmatpush3.msk.msra.mxu0 %vm489_vm0, %v7850_v0  ;;  %s13084_s25 = smov (!%p269_p3, %s7842_s25), 1  ;;  %10208 = vmatpush3.msk.msra.mxu1 %vm489_vm0, %v7850_v0  ;;  %vm282_vm3 = vcmask 58368   ;;  %vm288_vm4 = vcmask 57344  }
  0x10   : > { %9343 = vmatprep.subr.msk.mxu0 %vm489_vm0, %v357_v1  ;;  %s10721_s30 = smul.u32 432, %s13084_s25  ;;  %s8689_s9 = sshll.u32 %s13084_s25, 6 }
  0x11   : > { %s12711_s13 = scalar_lea.vmem %s12795_s7, %s8689_s9 }
  0x12   : > { %s10805_s10 = scalar_lea.vmem %s12788_s0, %s10721_s30 }
  0x13   : > { %v358_v2 = vld [vmem:[%s10805_s10 + $0x1] sm:$0xff]  ;;  %v359_v3 = vld [vmem:[%s10805_s10 + $0x9] sm:$0xff]  ;;  %v10810_v4 = vld [vmem:[%s10805_s10 + $0x19] sm:$0xff] }
  0x14   : > { %9295 = vmatprep.mubr.msk.f32.mxu0 %vm392_vm1, %v358_v2  ;;  %v10821_v6 = vld [vmem:[%s10805_s10 + $0x21] sm:$0xff]  ;;  %v10824_v7 = vld [vmem:[%s10805_s10 + $0x31] sm:$0xff]  ;;  %v10832_v8 = vld [vmem:[%s10805_s10 + $0x39] sm:$0xff] }
  0x15   : > { %9296 = vmatmul.mubr.msk.f32.vlgmr.msra.gmra.mrb[0].mxu0 %vm392_vm1, %v359_v3  ;;  %v10835_v9 = vld [vmem:[%s10805_s10 + $0x49] sm:$0xff]  ;;  %v10842_v10 = vld [vmem:[%s10805_s10 + $0x51] sm:$0xff]  ;;  %v10845_v11 = vld [vmem:[%s10805_s10 + $0x61] sm:$0xff] }
  0x16   : > { %9344 = vmatpush3.msk.msra.mxu0 %vm489_vm0, %v357_v1  ;;  %9298 = vmatprep.mubr.msk.f32.mxu0 %vm392_vm1, %v10810_v4  ;;  %v10852_v12 = vld [vmem:[%s10805_s10 + $0x69] sm:$0xff]  ;;  %v10855_v13 = vld [vmem:[%s10805_s10 + $0x79] sm:$0xff]  ;;  %v10862_v14 = vld [vmem:[%s10805_s10 + $0x81] sm:$0xff] }
  0x17   : > { %9393 = vmatprep.subr.msk.mxu0 %vm489_vm0, %v7917_v5  ;;  %v10865_v15 = vld [vmem:[%s10805_s10 + $0x91] sm:$0xff]  ;;  %v10872_v16 = vld [vmem:[%s10805_s10 + $0x99] sm:$0xff]  ;;  %v10875_v17 = vld [vmem:[%s10805_s10 + $0xa9] sm:$0xff] }
  0x18   : > { %v10882_v18 = vld [vmem:[%s10805_s10 + $0xb1] sm:$0xff]  ;;  %v10885_v19 = vld [vmem:[%s10805_s10 + $0xc1] sm:$0xff]  ;;  %v10892_v20 = vld [vmem:[%s10805_s10 + $0xc9] sm:$0xff] }
  0x19   : > { %9299 = vmatmul.mubr.msk.f32.gmra.mrb[2].mxu0 %vm392_vm1, %v10821_v6  ;;  %v10895_v21 = vld [vmem:[%s10805_s10 + $0xd9] sm:$0xff]  ;;  %v10902_v22 = vld [vmem:[%s10805_s10 + $0xe1] sm:$0xff]  ;;  %v10905_v23 = vld [vmem:[%s10805_s10 + $0xf1] sm:$0xff] }
  0x1a   : > { %9301 = vmatprep.mubr.msk.f32.mxu0 %vm392_vm1, %v10824_v7  ;;  %v10912_v24 = vld [vmem:[%s10805_s10 + $0xf9] sm:$0xff]  ;;  %v10915_v25 = vld [vmem:[%s10805_s10 + $0x109] sm:$0xff]  ;;  %v10922_v26 = vld [vmem:[%s10805_s10 + $0x111] sm:$0xff] }
  0x1b   : > { %v10925_v27 = vld [vmem:[%s10805_s10 + $0x121] sm:$0xff]  ;;  %v10932_v28 = vld [vmem:[%s10805_s10 + $0x129] sm:$0xff]  ;;  %v10935_v29 = vld [vmem:[%s10805_s10 + $0x139] sm:$0xff] }
  0x1c   : > { %12917 = vst [vmem:[#allocation4_spill] sm:$0xff] %v10935_v29  ;;  %v10942_v30 = vld [vmem:[%s10805_s10 + $0x141] sm:$0xff]  ;;  %v10950_v33 = vld [vmem:[%s10805_s10 + $0x18] sm:$0xff]  ;;  %v10965_v36 = vld [vmem:[%s10805_s10 + $0x30] sm:$0xff] }
  0x1d   : > { %9302 = vmatmul.mubr.msk.f32.gmra.mrb[4].mxu0 %vm392_vm1, %v10832_v8  ;;  %12918 = vst [vmem:[#allocation5_spill] sm:$0xff] %v10942_v30  ;;  %v325_v31 = vld [vmem:[%s10805_s10] sm:$0xff]  ;;  %v326_v32 = vld [vmem:[%s10805_s10 + $0x8] sm:$0xff]  ;;  %v10974_v37 = vld [vmem:[%s10805_s10 + $0x38] sm:$0xff] }
  0x1e   : > { %9304 = vmatprep.mubr.msk.f32.mxu0 %vm392_vm1, %v10835_v9  ;;  %v10962_v35 = vld [vmem:[%s10805_s10 + $0x20] sm:$0xff]  ;;  %v10977_v38 = vld [vmem:[%s10805_s10 + $0x48] sm:$0xff]  ;;  %v10984_v39 = vld [vmem:[%s10805_s10 + $0x50] sm:$0xff] }
  0x1f   : > { %v10987_v40 = vld [vmem:[%s10805_s10 + $0x60] sm:$0xff]  ;;  %v10994_v41 = vld [vmem:[%s10805_s10 + $0x68] sm:$0xff]  ;;  %v10997_v42 = vld [vmem:[%s10805_s10 + $0x78] sm:$0xff] }
  0x20   : > { %v11004_v43 = vld [vmem:[%s10805_s10 + $0x80] sm:$0xff]  ;;  %v11007_v44 = vld [vmem:[%s10805_s10 + $0x90] sm:$0xff]  ;;  %v11014_v45 = vld [vmem:[%s10805_s10 + $0x98] sm:$0xff] }
  0x21   : > { %9305 = vmatmul.mubr.msk.f32.gmra.mrb[6].mxu0 %vm392_vm1, %v10842_v10  ;;  %v11017_v46 = vld [vmem:[%s10805_s10 + $0xa8] sm:$0xff]  ;;  %v11024_v47 = vld [vmem:[%s10805_s10 + $0xb0] sm:$0xff]  ;;  %v11027_v48 = vld [vmem:[%s10805_s10 + $0xc0] sm:$0xff] }
  0x22   : > { %9307 = vmatprep.mubr.msk.f32.mxu0 %vm392_vm1, %v10845_v11  ;;  %v11034_v49 = vld [vmem:[%s10805_s10 + $0xc8] sm:$0xff]  ;;  %v11037_v50 = vld [vmem:[%s10805_s10 + $0xd8] sm:$0xff]  ;;  %v11044_v51 = vld [vmem:[%s10805_s10 + $0xe0] sm:$0xff] }
  0x23   : > { %v11047_v52 = vld [vmem:[%s10805_s10 + $0xf0] sm:$0xff]  ;;  %v11054_v53 = vld [vmem:[%s10805_s10 + $0xf8] sm:$0xff]  ;;  %v11057_v54 = vld [vmem:[%s10805_s10 + $0x108] sm:$0xff] }
  0x24   : > { %v11064_v55 = vld [vmem:[%s10805_s10 + $0x110] sm:$0xff]  ;;  %v11067_v56 = vld [vmem:[%s10805_s10 + $0x120] sm:$0xff]  ;;  %v11074_v57 = vld [vmem:[%s10805_s10 + $0x128] sm:$0xff] }
  0x25   : > { %9308 = vmatmul.mubr.msk.f32.gmra.mrb[8].mxu0 %vm392_vm1, %v10852_v12  ;;  %v11077_v58 = vld [vmem:[%s10805_s10 + $0x138] sm:$0xff]  ;;  %v11084_v59 = vld [vmem:[%s10805_s10 + $0x140] sm:$0xff]  ;;  %v11087_v60 = vld [vmem:[%s10805_s10 + $0x150] sm:$0xff] }
  0x26   : > { %9310 = vmatprep.mubr.msk.f32.mxu0 %vm392_vm1, %v10855_v13  ;;  %v11094_v61 = vld [vmem:[%s10805_s10 + $0x158] sm:$0xff]  ;;  %v11097_v62 = vld [vmem:[%s10805_s10 + $0x168] sm:$0xff]  ;;  %v11104_v63 = vld [vmem:[%s10805_s10 + $0x170] sm:$0xff] }
  0x27   : > { %v1042_v0 = vld [vmem:[%s10805_s10 + $0x2] sm:$0xff]  ;;  %v1043_v1 = vld [vmem:[%s10805_s10 + $0xa] sm:$0xff]  ;;  %v11112_v2 = vld [vmem:[%s10805_s10 + $0x1a] sm:$0xff] }
  0x28   : > { %12919 = vst [vmem:[#allocation6_spill] sm:$0xff] %v11112_v2  ;;  %v11117_v3 = vld [vmem:[%s12789_s1 + $0x10] sm:$0xf] }
  0x29   : > { %9311 = vmatmul.mubr.msk.f32.gmra.mrb[10].mxu0 %vm392_vm1, %v10862_v14 }
  0x2a   : > { %9313 = vmatprep.mubr.msk.f32.mxu0 %vm392_vm1, %v10865_v15 }
  0x2d   : > { %9314 = vmatmul.mubr.msk.f32.gmra.mrb[12].mxu0 %vm392_vm1, %v10872_v16 }
  0x2e   : > { %9316 = vmatprep.mubr.msk.f32.mxu0 %vm392_vm1, %v10875_v17 }
  0x31   : > { %9317 = vmatmul.mubr.msk.f32.gmra.mrb[14].mxu0 %vm392_vm1, %v10882_v18 }
  0x32   : > { %9319 = vmatprep.mubr.msk.f32.mxu0 %vm392_vm1, %v10885_v19 }
  0x35   : > { %9320 = vmatmul.mubr.msk.f32.gmra.mrb[16].mxu0 %vm392_vm1, %v10892_v20 }
  0x36   : > { %9322 = vmatprep.mubr.msk.f32.mxu0 %vm392_vm1, %v10895_v21 }
  0x39   : > { %9323 = vmatmul.mubr.msk.f32.gmra.mrb[18].mxu0 %vm392_vm1, %v10902_v22 }
  0x3a   : > { %9325 = vmatprep.mubr.msk.f32.mxu0 %vm392_vm1, %v10905_v23 }
  0x3d   : > { %9326 = vmatmul.mubr.msk.f32.gmra.mrb[20].mxu0 %vm392_vm1, %v10912_v24 }
  0x3e   : > { %9328 = vmatprep.mubr.msk.f32.mxu0 %vm392_vm1, %v10915_v25 }
  0x41   : > { %9329 = vmatmul.mubr.msk.f32.gmra.mrb[22].mxu0 %vm392_vm1, %v10922_v26 }
  0x42   : > { %9331 = vmatprep.mubr.msk.f32.mxu0 %vm392_vm1, %v10925_v27 }
  0x45   : > { %9332 = vmatmul.mubr.msk.f32.gmra.mrb[24].mxu0 %vm392_vm1, %v10932_v28 }
  0x46   : > { %9334 = vmatprep.mubr.msk.f32.mxu0 %vm392_vm1, %v10935_v29 }
  0x49   : > { %9335 = vmatmul.mubr.msk.f32.gmra.mrb[26].mxu0 %vm392_vm1, %v10942_v30 }
  0x4a   : > { %9345 = vmatprep.mubr.msk.f32.mxu0 %vm392_vm1, %v325_v31  ;;  %v11128_v31 = vld [vmem:[%s10805_s10 + $0x32] sm:$0xff] }
  0x4b   : > { %12921 = vst [vmem:[#allocation8_spill] sm:$0xff] %v11128_v31 }
  0x4d   : > { %9346 = vmatmul.mubr.msk.f32.vlgmr.msra.gmra.mrb[0].mxu0 %vm392_vm1, %v326_v32  ;;  %v11137_v32 = vld [vmem:[%s10805_s10 + $0x3a] sm:$0xff] }
  0x4e   : > { %9394 = vmatpush3.msk.msra.mxu0 %vm489_vm0, %v7917_v5  ;;  %9348 = vmatprep.mubr.msk.f32.mxu0 %vm392_vm1, %v10950_v33  ;;  %v11125_v5 = vld [vmem:[%s10805_s10 + $0x22] sm:$0xff]  ;;  %12922 = vst [vmem:[#allocation9_spill] sm:$0xff] %v11137_v32 }
  0x4f   : > { %9443 = vmatprep.subr.msk.mxu0 %vm489_vm0, %v10955_v34  ;;  %12920 = vst [vmem:[#allocation7_spill] sm:$0xff] %v11125_v5 }
  0x51   : > { %9349 = vmatmul.mubr.msk.f32.gmra.mrb[2].mxu0 %vm392_vm1, %v10962_v35 }
  0x52   : > { %9351 = vmatprep.mubr.msk.f32.mxu0 %vm392_vm1, %v10965_v36 }
  0x55   : > { %9352 = vmatmul.mubr.msk.f32.gmra.mrb[4].mxu0 %vm392_vm1, %v10974_v37 }
  0x56   : > { %9354 = vmatprep.mubr.msk.f32.mxu0 %vm392_vm1, %v10977_v38 }
  0x59   : > { %9355 = vmatmul.mubr.msk.f32.gmra.mrb[6].mxu0 %vm392_vm1, %v10984_v39 }
  0x5a   : > { %9357 = vmatprep.mubr.msk.f32.mxu0 %vm392_vm1, %v10987_v40 }
  0x5d   : > { %9358 = vmatmul.mubr.msk.f32.gmra.mrb[8].mxu0 %vm392_vm1, %v10994_v41 }
  0x5e   : > { %9360 = vmatprep.mubr.msk.f32.mxu0 %vm392_vm1, %v10997_v42 }
  0x61   : > { %9361 = vmatmul.mubr.msk.f32.gmra.mrb[10].mxu0 %vm392_vm1, %v11004_v43 }
  0x62   : > { %9363 = vmatprep.mubr.msk.f32.mxu0 %vm392_vm1, %v11007_v44 }
  0x65   : > { %9364 = vmatmul.mubr.msk.f32.gmra.mrb[12].mxu0 %vm392_vm1, %v11014_v45 }
  0x66   : > { %9366 = vmatprep.mubr.msk.f32.mxu0 %vm392_vm1, %v11017_v46 }
  0x69   : > { %9367 = vmatmul.mubr.msk.f32.gmra.mrb[14].mxu0 %vm392_vm1, %v11024_v47 }
  0x6a   : > { %9369 = vmatprep.mubr.msk.f32.mxu0 %vm392_vm1, %v11027_v48 }
  0x6d   : > { %9370 = vmatmul.mubr.msk.f32.gmra.mrb[16].mxu0 %vm392_vm1, %v11034_v49 }
  0x6e   : > { %9372 = vmatprep.mubr.msk.f32.mxu0 %vm392_vm1, %v11037_v50 }
  0x71   : > { %9373 = vmatmul.mubr.msk.f32.gmra.mrb[18].mxu0 %vm392_vm1, %v11044_v51 }
  0x72   : > { %9375 = vmatprep.mubr.msk.f32.mxu0 %vm392_vm1, %v11047_v52 }
  0x75   : > { %9376 = vmatmul.mubr.msk.f32.gmra.mrb[20].mxu0 %vm392_vm1, %v11054_v53 }
  0x76   : > { %9378 = vmatprep.mubr.msk.f32.mxu0 %vm392_vm1, %v11057_v54 }
  0x79   : > { %9379 = vmatmul.mubr.msk.f32.gmra.mrb[22].mxu0 %vm392_vm1, %v11064_v55 }
  0x7a   : > { %9381 = vmatprep.mubr.msk.f32.mxu0 %vm392_vm1, %v11067_v56 }
  0x7d   : > { %9382 = vmatmul.mubr.msk.f32.gmra.mrb[24].mxu0 %vm392_vm1, %v11074_v57 }
  0x7e   : > { %9384 = vmatprep.mubr.msk.f32.mxu0 %vm392_vm1, %v11077_v58 }
  0x81   : > { %9385 = vmatmul.mubr.msk.f32.gmra.mrb[26].mxu0 %vm392_vm1, %v11084_v59 }
  0x82   : > { %9387 = vmatprep.mubr.msk.f32.mxu0 %vm392_vm1, %v11087_v60 }
  0x85   : > { %9388 = vmatmul.mubr.msk.f32.gmra.mrb[28].mxu0 %vm392_vm1, %v11094_v61 }
  0x86   : > { %9390 = vmatprep.mubr.msk.f32.mxu0 %vm392_vm1, %v11097_v62 }
  0x89   : > { %9391 = vmatmul.mubr.msk.f32.gmra.mrb[30].mxu0 %vm392_vm1, %v11104_v63 }
  0x8a   : > { %9395 = vmatprep.mubr.msk.f32.mxu0 %vm392_vm1, %v1042_v0  ;;  %v11147_v0 = vld [vmem:[%s10805_s10 + $0x52] sm:$0xff] }
  0x8b   : > { %12924 = vst [vmem:[#allocation11_spill] sm:$0xff] %v11147_v0 }
  0x8d   : > { %9396 = vmatmul.mubr.msk.f32.vlgmr.msra.gmra.mrb[0].mxu0 %vm392_vm1, %v1043_v1  ;;  %v11150_v1 = vld [vmem:[%s10805_s10 + $0x62] sm:$0xff] }
  0x8e   : > { %9444 = vmatpush3.msk.msra.mxu0 %vm489_vm0, %v10955_v34  ;;  %9398 = vmatprep.mubr.msk.f32.mxu0 %vm392_vm1, %v11112_v2  ;;  %v11140_v34 = vld [vmem:[%s10805_s10 + $0x4a] sm:$0xff]  ;;  %12925 = vst [vmem:[#allocation12_spill] sm:$0xff] %v11150_v1 }
  0x8f   : > { %9493 = vmatprep.subr.msk.mxu0 %vm489_vm0, %v11117_v3  ;;  %12923 = vst [vmem:[#allocation10_spill] sm:$0xff] %v11140_v34  ;;  %v11273_v2 = vld [vmem:[%s10805_s10 + $0x171] sm:$0xff] }
  0x90   : > { %12949 = vst [vmem:[#allocation36_spill] sm:$0xff] %v11273_v2 }
  0x91   : > { %9399 = vmatmul.mubr.msk.f32.gmra.mrb[2].mxu0 %vm392_vm1, %v11125_v5  ;;  %v11160_v5 = vld [vmem:[%s10805_s10 + $0x7a] sm:$0xff] }
  0x92   : > { %9401 = vmatprep.mubr.msk.f32.mxu0 %vm392_vm1, %v11128_v31  ;;  %v11157_v31 = vld [vmem:[%s10805_s10 + $0x6a] sm:$0xff]  ;;  %12927 = vst [vmem:[#allocation14_spill] sm:$0xff] %v11160_v5 }
  0x93   : > { %12926 = vst [vmem:[#allocation13_spill] sm:$0xff] %v11157_v31 }
  0x95   : > { %9402 = vmatmul.mubr.msk.f32.gmra.mrb[4].mxu0 %vm392_vm1, %v11137_v32  ;;  %v11170_v32 = vld [vmem:[%s10805_s10 + $0x92] sm:$0xff] }
  0x96   : > { %9404 = vmatprep.mubr.msk.f32.mxu0 %vm392_vm1, %v11140_v34  ;;  %v11167_v34 = vld [vmem:[%s10805_s10 + $0x82] sm:$0xff]  ;;  %12929 = vst [vmem:[#allocation16_spill] sm:$0xff] %v11170_v32 }
  0x97   : > { %12928 = vst [vmem:[#allocation15_spill] sm:$0xff] %v11167_v34 }
  0x99   : > { %9405 = vmatmul.mubr.msk.f32.gmra.mrb[6].mxu0 %vm392_vm1, %v11147_v0  ;;  %v11180_v0 = vld [vmem:[%s10805_s10 + $0xaa] sm:$0xff] }
  0x9a   : > { %9407 = vmatprep.mubr.msk.f32.mxu0 %vm392_vm1, %v11150_v1  ;;  %v11177_v1 = vld [vmem:[%s10805_s10 + $0x9a] sm:$0xff]  ;;  %12931 = vst [vmem:[#allocation18_spill] sm:$0xff] %v11180_v0 }
  0x9b   : > { %12930 = vst [vmem:[#allocation17_spill] sm:$0xff] %v11177_v1 }
  0x9d   : > { %9408 = vmatmul.mubr.msk.f32.gmra.mrb[8].mxu0 %vm392_vm1, %v11157_v31  ;;  %v11190_v31 = vld [vmem:[%s10805_s10 + $0xc2] sm:$0xff] }
  0x9e   : > { %9410 = vmatprep.mubr.msk.f32.mxu0 %vm392_vm1, %v11160_v5  ;;  %v11187_v5 = vld [vmem:[%s10805_s10 + $0xb2] sm:$0xff]  ;;  %12933 = vst [vmem:[#allocation20_spill] sm:$0xff] %v11190_v31 }
  0x9f   : > { %12932 = vst [vmem:[#allocation19_spill] sm:$0xff] %v11187_v5 }
  0xa1   : > { %9411 = vmatmul.mubr.msk.f32.gmra.mrb[10].mxu0 %vm392_vm1, %v11167_v34  ;;  %v11200_v34 = vld [vmem:[%s10805_s10 + $0xda] sm:$0xff] }
  0xa2   : > { %9413 = vmatprep.mubr.msk.f32.mxu0 %vm392_vm1, %v11170_v32  ;;  %v11197_v32 = vld [vmem:[%s10805_s10 + $0xca] sm:$0xff]  ;;  %12935 = vst [vmem:[#allocation22_spill] sm:$0xff] %v11200_v34 }
  0xa3   : > { %12934 = vst [vmem:[#allocation21_spill] sm:$0xff] %v11197_v32 }
  0xa5   : > { %9414 = vmatmul.mubr.msk.f32.gmra.mrb[12].mxu0 %vm392_vm1, %v11177_v1  ;;  %v11210_v1 = vld [vmem:[%s10805_s10 + $0xf2] sm:$0xff] }
  0xa6   : > { %9416 = vmatprep.mubr.msk.f32.mxu0 %vm392_vm1, %v11180_v0  ;;  %v11207_v0 = vld [vmem:[%s10805_s10 + $0xe2] sm:$0xff]  ;;  %12937 = vst [vmem:[#allocation24_spill] sm:$0xff] %v11210_v1 }
  0xa7   : > { %12936 = vst [vmem:[#allocation23_spill] sm:$0xff] %v11207_v0 }
  0xa9   : > { %9417 = vmatmul.mubr.msk.f32.gmra.mrb[14].mxu0 %vm392_vm1, %v11187_v5  ;;  %v11230_v5 = vld [vmem:[%s10805_s10 + $0x122] sm:$0xff] }
  0xaa   : > { %9419 = vmatprep.mubr.msk.f32.mxu0 %vm392_vm1, %v11190_v31  ;;  %v11217_v31 = vld [vmem:[%s10805_s10 + $0xfa] sm:$0xff]  ;;  %12941 = vst [vmem:[#allocation28_spill] sm:$0xff] %v11230_v5 }
  0xab   : > { %12938 = vst [vmem:[#allocation25_spill] sm:$0xff] %v11217_v31 }
  0xad   : > { %9420 = vmatmul.mubr.msk.f32.gmra.mrb[16].mxu0 %vm392_vm1, %v11197_v32  ;;  %v11220_v32 = vld [vmem:[%s10805_s10 + $0x10a] sm:$0xff] }
  0xae   : > { %9422 = vmatprep.mubr.msk.f32.mxu0 %vm392_vm1, %v11200_v34  ;;  %12939 = vst [vmem:[#allocation26_spill] sm:$0xff] %v11220_v32  ;;  %v11227_v34 = vld [vmem:[%s10805_s10 + $0x112] sm:$0xff] }
  0xaf   : > { %12940 = vst [vmem:[#allocation27_spill] sm:$0xff] %v11227_v34 }
  0xb1   : > { %9423 = vmatmul.mubr.msk.f32.gmra.mrb[18].mxu0 %vm392_vm1, %v11207_v0  ;;  %v11250_v0 = vld [vmem:[%s10805_s10 + $0x142] sm:$0xff] }
  0xb2   : > { %9425 = vmatprep.mubr.msk.f32.mxu0 %vm392_vm1, %v11210_v1  ;;  %v11237_v1 = vld [vmem:[%s10805_s10 + $0x12a] sm:$0xff]  ;;  %12945 = vst [vmem:[#allocation32_spill] sm:$0xff] %v11250_v0 }
  0xb3   : > { %12942 = vst [vmem:[#allocation29_spill] sm:$0xff] %v11237_v1 }
  0xb5   : > { %9426 = vmatmul.mubr.msk.f32.gmra.mrb[20].mxu0 %vm392_vm1, %v11217_v31  ;;  %v11240_v31 = vld [vmem:[%s10805_s10 + $0x13a] sm:$0xff] }
  0xb6   : > { %9428 = vmatprep.mubr.msk.f32.mxu0 %vm392_vm1, %v11220_v32  ;;  %12943 = vst [vmem:[#allocation30_spill] sm:$0xff] %v11240_v31  ;;  %v11245_v32 = vld [vmem:[%s10805_s10 + $0x151] sm:$0xff] }
  0xb7   : > { %12944 = vst [vmem:[#allocation31_spill] sm:$0xff] %v11245_v32  ;;  %9337 = vmatprep.mubr.msk.f32.mxu1 %vm392_vm1, %v11245_v32  ;;  %v11278_v32 = vld [vmem:[%s10805_s10 + $0x16a] sm:$0xff] }
  0xb8   : > { %12950 = vst [vmem:[#allocation37_spill] sm:$0xff] %v11278_v32 }
  0xb9   : > { %9429 = vmatmul.mubr.msk.f32.gmra.mrb[22].mxu0 %vm392_vm1, %v11227_v34  ;;  %v11253_v34 = vld [vmem:[%s10805_s10 + $0x159] sm:$0xff] }
  0xba   : > { %9431 = vmatprep.mubr.msk.f32.mxu0 %vm392_vm1, %v11230_v5  ;;  %12946 = vst [vmem:[#allocation33_spill] sm:$0xff] %v11253_v34  ;;  %v11258_v5 = vld [vmem:[%s10805_s10 + $0x152] sm:$0xff]  ;;  %9338 = vmatmul.mubr.msk.f32.vlgmr.msra.gmra.mrb[0].mxu1 %vm392_vm1, %v11253_v34 }
  0xbb   : > { %12947 = vst [vmem:[#allocation34_spill] sm:$0xff] %v11258_v5 }
  0xbd   : > { %9432 = vmatmul.mubr.msk.f32.gmra.mrb[24].mxu0 %vm392_vm1, %v11237_v1  ;;  %v11265_v1 = vld [vmem:[%s10805_s10 + $0x169] sm:$0xff] }
  0xbe   : > { %9434 = vmatprep.mubr.msk.f32.mxu0 %vm392_vm1, %v11240_v31  ;;  %12948 = vst [vmem:[#allocation35_spill] sm:$0xff] %v11265_v1  ;;  %v11270_v31 = vld [vmem:[%s10805_s10 + $0x15a] sm:$0xff]  ;;  %9340 = vmatprep.mubr.msk.f32.mxu1 %vm392_vm1, %v11265_v1 }
  0xbf   : > { %9341 = vmatmul.mubr.msk.f32.gmra.mrb[2].mxu1 %vm392_vm1, %v11273_v2 }
  0xc1   : > { %9435 = vmatmul.mubr.msk.f32.gmra.mrb[26].mxu0 %vm392_vm1, %v11250_v0  ;;  %v11287_v0 = vld [vmem:[%s10805_s10 + $0x172] sm:$0xff] }
  0xc2   : > { %9437 = vmatprep.mubr.msk.f32.mxu0 %vm392_vm1, %v11258_v5  ;;  %v8115_v5 = vld [vmem:[%s12789_s1 + $0x14] sm:$0xf] }
  0xc5   : > { %9438 = vmatmul.mubr.msk.f32.gmra.mrb[28].mxu0 %vm392_vm1, %v11270_v31 }
  0xc6   : > { %9440 = vmatprep.mubr.msk.f32.mxu0 %vm392_vm1, %v11278_v32 }
  0xc9   : > { %9441 = vmatmul.mubr.msk.f32.gmra.mrb[30].mxu0 %vm392_vm1, %v11287_v0 }
  0xca   : > { %9445 = vmatprep.mubr.msk.f32.mxu0 %vm392_vm1, %v10950_v33  ;;  %v11356_v33 = vld [vmem:[%s10805_s10 + $0x180] sm:$0xff] }
  0xcd   : > { %9446 = vmatmul.mubr.msk.f32.vlgmr.msra.gmra.mrb[0].mxu0 %vm392_vm1, %v10962_v35  ;;  %v11363_v35 = vld [vmem:[%s10805_s10 + $0x188] sm:$0xff] }
  0xce   : > { %9494 = vmatpush3.msk.msra.mxu0 %vm489_vm0, %v11117_v3  ;;  %9448 = vmatprep.mubr.msk.f32.mxu0 %vm392_vm1, %v10965_v36  ;;  %v8181_v3 = vld [vmem:[%s12789_s1 + $0x18] sm:$0xf] }
  0xcf   : > { %9543 = vmatprep.subr.msk.mxu0 %vm489_vm0, %v8115_v5 }
  0xd1   : > { %9449 = vmatmul.mubr.msk.f32.gmra.mrb[2].mxu0 %vm392_vm1, %v10974_v37 }
  0xd2   : > { %9451 = vmatprep.mubr.msk.f32.mxu0 %vm392_vm1, %v10977_v38 }
  0xd5   : > { %9452 = vmatmul.mubr.msk.f32.gmra.mrb[4].mxu0 %vm392_vm1, %v10984_v39 }
  0xd6   : > { %9454 = vmatprep.mubr.msk.f32.mxu0 %vm392_vm1, %v10987_v40 }
  0xd9   : > { %9455 = vmatmul.mubr.msk.f32.gmra.mrb[6].mxu0 %vm392_vm1, %v10994_v41 }
  0xda   : > { %9457 = vmatprep.mubr.msk.f32.mxu0 %vm392_vm1, %v10997_v42 }
  0xdd   : > { %9458 = vmatmul.mubr.msk.f32.gmra.mrb[8].mxu0 %vm392_vm1, %v11004_v43 }
  0xde   : > { %9460 = vmatprep.mubr.msk.f32.mxu0 %vm392_vm1, %v11007_v44 }
  0xe1   : > { %9461 = vmatmul.mubr.msk.f32.gmra.mrb[10].mxu0 %vm392_vm1, %v11014_v45 }
  0xe2   : > { %9463 = vmatprep.mubr.msk.f32.mxu0 %vm392_vm1, %v11017_v46 }
  0xe5   : > { %9464 = vmatmul.mubr.msk.f32.gmra.mrb[12].mxu0 %vm392_vm1, %v11024_v47 }
  0xe6   : > { %9466 = vmatprep.mubr.msk.f32.mxu0 %vm392_vm1, %v11027_v48 }
  0xe9   : > { %9467 = vmatmul.mubr.msk.f32.gmra.mrb[14].mxu0 %vm392_vm1, %v11034_v49 }
  0xea   : > { %9469 = vmatprep.mubr.msk.f32.mxu0 %vm392_vm1, %v11037_v50 }
  0xed   : > { %9470 = vmatmul.mubr.msk.f32.gmra.mrb[16].mxu0 %vm392_vm1, %v11044_v51 }
  0xee   : > { %9472 = vmatprep.mubr.msk.f32.mxu0 %vm392_vm1, %v11047_v52 }
  0xf1   : > { %9473 = vmatmul.mubr.msk.f32.gmra.mrb[18].mxu0 %vm392_vm1, %v11054_v53 }
  0xf2   : > { %9475 = vmatprep.mubr.msk.f32.mxu0 %vm392_vm1, %v11057_v54 }
  0xf5   : > { %9476 = vmatmul.mubr.msk.f32.gmra.mrb[20].mxu0 %vm392_vm1, %v11064_v55 }
  0xf6   : > { %9478 = vmatprep.mubr.msk.f32.mxu0 %vm392_vm1, %v11067_v56 }
  0xf9   : > { %9479 = vmatmul.mubr.msk.f32.gmra.mrb[22].mxu0 %vm392_vm1, %v11074_v57 }
  0xfa   : > { %9481 = vmatprep.mubr.msk.f32.mxu0 %vm392_vm1, %v11077_v58 }
  0xfd   : > { %9482 = vmatmul.mubr.msk.f32.gmra.mrb[24].mxu0 %vm392_vm1, %v11084_v59 }
  0xfe   : > { %9484 = vmatprep.mubr.msk.f32.mxu0 %vm392_vm1, %v11087_v60 }
 0x101   : > { %9485 = vmatmul.mubr.msk.f32.gmra.mrb[26].mxu0 %vm392_vm1, %v11094_v61 }
 0x102   : > { %9487 = vmatprep.mubr.msk.f32.mxu0 %vm392_vm1, %v11097_v62 }
 0x105   : > { %9488 = vmatmul.mubr.msk.f32.gmra.mrb[28].mxu0 %vm392_vm1, %v11104_v63 }
 0x106   : > { %9490 = vmatprep.mubr.msk.f32.mxu0 %vm392_vm1, %v11356_v33 }
 0x109   : > { %9491 = vmatmul.mubr.msk.f32.gmra.mrb[30].mxu0 %vm392_vm1, %v11363_v35 }
 0x10a   : > { %9495 = vmatprep.mubr.msk.f32.mxu0 %vm392_vm1, %v10810_v4  ;;  %v12951_v4 = vld [vmem:[#allocation31_spill] sm:$0xff] }
 0x10d   : > { %9496 = vmatmul.mubr.msk.f32.vlgmr.msra.gmra.mrb[0].mxu0 %vm392_vm1, %v10821_v6  ;;  %v11431_v6 = vld [vmem:[%s10805_s10 + $0x181] sm:$0xff] }
 0x10e   : > { %9544 = vmatpush3.msk.msra.mxu0 %vm489_vm0, %v8115_v5  ;;  %9498 = vmatprep.mubr.msk.f32.mxu0 %vm392_vm1, %v10824_v7  ;;  %12952 = vst [vmem:[#allocation38_spill] sm:$0xff] %v11431_v6  ;;  %v11438_v5 = vld [vmem:[%s10805_s10 + $0x189] sm:$0xff] }
 0x10f   : > { %9593 = vmatprep.subr.msk.mxu0 %vm489_vm0, %v8181_v3  ;;  %12953 = vst [vmem:[#allocation39_spill] sm:$0xff] %v11438_v5 }
 0x111   : > { %9499 = vmatmul.mubr.msk.f32.gmra.mrb[2].mxu0 %vm392_vm1, %v10832_v8 }
 0x112   : > { %9501 = vmatprep.mubr.msk.f32.mxu0 %vm392_vm1, %v10835_v9 }
 0x115   : > { %9502 = vmatmul.mubr.msk.f32.gmra.mrb[4].mxu0 %vm392_vm1, %v10842_v10 }
 0x116   : > { %9504 = vmatprep.mubr.msk.f32.mxu0 %vm392_vm1, %v10845_v11 }
 0x119   : > { %9505 = vmatmul.mubr.msk.f32.gmra.mrb[6].mxu0 %vm392_vm1, %v10852_v12 }
 0x11a   : > { %9507 = vmatprep.mubr.msk.f32.mxu0 %vm392_vm1, %v10855_v13 }
 0x11d   : > { %9508 = vmatmul.mubr.msk.f32.gmra.mrb[8].mxu0 %vm392_vm1, %v10862_v14 }
 0x11e   : > { %9510 = vmatprep.mubr.msk.f32.mxu0 %vm392_vm1, %v10865_v15 }
 0x121   : > { %9511 = vmatmul.mubr.msk.f32.gmra.mrb[10].mxu0 %vm392_vm1, %v10872_v16 }
 0x122   : > { %9513 = vmatprep.mubr.msk.f32.mxu0 %vm392_vm1, %v10875_v17 }
 0x125   : > { %9514 = vmatmul.mubr.msk.f32.gmra.mrb[12].mxu0 %vm392_vm1, %v10882_v18 }
 0x126   : > { %9516 = vmatprep.mubr.msk.f32.mxu0 %vm392_vm1, %v10885_v19 }
 0x129   : > { %9517 = vmatmul.mubr.msk.f32.gmra.mrb[14].mxu0 %vm392_vm1, %v10892_v20 }
 0x12a   : > { %9519 = vmatprep.mubr.msk.f32.mxu0 %vm392_vm1, %v10895_v21 }
 0x12d   : > { %9520 = vmatmul.mubr.msk.f32.gmra.mrb[16].mxu0 %vm392_vm1, %v10902_v22 }
 0x12e   : > { %9522 = vmatprep.mubr.msk.f32.mxu0 %vm392_vm1, %v10905_v23 }
 0x131   : > { %9523 = vmatmul.mubr.msk.f32.gmra.mrb[18].mxu0 %vm392_vm1, %v10912_v24 }
 0x132   : > { %9525 = vmatprep.mubr.msk.f32.mxu0 %vm392_vm1, %v10915_v25 }
 0x135   : > { %9526 = vmatmul.mubr.msk.f32.gmra.mrb[20].mxu0 %vm392_vm1, %v10922_v26 }
 0x136   : > { %9528 = vmatprep.mubr.msk.f32.mxu0 %vm392_vm1, %v10925_v27 }
 0x139   : > { %9529 = vmatmul.mubr.msk.f32.gmra.mrb[22].mxu0 %vm392_vm1, %v10932_v28 }
 0x13a   : > { %9531 = vmatprep.mubr.msk.f32.mxu0 %vm392_vm1, %v10935_v29  ;;  %v12964_v29 = vld [vmem:[#allocation16_spill] sm:$0xff] }
 0x13d   : > { %9532 = vmatmul.mubr.msk.f32.gmra.mrb[24].mxu0 %vm392_vm1, %v10942_v30  ;;  %v12960_v30 = vld [vmem:[#allocation12_spill] sm:$0xff] }
 0x13e   : > { %9534 = vmatprep.mubr.msk.f32.mxu0 %vm392_vm1, %v12951_v4  ;;  %v12954_v4 = vld [vmem:[#allocation6_spill] sm:$0xff] }
 0x141   : > { %9535 = vmatmul.mubr.msk.f32.gmra.mrb[26].mxu0 %vm392_vm1, %v11253_v34  ;;  %v12955_v34 = vld [vmem:[#allocation7_spill] sm:$0xff] }
 0x142   : > { %9537 = vmatprep.mubr.msk.f32.mxu0 %vm392_vm1, %v11265_v1  ;;  %v8247_v1 = vld [vmem:[%s12789_s1 + $0x1c] sm:$0xf] }
 0x145   : > { %9538 = vmatmul.mubr.msk.f32.gmra.mrb[28].mxu0 %vm392_vm1, %v11273_v2  ;;  %v12956_v2 = vld [vmem:[#allocation8_spill] sm:$0xff] }
 0x146   : > { %9540 = vmatprep.mubr.msk.f32.mxu0 %vm392_vm1, %v11431_v6  ;;  %v12957_v6 = vld [vmem:[#allocation9_spill] sm:$0xff] }
 0x149   : > { %9541 = vmatmul.mubr.msk.f32.gmra.mrb[30].mxu0 %vm392_vm1, %v11438_v5  ;;  %v12958_v5 = vld [vmem:[#allocation10_spill] sm:$0xff] }
 0x14a   : > { %9545 = vmatprep.mubr.msk.f32.mxu0 %vm392_vm1, %v12954_v4  ;;  %v12959_v4 = vld [vmem:[#allocation11_spill] sm:$0xff] }
 0x14d   : > { %9546 = vmatmul.mubr.msk.f32.vlgmr.msra.gmra.mrb[0].mxu0 %vm392_vm1, %v12955_v34  ;;  %v12961_v34 = vld [vmem:[#allocation13_spill] sm:$0xff] }
 0x14e   : > { %9594 = vmatpush3.msk.msra.mxu0 %vm489_vm0, %v8181_v3  ;;  %9548 = vmatprep.mubr.msk.f32.mxu0 %vm392_vm1, %v12956_v2  ;;  %v12962_v3 = vld [vmem:[#allocation14_spill] sm:$0xff]  ;;  %v12963_v2 = vld [vmem:[#allocation15_spill] sm:$0xff] }
 0x14f   : > { %9643 = vmatprep.subr.msk.mxu0 %vm489_vm0, %v8247_v1 }
 0x151   : > { %9549 = vmatmul.mubr.msk.f32.gmra.mrb[2].mxu0 %vm392_vm1, %v12957_v6  ;;  %v12965_v6 = vld [vmem:[#allocation17_spill] sm:$0xff] }
 0x152   : > { %9551 = vmatprep.mubr.msk.f32.mxu0 %vm392_vm1, %v12958_v5  ;;  %v12966_v5 = vld [vmem:[#allocation18_spill] sm:$0xff] }
 0x155   : > { %9552 = vmatmul.mubr.msk.f32.gmra.mrb[4].mxu0 %vm392_vm1, %v12959_v4  ;;  %v12967_v4 = vld [vmem:[#allocation19_spill] sm:$0xff] }
 0x156   : > { %9554 = vmatprep.mubr.msk.f32.mxu0 %vm392_vm1, %v12960_v30  ;;  %v12968_v30 = vld [vmem:[#allocation20_spill] sm:$0xff] }
 0x159   : > { %9555 = vmatmul.mubr.msk.f32.gmra.mrb[6].mxu0 %vm392_vm1, %v12961_v34  ;;  %v12978_v34 = vld [vmem:[#allocation30_spill] sm:$0xff] }
 0x15a   : > { %9557 = vmatprep.mubr.msk.f32.mxu0 %vm392_vm1, %v12962_v3  ;;  %v12969_v3 = vld [vmem:[#allocation21_spill] sm:$0xff] }
 0x15d   : > { %9558 = vmatmul.mubr.msk.f32.gmra.mrb[8].mxu0 %vm392_vm1, %v12963_v2  ;;  %v12970_v2 = vld [vmem:[#allocation22_spill] sm:$0xff] }
 0x15e   : > { %9560 = vmatprep.mubr.msk.f32.mxu0 %vm392_vm1, %v12964_v29  ;;  %v12971_v29 = vld [vmem:[#allocation23_spill] sm:$0xff] }
 0x161   : > { %9561 = vmatmul.mubr.msk.f32.gmra.mrb[10].mxu0 %vm392_vm1, %v12965_v6  ;;  %v12972_v6 = vld [vmem:[#allocation24_spill] sm:$0xff] }
 0x162   : > { %9563 = vmatprep.mubr.msk.f32.mxu0 %vm392_vm1, %v12966_v5  ;;  %v12973_v5 = vld [vmem:[#allocation25_spill] sm:$0xff] }
 0x165   : > { %9564 = vmatmul.mubr.msk.f32.gmra.mrb[12].mxu0 %vm392_vm1, %v12967_v4  ;;  %v12974_v4 = vld [vmem:[#allocation26_spill] sm:$0xff] }
 0x166   : > { %9566 = vmatprep.mubr.msk.f32.mxu0 %vm392_vm1, %v12968_v30  ;;  %v12975_v30 = vld [vmem:[#allocation27_spill] sm:$0xff] }
 0x169   : > { %9567 = vmatmul.mubr.msk.f32.gmra.mrb[14].mxu0 %vm392_vm1, %v12969_v3  ;;  %v12976_v3 = vld [vmem:[#allocation28_spill] sm:$0xff] }
 0x16a   : > { %9569 = vmatprep.mubr.msk.f32.mxu0 %vm392_vm1, %v12970_v2  ;;  %v12977_v2 = vld [vmem:[#allocation29_spill] sm:$0xff] }
 0x16d   : > { %9570 = vmatmul.mubr.msk.f32.gmra.mrb[16].mxu0 %vm392_vm1, %v12971_v29  ;;  %v12979_v29 = vld [vmem:[#allocation32_spill] sm:$0xff] }
 0x16e   : > { %9572 = vmatprep.mubr.msk.f32.mxu0 %vm392_vm1, %v12972_v6  ;;  %v12980_v6 = vld [vmem:[#allocation34_spill] sm:$0xff] }
 0x171   : > { %9573 = vmatmul.mubr.msk.f32.gmra.mrb[18].mxu0 %vm392_vm1, %v12973_v5 }
 0x172   : > { %9575 = vmatprep.mubr.msk.f32.mxu0 %vm392_vm1, %v12974_v4 }
 0x175   : > { %9576 = vmatmul.mubr.msk.f32.gmra.mrb[20].mxu0 %vm392_vm1, %v12975_v30  ;;  %v11506_v30 = vld [vmem:[%s10805_s10 + $0x182] sm:$0xff] }
 0x176   : > { %9578 = vmatprep.mubr.msk.f32.mxu0 %vm392_vm1, %v12976_v3 }
 0x179   : > { %9579 = vmatmul.mubr.msk.f32.gmra.mrb[22].mxu0 %vm392_vm1, %v12977_v2 }
 0x17a   : > { %9581 = vmatprep.mubr.msk.f32.mxu0 %vm392_vm1, %v12978_v34  ;;  %v11513_v34 = vld [vmem:[%s10805_s10 + $0x18a] sm:$0xff] }
 0x17d   : > { %9582 = vmatmul.mubr.msk.f32.gmra.mrb[24].mxu0 %vm392_vm1, %v12979_v29 }
 0x17e   : > { %9584 = vmatprep.mubr.msk.f32.mxu0 %vm392_vm1, %v12980_v6 }
 0x181   : > { %9585 = vmatmul.mubr.msk.f32.gmra.mrb[26].mxu0 %vm392_vm1, %v11270_v31 }
 0x182   : > { %9587 = vmatprep.mubr.msk.f32.mxu0 %vm392_vm1, %v11278_v32  ;;  %v8313_v32 = vld [vmem:[%s12789_s1 + $0x20] sm:$0xf] }
 0x185   : > { %9588 = vmatmul.mubr.msk.f32.gmra.mrb[28].mxu0 %vm392_vm1, %v11287_v0 }
 0x186   : > { %9590 = vmatprep.mubr.msk.f32.mxu0 %vm392_vm1, %v11506_v30 }
 0x189   : > { %9591 = vmatmul.mubr.msk.f32.gmra.mrb[30].mxu0 %vm392_vm1, %v11513_v34 }
 0x18a   : > { %9595 = vmatprep.mubr.msk.f32.mxu0 %vm392_vm1, %v10965_v36  ;;  %v8179_v36 = vld [vmem:[%s10805_s10 + $0x198] sm:$0xff] }
 0x18d   : > { %9596 = vmatmul.mubr.msk.f32.vlgmr.msra.gmra.mrb[0].mxu0 %vm392_vm1, %v10974_v37  ;;  %v8180_v37 = vld [vmem:[%s10805_s10 + $0x1a0] sm:$0xff] }
 0x18e   : > { %9644 = vmatpush3.msk.msra.mxu0 %vm489_vm0, %v8247_v1  ;;  %9598 = vmatprep.mubr.msk.f32.mxu0 %vm392_vm1, %v10977_v38  ;;  %v13001_v38 = vld [vmem:[#allocation20_spill] sm:$0xff] }
 0x18f   : > { %9693 = vmatprep.subr.msk.mxu0 %vm489_vm0, %v8313_v32 }
 0x191   : > { %9599 = vmatmul.mubr.msk.f32.gmra.mrb[2].mxu0 %vm392_vm1, %v10984_v39  ;;  %v13002_v39 = vld [vmem:[#allocation21_spill] sm:$0xff] }
 0x192   : > { %9601 = vmatprep.mubr.msk.f32.mxu0 %vm392_vm1, %v10987_v40  ;;  %v13003_v40 = vld [vmem:[#allocation22_spill] sm:$0xff] }
 0x195   : > { %9602 = vmatmul.mubr.msk.f32.gmra.mrb[4].mxu0 %vm392_vm1, %v10994_v41  ;;  %v13004_v41 = vld [vmem:[#allocation23_spill] sm:$0xff] }
 0x196   : > { %9604 = vmatprep.mubr.msk.f32.mxu0 %vm392_vm1, %v10997_v42  ;;  %v13005_v42 = vld [vmem:[#allocation24_spill] sm:$0xff] }
 0x199   : > { %9605 = vmatmul.mubr.msk.f32.gmra.mrb[6].mxu0 %vm392_vm1, %v11004_v43  ;;  %v13006_v43 = vld [vmem:[#allocation27_spill] sm:$0xff] }
 0x19a   : > { %9607 = vmatprep.mubr.msk.f32.mxu0 %vm392_vm1, %v11007_v44  ;;  %v13007_v44 = vld [vmem:[#allocation30_spill] sm:$0xff] }
 0x19d   : > { %9608 = vmatmul.mubr.msk.f32.gmra.mrb[8].mxu0 %vm392_vm1, %v11014_v45  ;;  %v13008_v45 = vld [vmem:[#allocation37_spill] sm:$0xff] }
 0x19e   : > { %9610 = vmatprep.mubr.msk.f32.mxu0 %vm392_vm1, %v11017_v46  ;;  %v8311_v46 = vld [vmem:[%s10805_s10 + $0x19a] sm:$0xff] }
 0x1a1   : > { %9611 = vmatmul.mubr.msk.f32.gmra.mrb[10].mxu0 %vm392_vm1, %v11024_v47  ;;  %v10739_v47 = vmov 0.0  }
 0x1a2   : > { %9613 = vmatprep.mubr.msk.f32.mxu0 %vm392_vm1, %v11027_v48  ;;  %280 = vst.msk [vmem:[#allocation2] sm:$0xff] %vm279_vm2, %v10739_v47  ;;  %281 = vst.msk [vmem:[#allocation2 + $0x8] sm:$0xff] %vm279_vm2, %v10739_v47 }
 0x1a3   : > { %285 = vst.msk [vmem:[#allocation2 + $0x198] sm:$0xff] %vm279_vm2, %v10739_v47  ;;  %286 = vst.msk [vmem:[#allocation2 + $0x1a0] sm:$0xff] %vm279_vm2, %v10739_v47 }
 0x1a4   : > { %283 = vst.msk [vmem:[#allocation2 + $0x10] sm:$0x3] %vm282_vm3, %v10739_v47  ;;  %287 = vst.msk [vmem:[#allocation2 + $0x1a8] sm:$0x3] %vm282_vm3, %v10739_v47 }
 0x1a5   : > { %9614 = vmatmul.mubr.msk.f32.gmra.mrb[12].mxu0 %vm392_vm1, %v11034_v49  ;;  %289 = vst.msk [vmem:[#allocation2] sm:$0x1] %vm288_vm4, %v10739_v47  ;;  %290 = vst.msk [vmem:[#allocation2 + $0x18] sm:$0x1] %vm288_vm4, %v10739_v47 }
 0x1a6   : > { %9616 = vmatprep.mubr.msk.f32.mxu0 %vm392_vm1, %v11037_v50  ;;  %291 = vst.msk [vmem:[#allocation2 + $0x30] sm:$0x1] %vm288_vm4, %v10739_v47  ;;  %292 = vst.msk [vmem:[#allocation2 + $0x48] sm:$0x1] %vm288_vm4, %v10739_v47  ;;  %v3910_v50 = vld [vmem:[%s12791_s3] sm:$0xff] }
 0x1a7   : > { %293 = vst.msk [vmem:[#allocation2 + $0x60] sm:$0x1] %vm288_vm4, %v10739_v47  ;;  %294 = vst.msk [vmem:[#allocation2 + $0x78] sm:$0x1] %vm288_vm4, %v10739_v47 }
 0x1a8   : > { %295 = vst.msk [vmem:[#allocation2 + $0x90] sm:$0x1] %vm288_vm4, %v10739_v47  ;;  %296 = vst.msk [vmem:[#allocation2 + $0xa8] sm:$0x1] %vm288_vm4, %v10739_v47 }
 0x1a9   : > { %9617 = vmatmul.mubr.msk.f32.gmra.mrb[14].mxu0 %vm392_vm1, %v11044_v51  ;;  %297 = vst.msk [vmem:[#allocation2 + $0xc0] sm:$0x1] %vm288_vm4, %v10739_v47  ;;  %298 = vst.msk [vmem:[#allocation2 + $0xd8] sm:$0x1] %vm288_vm4, %v10739_v47  ;;  %v3911_v48 = vld [vmem:[#allocation2 + $0x1] sm:$0xff]  ;;  %v11763_v51 = vpop.f32.mrb[0].mxu1 }
 0x1aa   : > { %9619 = vmatprep.mubr.msk.f32.mxu0 %vm392_vm1, %v11047_v52  ;;  %299 = vst.msk [vmem:[#allocation2 + $0xf0] sm:$0x1] %vm288_vm4, %v10739_v47  ;;  %300 = vst.msk [vmem:[#allocation2 + $0x108] sm:$0x1] %vm288_vm4, %v10739_v47  ;;  %9745 = vmatprep.mubr.msk.f32.mxu1 %vm279_vm2, %v3911_v48  ;;  %v11765_v52 = vpop.f32.mrb[1].mxu1 }
 0x1ab   : > { %301 = vst.msk [vmem:[#allocation2 + $0x120] sm:$0x1] %vm288_vm4, %v10739_v47  ;;  %302 = vst.msk [vmem:[#allocation2 + $0x138] sm:$0x1] %vm288_vm4, %v10739_v47  ;;  %v3912_v49 = vld [vmem:[#allocation2 + $0x9] sm:$0xff] }
 0x1ac   : > { %303 = vst.msk [vmem:[#allocation2 + $0x150] sm:$0x1] %vm288_vm4, %v10739_v47  ;;  %304 = vst.msk [vmem:[#allocation2 + $0x168] sm:$0x1] %vm288_vm4, %v10739_v47 }
 0x1ad   : > { %9620 = vmatmul.mubr.msk.f32.gmra.mrb[16].mxu0 %vm392_vm1, %v11054_v53  ;;  %305 = vst.msk [vmem:[#allocation2 + $0x180] sm:$0x1] %vm288_vm4, %v10739_v47  ;;  %306 = vst.msk [vmem:[#allocation2 + $0x198] sm:$0x1] %vm288_vm4, %v10739_v47  ;;  %v11767_v53 = vpop.f32.mrb[2].mxu1 }
 0x1ae   : > { %9622 = vmatprep.mubr.msk.f32.mxu0 %vm392_vm1, %v11057_v54  ;;  %307 = vst.msk [vmem:[#allocation2 + $0x11] sm:$0x1] %vm288_vm4, %v10739_v47  ;;  %308 = vst.msk [vmem:[#allocation2 + $0x29] sm:$0x1] %vm288_vm4, %v10739_v47  ;;  %v11769_v54 = vpop.f32.mrb[3].mxu1 }
 0x1af   : > { %309 = vst.msk [vmem:[#allocation2 + $0x41] sm:$0x1] %vm288_vm4, %v10739_v47  ;;  %310 = vst.msk [vmem:[#allocation2 + $0x59] sm:$0x1] %vm288_vm4, %v10739_v47 }
 0x1b0   : > { %311 = vst.msk [vmem:[#allocation2 + $0x71] sm:$0x1] %vm288_vm4, %v10739_v47  ;;  %312 = vst.msk [vmem:[#allocation2 + $0x89] sm:$0x1] %vm288_vm4, %v10739_v47 }
 0x1b1   : > { %9623 = vmatmul.mubr.msk.f32.gmra.mrb[18].mxu0 %vm392_vm1, %v11064_v55  ;;  %313 = vst.msk [vmem:[#allocation2 + $0xa1] sm:$0x1] %vm288_vm4, %v10739_v47  ;;  %314 = vst.msk [vmem:[#allocation2 + $0xb9] sm:$0x1] %vm288_vm4, %v10739_v47  ;;  %v11774_v55 = vld [vmem:[%s12791_s3 + $0x10] sm:$0xff] }
 0x1b2   : > { %9625 = vmatprep.mubr.msk.f32.mxu0 %vm392_vm1, %v11067_v56  ;;  %315 = vst.msk [vmem:[#allocation2 + $0xd1] sm:$0x1] %vm288_vm4, %v10739_v47  ;;  %316 = vst.msk [vmem:[#allocation2 + $0xe9] sm:$0x1] %vm288_vm4, %v10739_v47  ;;  %v11780_v56 = vld [vmem:[%s12790_s2] ss:$0 sm:$0xff] }
 0x1b3   : > { %317 = vst.msk [vmem:[#allocation2 + $0x101] sm:$0x1] %vm288_vm4, %v10739_v47  ;;  %318 = vst.msk [vmem:[#allocation2 + $0x119] sm:$0x1] %vm288_vm4, %v10739_v47 }
 0x1b4   : > { %319 = vst.msk [vmem:[#allocation2 + $0x131] sm:$0x1] %vm288_vm4, %v10739_v47  ;;  %320 = vst.msk [vmem:[#allocation2 + $0x149] sm:$0x1] %vm288_vm4, %v10739_v47 }
 0x1b5   : > { %9626 = vmatmul.mubr.msk.f32.gmra.mrb[20].mxu0 %vm392_vm1, %v11074_v57  ;;  %321 = vst.msk [vmem:[#allocation2 + $0x161] sm:$0x1] %vm288_vm4, %v10739_v47  ;;  %322 = vst.msk [vmem:[#allocation2 + $0x179] sm:$0x1] %vm288_vm4, %v10739_v47 }
 0x1b6   : > { %9628 = vmatprep.mubr.msk.f32.mxu0 %vm392_vm1, %v11077_v58  ;;  %323 = vst.msk [vmem:[#allocation2 + $0x191] sm:$0x1] %vm288_vm4, %v10739_v47  ;;  %324 = vst.msk [vmem:[#allocation2 + $0x1a9] sm:$0x1] %vm288_vm4, %v10739_v47 }
 0x1b9   : > { %9629 = vmatmul.mubr.msk.f32.gmra.mrb[22].mxu0 %vm392_vm1, %v11084_v59 }
 0x1ba   : > { %9631 = vmatprep.mubr.msk.f32.mxu0 %vm392_vm1, %v11087_v60 }
 0x1bd   : > { %9632 = vmatmul.mubr.msk.f32.gmra.mrb[24].mxu0 %vm392_vm1, %v11094_v61 }
 0x1be   : > { %9634 = vmatprep.mubr.msk.f32.mxu0 %vm392_vm1, %v11097_v62 }
 0x1c1   : > { %9635 = vmatmul.mubr.msk.f32.gmra.mrb[26].mxu0 %vm392_vm1, %v11104_v63 }
 0x1c2   : > { %9637 = vmatprep.mubr.msk.f32.mxu0 %vm392_vm1, %v11356_v33 }
 0x1c5   : > { %9638 = vmatmul.mubr.msk.f32.gmra.mrb[28].mxu0 %vm392_vm1, %v11363_v35 }
 0x1c6   : > { %9640 = vmatprep.mubr.msk.f32.mxu0 %vm392_vm1, %v8179_v36 }
 0x1c9   : > { %9641 = vmatmul.mubr.msk.f32.gmra.mrb[30].mxu0 %vm392_vm1, %v8180_v37 }
 0x1ca   : > { %9645 = vmatprep.mubr.msk.f32.mxu0 %vm392_vm1, %v10824_v7  ;;  %v12981_v7 = vld [vmem:[#allocation4_spill] sm:$0xff] }
 0x1cd   : > { %9646 = vmatmul.mubr.msk.f32.vlgmr.msra.gmra.mrb[0].mxu0 %vm392_vm1, %v10832_v8  ;;  %v12982_v8 = vld [vmem:[#allocation5_spill] sm:$0xff] }
 0x1ce   : > { %9694 = vmatpush3.msk.msra.mxu0 %vm489_vm0, %v8313_v32  ;;  %9648 = vmatprep.mubr.msk.f32.mxu0 %vm392_vm1, %v10835_v9  ;;  %v12983_v9 = vld [vmem:[#allocation31_spill] sm:$0xff] }
 0x1d1   : > { %9649 = vmatmul.mubr.msk.f32.gmra.mrb[2].mxu0 %vm392_vm1, %v10842_v10  ;;  %v12984_v10 = vld [vmem:[#allocation33_spill] sm:$0xff] }
 0x1d2   : > { %9651 = vmatprep.mubr.msk.f32.mxu0 %vm392_vm1, %v10845_v11  ;;  %v12985_v11 = vld [vmem:[#allocation35_spill] sm:$0xff] }
 0x1d5   : > { %9652 = vmatmul.mubr.msk.f32.gmra.mrb[4].mxu0 %vm392_vm1, %v10852_v12  ;;  %v12986_v12 = vld [vmem:[#allocation36_spill] sm:$0xff] }
 0x1d6   : > { %9654 = vmatprep.mubr.msk.f32.mxu0 %vm392_vm1, %v10855_v13  ;;  %v12987_v13 = vld [vmem:[#allocation38_spill] sm:$0xff] }
 0x1d9   : > { %9655 = vmatmul.mubr.msk.f32.gmra.mrb[6].mxu0 %vm392_vm1, %v10862_v14  ;;  %v8245_v14 = vld [vmem:[%s10805_s10 + $0x199] sm:$0xff] }
 0x1da   : > { %9657 = vmatprep.mubr.msk.f32.mxu0 %vm392_vm1, %v10865_v15  ;;  %v12988_v15 = vld [vmem:[#allocation39_spill] sm:$0xff] }
 0x1dd   : > { %9658 = vmatmul.mubr.msk.f32.gmra.mrb[8].mxu0 %vm392_vm1, %v10872_v16  ;;  %v8246_v16 = vld [vmem:[%s10805_s10 + $0x1a1] sm:$0xff] }
 0x1de   : > { %9660 = vmatprep.mubr.msk.f32.mxu0 %vm392_vm1, %v10875_v17  ;;  %v12989_v17 = vld [vmem:[#allocation8_spill] sm:$0xff] }
 0x1e1   : > { %9661 = vmatmul.mubr.msk.f32.gmra.mrb[10].mxu0 %vm392_vm1, %v10882_v18  ;;  %v12990_v18 = vld [vmem:[#allocation9_spill] sm:$0xff] }
 0x1e2   : > { %9663 = vmatprep.mubr.msk.f32.mxu0 %vm392_vm1, %v10885_v19  ;;  %v12991_v19 = vld [vmem:[#allocation10_spill] sm:$0xff] }
 0x1e5   : > { %9664 = vmatmul.mubr.msk.f32.gmra.mrb[12].mxu0 %vm392_vm1, %v10892_v20  ;;  %v12992_v20 = vld [vmem:[#allocation11_spill] sm:$0xff] }
 0x1e6   : > { %9666 = vmatprep.mubr.msk.f32.mxu0 %vm392_vm1, %v10895_v21  ;;  %v12993_v21 = vld [vmem:[#allocation12_spill] sm:$0xff] }
 0x1e9   : > { %9667 = vmatmul.mubr.msk.f32.gmra.mrb[14].mxu0 %vm392_vm1, %v10902_v22  ;;  %v12994_v22 = vld [vmem:[#allocation13_spill] sm:$0xff] }
 0x1ea   : > { %9669 = vmatprep.mubr.msk.f32.mxu0 %vm392_vm1, %v10905_v23  ;;  %v12995_v23 = vld [vmem:[#allocation14_spill] sm:$0xff] }
 0x1ed   : > { %9670 = vmatmul.mubr.msk.f32.gmra.mrb[16].mxu0 %vm392_vm1, %v10912_v24  ;;  %v12996_v24 = vld [vmem:[#allocation15_spill] sm:$0xff] }
 0x1ee   : > { %9672 = vmatprep.mubr.msk.f32.mxu0 %vm392_vm1, %v10915_v25  ;;  %v12997_v25 = vld [vmem:[#allocation16_spill] sm:$0xff] }
 0x1f1   : > { %9673 = vmatmul.mubr.msk.f32.gmra.mrb[18].mxu0 %vm392_vm1, %v10922_v26  ;;  %v12998_v26 = vld [vmem:[#allocation17_spill] sm:$0xff] }
 0x1f2   : > { %9675 = vmatprep.mubr.msk.f32.mxu0 %vm392_vm1, %v10925_v27  ;;  %v12999_v27 = vld [vmem:[#allocation18_spill] sm:$0xff] }
 0x1f5   : > { %9676 = vmatmul.mubr.msk.f32.gmra.mrb[20].mxu0 %vm392_vm1, %v10932_v28  ;;  %v13000_v28 = vld [vmem:[#allocation19_spill] sm:$0xff] }
 0x1f6   : > { %9678 = vmatprep.mubr.msk.f32.mxu0 %vm392_vm1, %v12981_v7 }
 0x1f9   : > { %9679 = vmatmul.mubr.msk.f32.gmra.mrb[22].mxu0 %vm392_vm1, %v12982_v8 }
 0x1fa   : > { %9681 = vmatprep.mubr.msk.f32.mxu0 %vm392_vm1, %v12983_v9 }
 0x1fd   : > { %9682 = vmatmul.mubr.msk.f32.gmra.mrb[24].mxu0 %vm392_vm1, %v12984_v10 }
 0x1fe   : > { %9684 = vmatprep.mubr.msk.f32.mxu0 %vm392_vm1, %v12985_v11 }
 0x201   : > { %9685 = vmatmul.mubr.msk.f32.gmra.mrb[26].mxu0 %vm392_vm1, %v12986_v12 }
 0x202   : > { %9687 = vmatprep.mubr.msk.f32.mxu0 %vm392_vm1, %v12987_v13 }
 0x205   : > { %9688 = vmatmul.mubr.msk.f32.gmra.mrb[28].mxu0 %vm392_vm1, %v12988_v15 }
 0x206   : > { %9690 = vmatprep.mubr.msk.f32.mxu0 %vm392_vm1, %v8245_v14 }
 0x209   : > { %9691 = vmatmul.mubr.msk.f32.gmra.mrb[30].mxu0 %vm392_vm1, %v8246_v16 }
 0x20a   : > { %9695 = vmatprep.mubr.msk.f32.mxu0 %vm392_vm1, %v12989_v17 }
 0x20d   : > { %9696 = vmatmul.mubr.msk.f32.vlgmr.msra.gmra.mrb[0].mxu0 %vm392_vm1, %v12990_v18 }
 0x20e   : > { %9698 = vmatprep.mubr.msk.f32.mxu0 %vm392_vm1, %v12991_v19 }
 0x211   : > { %9699 = vmatmul.mubr.msk.f32.gmra.mrb[2].mxu0 %vm392_vm1, %v12992_v20 }
 0x212   : > { %9701 = vmatprep.mubr.msk.f32.mxu0 %vm392_vm1, %v12993_v21 }
 0x215   : > { %9702 = vmatmul.mubr.msk.f32.gmra.mrb[4].mxu0 %vm392_vm1, %v12994_v22 }
 0x216   : > { %9704 = vmatprep.mubr.msk.f32.mxu0 %vm392_vm1, %v12995_v23 }
 0x219   : > { %9705 = vmatmul.mubr.msk.f32.gmra.mrb[6].mxu0 %vm392_vm1, %v12996_v24 }
 0x21a   : > { %9707 = vmatprep.mubr.msk.f32.mxu0 %vm392_vm1, %v12997_v25 }
 0x21d   : > { %9708 = vmatmul.mubr.msk.f32.gmra.mrb[8].mxu0 %vm392_vm1, %v12998_v26 }
 0x21e   : > { %9710 = vmatprep.mubr.msk.f32.mxu0 %vm392_vm1, %v12999_v27 }
 0x221   : > { %9711 = vmatmul.mubr.msk.f32.gmra.mrb[10].mxu0 %vm392_vm1, %v13000_v28 }
 0x222   : > { %9713 = vmatprep.mubr.msk.f32.mxu0 %vm392_vm1, %v13001_v38 }
 0x225   : > { %9714 = vmatmul.mubr.msk.f32.gmra.mrb[12].mxu0 %vm392_vm1, %v13002_v39 }
 0x226   : > { %9716 = vmatprep.mubr.msk.f32.mxu0 %vm392_vm1, %v13003_v40 }
 0x229   : > { %9717 = vmatmul.mubr.msk.f32.gmra.mrb[14].mxu0 %vm392_vm1, %v13004_v41 }
 0x22a   : > { %9719 = vmatprep.mubr.msk.f32.mxu0 %vm392_vm1, %v13005_v42 }
 0x22d   : > { %9720 = vmatmul.mubr.msk.f32.gmra.mrb[16].mxu0 %vm392_vm1, %v12973_v5 }
 0x22e   : > { %9722 = vmatprep.mubr.msk.f32.mxu0 %vm392_vm1, %v12974_v4 }
 0x231   : > { %9723 = vmatmul.mubr.msk.f32.gmra.mrb[18].mxu0 %vm392_vm1, %v13006_v43 }
 0x232   : > { %9725 = vmatprep.mubr.msk.f32.mxu0 %vm392_vm1, %v12976_v3 }
 0x235   : > { %9726 = vmatmul.mubr.msk.f32.gmra.mrb[20].mxu0 %vm392_vm1, %v12977_v2 }
 0x236   : > { %9728 = vmatprep.mubr.msk.f32.mxu0 %vm392_vm1, %v13007_v44 }
 0x239   : > { %9729 = vmatmul.mubr.msk.f32.gmra.mrb[22].mxu0 %vm392_vm1, %v12979_v29  ;;  %v8312_v29 = vld [vmem:[%s10805_s10 + $0x1a2] sm:$0xff] }
 0x23a   : > { %9731 = vmatprep.mubr.msk.f32.mxu0 %vm392_vm1, %v12980_v6 }
 0x23d   : > { %9732 = vmatmul.mubr.msk.f32.gmra.mrb[24].mxu0 %vm392_vm1, %v11270_v31 }
 0x23e   : > { %9734 = vmatprep.mubr.msk.f32.mxu0 %vm392_vm1, %v13008_v45 }
 0x241   : > { %9735 = vmatmul.mubr.msk.f32.gmra.mrb[26].mxu0 %vm392_vm1, %v11287_v0 }
 0x242   : > { %9737 = vmatprep.mubr.msk.f32.mxu0 %vm392_vm1, %v11506_v30  ;;  %v8348_v30 = vld [vmem:[%s12791_s3 + $0x8] sm:$0xff] }
 0x243   : > { %9743 = vmatprep.subr.mxu1 %v8348_v30 }
 0x244   : > { %9744 = vmatpush3.msra.mxu1 %v8348_v30 }
 0x245   : > { %9738 = vmatmul.mubr.msk.f32.gmra.mrb[28].mxu0 %vm392_vm1, %v11513_v34  ;;  %9746 = vmatmul.mubr.msk.f32.vlgmr.msra.gmra.mrb[4].mxu1 %vm279_vm2, %v3912_v49 }
 0x246   : > { %9740 = vmatprep.mubr.msk.f32.mxu0 %vm392_vm1, %v8311_v46  ;;  %9793 = vmatprep.subr.mxu1 %v3910_v50 }
 0x247   : > { %9794 = vmatpush3.msra.mxu1 %v3910_v50 }
 0x248   : > { %9843 = vmatprep.subr.mxu1 %v11774_v55 }
 0x249   : > { %9741 = vmatmul.mubr.msk.f32.gmra.mrb[30].mxu0 %vm392_vm1, %v8312_v29 }
 0x2e0   : > { %v9697_v57 = vpop.f32.mrb[0].mxu0 }
 0x2e1   : > { %v3782_v58 = vadd.f32 %v9697_v57, %v11780_v56  ;;  %v3583_v59 = vpop.f32.mrb[1].mxu0 }
 0x2e2   : > { %v3781_v60 = vadd.f32 %v11780_v56, %v3583_v59 }
 0x2e3   : > { %v3814_v61 = vmax.f32 %v3782_v58, 0.0 }
 0x2e4   : > { %v3813_v62 = vmax.f32 %v3781_v60, 0.0  ;;  %v9700_v63 = vpop.f32.mrb[2].mxu0 }
 0x2e5   : > { %3847 = vst.msk [vmem:[#allocation2 + $0x21] sm:$0xff] %vm279_vm2, %v3814_v61  ;;  %v3784_v2 = vadd.f32 %v9700_v63, %v11780_v56  ;;  %v3593_v31 = vpop.f32.mrb[3].mxu0 }
 0x2e6   : > { %3846 = vst.msk [vmem:[#allocation2 + $0x19] sm:$0xff] %vm279_vm2, %v3813_v62  ;;  %v3783_v32 = vadd.f32 %v11780_v56, %v3593_v31 }
 0x2e7   : > { %v3816_v0 = vmax.f32 %v3784_v2, 0.0 }
 0x2e8   : > { %v3815_v1 = vmax.f32 %v3783_v32, 0.0  ;;  %v9703_v33 = vpop.f32.mrb[4].mxu0 }
 0x2e9   : > { %3849 = vst.msk [vmem:[#allocation2 + $0x39] sm:$0xff] %vm279_vm2, %v3816_v0  ;;  %v3786_v35 = vadd.f32 %v9703_v33, %v11780_v56  ;;  %v3603_v6 = vpop.f32.mrb[5].mxu0 }
 0x2ea   : > { %3848 = vst.msk [vmem:[#allocation2 + $0x31] sm:$0xff] %vm279_vm2, %v3815_v1  ;;  %v3785_v5 = vadd.f32 %v11780_v56, %v3603_v6 }
 0x2eb   : > { %v3818_v4 = vmax.f32 %v3786_v35, 0.0 }
 0x2ec   : > { %v3817_v34 = vmax.f32 %v3785_v5, 0.0  ;;  %v9706_v3 = vpop.f32.mrb[6].mxu0  ;;  %v11800_v9 = vld [vmem:[#allocation2 + $0x21] sm:$0xff] }
 0x2ed   : > { %3851 = vst.msk [vmem:[#allocation2 + $0x51] sm:$0xff] %vm279_vm2, %v3818_v4  ;;  %v3788_v36 = vadd.f32 %v9706_v3, %v11780_v56  ;;  %v3613_v37 = vpop.f32.mrb[7].mxu0  ;;  %v11794_v7 = vld [vmem:[#allocation2 + $0x19] sm:$0xff] }
 0x2ee   : > { %3850 = vst.msk [vmem:[#allocation2 + $0x49] sm:$0xff] %vm279_vm2, %v3817_v34  ;;  %v3787_v8 = vadd.f32 %v11780_v56, %v3613_v37  ;;  %9748 = vmatprep.mubr.msk.f32.mxu1 %vm279_vm2, %v11794_v7 }
 0x2ef   : > { %v3820_v10 = vmax.f32 %v3788_v36, 0.0  ;;  %9749 = vmatmul.mubr.msk.f32.gmra.mrb[6].mxu1 %vm279_vm2, %v11800_v9 }
 0x2f0   : > { %v3819_v11 = vmax.f32 %v3787_v8, 0.0  ;;  %v9709_v12 = vpop.f32.mrb[8].mxu0  ;;  %v11812_v17 = vld [vmem:[#allocation2 + $0x39] sm:$0xff] }
 0x2f1   : > { %3853 = vst.msk [vmem:[#allocation2 + $0x69] sm:$0xff] %vm279_vm2, %v3820_v10  ;;  %v3790_v13 = vadd.f32 %v9709_v12, %v11780_v56  ;;  %v3623_v14 = vpop.f32.mrb[9].mxu0  ;;  %v11806_v15 = vld [vmem:[#allocation2 + $0x31] sm:$0xff] }
 0x2f2   : > { %3852 = vst.msk [vmem:[#allocation2 + $0x61] sm:$0xff] %vm279_vm2, %v3819_v11  ;;  %v3789_v16 = vadd.f32 %v11780_v56, %v3623_v14  ;;  %9751 = vmatprep.mubr.msk.f32.mxu1 %vm279_vm2, %v11806_v15 }
 0x2f3   : > { %v3822_v18 = vmax.f32 %v3790_v13, 0.0  ;;  %9752 = vmatmul.mubr.msk.f32.gmra.mrb[8].mxu1 %vm279_vm2, %v11812_v17 }
 0x2f4   : > { %v3821_v19 = vmax.f32 %v3789_v16, 0.0  ;;  %v9712_v20 = vpop.f32.mrb[10].mxu0  ;;  %v11824_v25 = vld [vmem:[#allocation2 + $0x51] sm:$0xff] }
 0x2f5   : > { %3855 = vst.msk [vmem:[#allocation2 + $0x81] sm:$0xff] %vm279_vm2, %v3822_v18  ;;  %v3792_v21 = vadd.f32 %v9712_v20, %v11780_v56  ;;  %v3633_v22 = vpop.f32.mrb[11].mxu0  ;;  %v11818_v23 = vld [vmem:[#allocation2 + $0x49] sm:$0xff] }
 0x2f6   : > { %3854 = vst.msk [vmem:[#allocation2 + $0x79] sm:$0xff] %vm279_vm2, %v3821_v19  ;;  %v3791_v24 = vadd.f32 %v11780_v56, %v3633_v22  ;;  %9754 = vmatprep.mubr.msk.f32.mxu1 %vm279_vm2, %v11818_v23 }
 0x2f7   : > { %v3824_v26 = vmax.f32 %v3792_v21, 0.0  ;;  %9755 = vmatmul.mubr.msk.f32.gmra.mrb[10].mxu1 %vm279_vm2, %v11824_v25 }
 0x2f8   : > { %v3823_v27 = vmax.f32 %v3791_v24, 0.0  ;;  %v9715_v28 = vpop.f32.mrb[12].mxu0  ;;  %v11836_v42 = vld [vmem:[#allocation2 + $0x69] sm:$0xff] }
 0x2f9   : > { %3857 = vst.msk [vmem:[#allocation2 + $0x99] sm:$0xff] %vm279_vm2, %v3824_v26  ;;  %v3794_v38 = vadd.f32 %v9715_v28, %v11780_v56  ;;  %v3643_v39 = vpop.f32.mrb[13].mxu0  ;;  %v11830_v40 = vld [vmem:[#allocation2 + $0x61] sm:$0xff] }
 0x2fa   : > { %3856 = vst.msk [vmem:[#allocation2 + $0x91] sm:$0xff] %vm279_vm2, %v3823_v27  ;;  %v3793_v41 = vadd.f32 %v11780_v56, %v3643_v39  ;;  %9757 = vmatprep.mubr.msk.f32.mxu1 %vm279_vm2, %v11830_v40 }
 0x2fb   : > { %v3826_v43 = vmax.f32 %v3794_v38, 0.0  ;;  %9758 = vmatmul.mubr.msk.f32.gmra.mrb[12].mxu1 %vm279_vm2, %v11836_v42 }
 0x2fc   : > { %v3825_v44 = vmax.f32 %v3793_v41, 0.0  ;;  %v9718_v45 = vpop.f32.mrb[14].mxu0  ;;  %v11848_v48 = vld [vmem:[#allocation2 + $0x81] sm:$0xff] }
 0x2fd   : > { %3859 = vst.msk [vmem:[#allocation2 + $0xb1] sm:$0xff] %vm279_vm2, %v3826_v43  ;;  %v3796_v46 = vadd.f32 %v9718_v45, %v11780_v56  ;;  %v3653_v29 = vpop.f32.mrb[15].mxu0  ;;  %v11842_v47 = vld [vmem:[#allocation2 + $0x79] sm:$0xff] }
 0x2fe   : > { %3858 = vst.msk [vmem:[#allocation2 + $0xa9] sm:$0xff] %vm279_vm2, %v3825_v44  ;;  %v3795_v30 = vadd.f32 %v11780_v56, %v3653_v29  ;;  %9760 = vmatprep.mubr.msk.f32.mxu1 %vm279_vm2, %v11842_v47 }
 0x2ff   : > { %v3828_v49 = vmax.f32 %v3796_v46, 0.0  ;;  %9761 = vmatmul.mubr.msk.f32.gmra.mrb[14].mxu1 %vm279_vm2, %v11848_v48 }
 0x300   : > { %v3827_v50 = vmax.f32 %v3795_v30, 0.0  ;;  %v9721_v57 = vpop.f32.mrb[16].mxu0  ;;  %v11860_v62 = vld [vmem:[#allocation2 + $0x99] sm:$0xff] }
 0x301   : > { %3861 = vst.msk [vmem:[#allocation2 + $0xc9] sm:$0xff] %vm279_vm2, %v3828_v49  ;;  %v3798_v58 = vadd.f32 %v9721_v57, %v11780_v56  ;;  %v3663_v59 = vpop.f32.mrb[17].mxu0  ;;  %v11854_v60 = vld [vmem:[#allocation2 + $0x91] sm:$0xff] }
 0x302   : > { %3860 = vst.msk [vmem:[#allocation2 + $0xc1] sm:$0xff] %vm279_vm2, %v3827_v50  ;;  %v3797_v61 = vadd.f32 %v11780_v56, %v3663_v59  ;;  %9763 = vmatprep.mubr.msk.f32.mxu1 %vm279_vm2, %v11854_v60 }
 0x303   : > { %v3830_v63 = vmax.f32 %v3798_v58, 0.0  ;;  %9764 = vmatmul.mubr.msk.f32.gmra.mrb[16].mxu1 %vm279_vm2, %v11860_v62 }
 0x304   : > { %v3829_v2 = vmax.f32 %v3797_v61, 0.0  ;;  %v9724_v31 = vpop.f32.mrb[18].mxu0  ;;  %v11872_v35 = vld [vmem:[#allocation2 + $0xb1] sm:$0xff] }
 0x305   : > { %3863 = vst.msk [vmem:[#allocation2 + $0xe1] sm:$0xff] %vm279_vm2, %v3830_v63  ;;  %v3800_v32 = vadd.f32 %v9724_v31, %v11780_v56  ;;  %v3673_v0 = vpop.f32.mrb[19].mxu0  ;;  %v11866_v1 = vld [vmem:[#allocation2 + $0xa9] sm:$0xff] }
 0x306   : > { %3862 = vst.msk [vmem:[#allocation2 + $0xd9] sm:$0xff] %vm279_vm2, %v3829_v2  ;;  %v3799_v33 = vadd.f32 %v11780_v56, %v3673_v0  ;;  %9766 = vmatprep.mubr.msk.f32.mxu1 %vm279_vm2, %v11866_v1 }
 0x307   : > { %v3832_v6 = vmax.f32 %v3800_v32, 0.0  ;;  %9767 = vmatmul.mubr.msk.f32.gmra.mrb[18].mxu1 %vm279_vm2, %v11872_v35 }
 0x308   : > { %v3831_v5 = vmax.f32 %v3799_v33, 0.0  ;;  %v9727_v4 = vpop.f32.mrb[20].mxu0  ;;  %v11884_v8 = vld [vmem:[#allocation2 + $0xc9] sm:$0xff] }
 0x309   : > { %3865 = vst.msk [vmem:[#allocation2 + $0xf9] sm:$0xff] %vm279_vm2, %v3832_v6  ;;  %v3802_v34 = vadd.f32 %v9727_v4, %v11780_v56  ;;  %v3683_v3 = vpop.f32.mrb[21].mxu0  ;;  %v11878_v36 = vld [vmem:[#allocation2 + $0xc1] sm:$0xff] }
 0x30a   : > { %3864 = vst.msk [vmem:[#allocation2 + $0xf1] sm:$0xff] %vm279_vm2, %v3831_v5  ;;  %v3801_v37 = vadd.f32 %v11780_v56, %v3683_v3  ;;  %9769 = vmatprep.mubr.msk.f32.mxu1 %vm279_vm2, %v11878_v36 }
 0x30b   : > { %v3834_v10 = vmax.f32 %v3802_v34, 0.0  ;;  %9770 = vmatmul.mubr.msk.f32.gmra.mrb[20].mxu1 %vm279_vm2, %v11884_v8 }
 0x30c   : > { %v3833_v11 = vmax.f32 %v3801_v37, 0.0  ;;  %v9730_v12 = vpop.f32.mrb[22].mxu0  ;;  %v11896_v19 = vld [vmem:[#allocation2 + $0xe1] sm:$0xff] }
 0x30d   : > { %3867 = vst.msk [vmem:[#allocation2 + $0x111] sm:$0xff] %vm279_vm2, %v3834_v10  ;;  %v3804_v13 = vadd.f32 %v9730_v12, %v11780_v56  ;;  %v3693_v14 = vpop.f32.mrb[23].mxu0  ;;  %v11890_v16 = vld [vmem:[#allocation2 + $0xd9] sm:$0xff] }
 0x30e   : > { %3866 = vst.msk [vmem:[#allocation2 + $0x109] sm:$0xff] %vm279_vm2, %v3833_v11  ;;  %v3803_v18 = vadd.f32 %v11780_v56, %v3693_v14  ;;  %9772 = vmatprep.mubr.msk.f32.mxu1 %vm279_vm2, %v11890_v16  ;;  %v3879_v14 = vld [vmem:[#allocation2 + $0x8] sm:$0xff] }
 0x30f   : > { %v3836_v20 = vmax.f32 %v3804_v13, 0.0  ;;  %9773 = vmatmul.mubr.msk.f32.gmra.mrb[22].mxu1 %vm279_vm2, %v11896_v19  ;;  %v3878_v13 = vld [vmem:[#allocation2] sm:$0xff] }
 0x310   : > { %v3835_v21 = vmax.f32 %v3803_v18, 0.0  ;;  %v9733_v22 = vpop.f32.mrb[24].mxu0  ;;  %v11908_v38 = vld [vmem:[#allocation2 + $0xf9] sm:$0xff] }
 0x311   : > { %3869 = vst.msk [vmem:[#allocation2 + $0x129] sm:$0xff] %vm279_vm2, %v3836_v20  ;;  %v3806_v24 = vadd.f32 %v9733_v22, %v11780_v56  ;;  %v3703_v26 = vpop.f32.mrb[25].mxu0  ;;  %v11902_v27 = vld [vmem:[#allocation2 + $0xf1] sm:$0xff] }
 0x312   : > { %3868 = vst.msk [vmem:[#allocation2 + $0x121] sm:$0xff] %vm279_vm2, %v3835_v21  ;;  %v3805_v28 = vadd.f32 %v11780_v56, %v3703_v26  ;;  %9775 = vmatprep.mubr.msk.f32.mxu1 %vm279_vm2, %v11902_v27  ;;  %v11974_v18 = vld [vmem:[%s12791_s3 + $0x18] sm:$0xff]  ;;  %v11983_v21 = vld [vmem:[#allocation2 + $0x20] sm:$0xff]  ;;  %v11987_v22 = vld [vmem:[#allocation2 + $0x30] sm:$0xff] }
 0x313   : > { %v3838_v39 = vmax.f32 %v3806_v24, 0.0  ;;  %9776 = vmatmul.mubr.msk.f32.gmra.mrb[24].mxu1 %vm279_vm2, %v11908_v38  ;;  %v11977_v20 = vld [vmem:[#allocation2 + $0x18] sm:$0xff]  ;;  %v11999_v26 = vld [vmem:[#allocation2 + $0x50] sm:$0xff] }
 0x314   : > { %v3837_v41 = vmax.f32 %v3805_v28, 0.0  ;;  %v9736_v43 = vpop.f32.mrb[26].mxu0  ;;  %v11920_v30 = vld [vmem:[#allocation2 + $0x111] sm:$0xff]  ;;  %v12003_v28 = vld [vmem:[#allocation2 + $0x60] sm:$0xff] }
 0x315   : > { %3871 = vst.msk [vmem:[#allocation2 + $0x141] sm:$0xff] %vm279_vm2, %v3838_v39  ;;  %v3808_v44 = vadd.f32 %v9736_v43, %v11780_v56  ;;  %v3713_v45 = vpop.f32.mrb[27].mxu0  ;;  %v11914_v46 = vld [vmem:[#allocation2 + $0x109] sm:$0xff]  ;;  %v11991_v24 = vld [vmem:[#allocation2 + $0x38] sm:$0xff]  ;;  %v12015_v43 = vld [vmem:[#allocation2 + $0x80] sm:$0xff] }
 0x316   : > { %3870 = vst.msk [vmem:[#allocation2 + $0x139] sm:$0xff] %vm279_vm2, %v3837_v41  ;;  %v3807_v29 = vadd.f32 %v11780_v56, %v3713_v45  ;;  %9778 = vmatprep.mubr.msk.f32.mxu1 %vm279_vm2, %v11914_v46  ;;  %v12007_v39 = vld [vmem:[#allocation2 + $0x68] sm:$0xff]  ;;  %v12011_v41 = vld [vmem:[#allocation2 + $0x78] sm:$0xff] }
 0x317   : > { %v3840_v49 = vmax.f32 %v3808_v44, 0.0  ;;  %9779 = vmatmul.mubr.msk.f32.gmra.mrb[26].mxu1 %vm279_vm2, %v11920_v30  ;;  %v12019_v44 = vld [vmem:[#allocation2 + $0x90] sm:$0xff]  ;;  %v12023_v45 = vld [vmem:[#allocation2 + $0x98] sm:$0xff] }
 0x318   : > { %v3839_v50 = vmax.f32 %v3807_v29, 0.0  ;;  %v9739_v57 = vpop.f32.mrb[28].mxu0  ;;  %v11932_v2 = vld [vmem:[#allocation2 + $0x129] sm:$0xff] }
 0x319   : > { %3873 = vst.msk [vmem:[#allocation2 + $0x159] sm:$0xff] %vm279_vm2, %v3840_v49  ;;  %v10209_v58 = vadd.f32 %v9739_v57, %v11763_v51  ;;  %v3723_v59 = vpop.f32.mrb[29].mxu0  ;;  %v11926_v61 = vld [vmem:[#allocation2 + $0x121] sm:$0xff]  ;;  %v12031_v49 = vld [vmem:[#allocation2 + $0xb0] sm:$0xff] }
 0x31a   : > { %3872 = vst.msk [vmem:[#allocation2 + $0x151] sm:$0xff] %vm279_vm2, %v3839_v50  ;;  %v10210_v63 = vadd.f32 %v3723_v59, %v11765_v52  ;;  %9781 = vmatprep.mubr.msk.f32.mxu1 %vm279_vm2, %v11926_v61  ;;  %v12027_v29 = vld [vmem:[#allocation2 + $0xa8] sm:$0xff]  ;;  %v12035_v50 = vld [vmem:[#allocation2 + $0xc0] sm:$0xff] }
 0x31b   : > { %v3810_v31 = vadd.f32 %v10209_v58, %v11780_v56  ;;  %9782 = vmatmul.mubr.msk.f32.gmra.mrb[28].mxu1 %vm279_vm2, %v11932_v2  ;;  %v12039_v57 = vld [vmem:[#allocation2 + $0xc8] sm:$0xff]  ;;  %v12043_v58 = vld [vmem:[#allocation2 + $0xd8] sm:$0xff]  ;;  %v12047_v59 = vld [vmem:[#allocation2 + $0xe0] sm:$0xff] }
 0x31c   : > { %v3809_v32 = vadd.f32 %v10210_v63, %v11780_v56  ;;  %v9742_v51 = vpop.f32.mrb[30].mxu0  ;;  %v11944_v34 = vld [vmem:[#allocation2 + $0x141] sm:$0xff]  ;;  %v12051_v63 = vld [vmem:[#allocation2 + $0xf0] sm:$0xff] }
 0x31d   : > { %v3842_v0 = vmax.f32 %v3810_v31, 0.0  ;;  %v10211_v33 = vadd.f32 %v9742_v51, %v11767_v53  ;;  %v3733_v6 = vpop.f32.mrb[31].mxu0  ;;  %v11939_v5 = vld [vmem:[#allocation2 + $0x139] sm:$0xff]  ;;  %v12063_v51 = vld [vmem:[#allocation2 + $0x110] sm:$0xff] }
 0x31e   : > { %v3841_v52 = vmax.f32 %v3809_v32, 0.0  ;;  %v10212_v4 = vadd.f32 %v3733_v6, %v11769_v54  ;;  %9784 = vmatprep.mubr.msk.f32.mxu1 %vm279_vm2, %v11939_v5  ;;  %v12055_v31 = vld [vmem:[#allocation2 + $0xf8] sm:$0xff]  ;;  %v12059_v32 = vld [vmem:[#allocation2 + $0x108] sm:$0xff] }
 0x31f   : > { %3875 = vst.msk [vmem:[#allocation2 + $0x171] sm:$0xff] %vm279_vm2, %v3842_v0  ;;  %v3812_v3 = vadd.f32 %v10211_v33, %v11780_v56  ;;  %9785 = vmatmul.mubr.msk.f32.gmra.mrb[30].mxu1 %vm279_vm2, %v11944_v34  ;;  %v12067_v0 = vld [vmem:[#allocation2 + $0x120] sm:$0xff]  ;;  %v12071_v33 = vld [vmem:[#allocation2 + $0x128] sm:$0xff]  ;;  %v12075_v6 = vld [vmem:[#allocation2 + $0x138] sm:$0xff] }
 0x320   : > { %3874 = vst.msk [vmem:[#allocation2 + $0x169] sm:$0xff] %vm279_vm2, %v3841_v52  ;;  %v3811_v53 = vadd.f32 %v10212_v4, %v11780_v56  ;;  %v11956_v11 = vld [vmem:[#allocation2 + $0x159] sm:$0xff] }
 0x321   : > { %v3844_v37 = vmax.f32 %v3812_v3, 0.0  ;;  %v11952_v10 = vld [vmem:[#allocation2 + $0x151] sm:$0xff]  ;;  %v12079_v52 = vld [vmem:[#allocation2 + $0x140] sm:$0xff] }
 0x322   : > { %v3843_v54 = vmax.f32 %v3811_v53, 0.0  ;;  %9787 = vmatprep.mubr.msk.f32.mxu1 %vm279_vm2, %v11952_v10  ;;  %v12083_v4 = vld [vmem:[#allocation2 + $0x150] sm:$0xff]  ;;  %v12087_v3 = vld [vmem:[#allocation2 + $0x158] sm:$0xff] }
 0x323   : > { %3877 = vst.msk [vmem:[#allocation2 + $0x189] sm:$0xff] %vm279_vm2, %v3844_v37  ;;  %9788 = vmatmul.mubr.msk.f32.gmra.mrb[32].mxu1 %vm279_vm2, %v11956_v11  ;;  %v4587_v37 = vld [vmem:[#allocation2 + $0x2] sm:$0xff] }
 0x324   : > { %3876 = vst.msk [vmem:[#allocation2 + $0x181] sm:$0xff] %vm279_vm2, %v3843_v54 }
 0x326   : > { %v11966_v56 = vld [vmem:[#allocation2 + $0x171] sm:$0xff] }
 0x327   : > { %v11962_v12 = vld [vmem:[#allocation2 + $0x169] sm:$0xff]  ;;  %13010 = vst [vmem:[#allocation7_spill] sm:$0xff] %v11966_v56 }
 0x328   : > { %13009 = vst [vmem:[#allocation6_spill] sm:$0xff] %v11962_v12  ;;  %9790 = vmatprep.mubr.msk.f32.mxu1 %vm279_vm2, %v11962_v12  ;;  %v12091_v53 = vld [vmem:[#allocation2 + $0x168] sm:$0xff]  ;;  %v12095_v54 = vld [vmem:[#allocation2 + $0x170] sm:$0xff] }
 0x329   : > { %9791 = vmatmul.mubr.msk.f32.gmra.mrb[34].mxu1 %vm279_vm2, %v11966_v56  ;;  %v12106_v56 = vld [vmem:[#allocation2 + $0x1a] sm:$0xff]  ;;  %v12112_v12 = vld [vmem:[#allocation2 + $0x22] sm:$0xff] }
 0x32a   : > { %9795 = vmatprep.mubr.msk.f32.mxu1 %vm279_vm2, %v3878_v13  ;;  %v4588_v13 = vld [vmem:[#allocation2 + $0xa] sm:$0xff]  ;;  %13011 = vst [vmem:[#allocation25_spill] sm:$0xff] %v12106_v56  ;;  %13012 = vst [vmem:[#allocation26_spill] sm:$0xff] %v12112_v12 }
 0x32d   : > { %9796 = vmatmul.mubr.msk.f32.vlgmr.msra.gmra.mrb[4].mxu1 %vm279_vm2, %v3879_v14  ;;  %v12103_v14 = vld [vmem:[%s12791_s3 + $0x20] sm:$0xff] }
 0x32e   : > { %9844 = vmatpush3.msra.mxu1 %v11774_v55  ;;  %9798 = vmatprep.mubr.msk.f32.mxu1 %vm279_vm2, %v11977_v20  ;;  %v11995_v55 = vld [vmem:[#allocation2 + $0x48] sm:$0xff] }
 0x32f   : > { %9893 = vmatprep.subr.mxu1 %v11974_v18 }
 0x331   : > { %9799 = vmatmul.mubr.msk.f32.gmra.mrb[6].mxu1 %vm279_vm2, %v11983_v21 }
 0x332   : > { %9801 = vmatprep.mubr.msk.f32.mxu1 %vm279_vm2, %v11987_v22 }
 0x335   : > { %9802 = vmatmul.mubr.msk.f32.gmra.mrb[8].mxu1 %vm279_vm2, %v11991_v24 }
 0x336   : > { %9804 = vmatprep.mubr.msk.f32.mxu1 %vm279_vm2, %v11995_v55 }
 0x339   : > { %9805 = vmatmul.mubr.msk.f32.gmra.mrb[10].mxu1 %vm279_vm2, %v11999_v26 }
 0x33a   : > { %9807 = vmatprep.mubr.msk.f32.mxu1 %vm279_vm2, %v12003_v28 }
 0x33d   : > { %9808 = vmatmul.mubr.msk.f32.gmra.mrb[12].mxu1 %vm279_vm2, %v12007_v39 }
 0x33e   : > { %9810 = vmatprep.mubr.msk.f32.mxu1 %vm279_vm2, %v12011_v41 }
 0x341   : > { %9811 = vmatmul.mubr.msk.f32.gmra.mrb[14].mxu1 %vm279_vm2, %v12015_v43 }
 0x342   : > { %9813 = vmatprep.mubr.msk.f32.mxu1 %vm279_vm2, %v12019_v44 }
 0x345   : > { %9814 = vmatmul.mubr.msk.f32.gmra.mrb[16].mxu1 %vm279_vm2, %v12023_v45 }
 0x346   : > { %9816 = vmatprep.mubr.msk.f32.mxu1 %vm279_vm2, %v12027_v29 }
 0x349   : > { %9817 = vmatmul.mubr.msk.f32.gmra.mrb[18].mxu1 %vm279_vm2, %v12031_v49 }
 0x34a   : > { %9819 = vmatprep.mubr.msk.f32.mxu1 %vm279_vm2, %v12035_v50 }
 0x34d   : > { %9820 = vmatmul.mubr.msk.f32.gmra.mrb[20].mxu1 %vm279_vm2, %v12039_v57 }
 0x34e   : > { %9822 = vmatprep.mubr.msk.f32.mxu1 %vm279_vm2, %v12043_v58 }
 0x351   : > { %9823 = vmatmul.mubr.msk.f32.gmra.mrb[22].mxu1 %vm279_vm2, %v12047_v59 }
 0x352   : > { %9825 = vmatprep.mubr.msk.f32.mxu1 %vm279_vm2, %v12051_v63 }
 0x355   : > { %9826 = vmatmul.mubr.msk.f32.gmra.mrb[24].mxu1 %vm279_vm2, %v12055_v31 }
 0x356   : > { %9828 = vmatprep.mubr.msk.f32.mxu1 %vm279_vm2, %v12059_v32 }
 0x359   : > { %9829 = vmatmul.mubr.msk.f32.gmra.mrb[26].mxu1 %vm279_vm2, %v12063_v51 }
 0x35a   : > { %9831 = vmatprep.mubr.msk.f32.mxu1 %vm279_vm2, %v12067_v0 }
 0x35d   : > { %9832 = vmatmul.mubr.msk.f32.gmra.mrb[28].mxu1 %vm279_vm2, %v12071_v33 }
 0x35e   : > { %9834 = vmatprep.mubr.msk.f32.mxu1 %vm279_vm2, %v12075_v6 }
 0x361   : > { %9835 = vmatmul.mubr.msk.f32.gmra.mrb[30].mxu1 %vm279_vm2, %v12079_v52 }
 0x362   : > { %9837 = vmatprep.mubr.msk.f32.mxu1 %vm279_vm2, %v12083_v4 }
 0x365   : > { %9838 = vmatmul.mubr.msk.f32.gmra.mrb[32].mxu1 %vm279_vm2, %v12087_v3 }
 0x366   : > { %9840 = vmatprep.mubr.msk.f32.mxu1 %vm279_vm2, %v12091_v53 }
 0x369   : > { %9841 = vmatmul.mubr.msk.f32.gmra.mrb[34].mxu1 %vm279_vm2, %v12095_v54 }
 0x36a   : > { %9845 = vmatprep.mubr.msk.f32.mxu1 %vm279_vm2, %v4587_v37  ;;  %v12116_v37 = vld [vmem:[#allocation2 + $0x32] sm:$0xff] }
 0x36b   : > { %13013 = vst [vmem:[#allocation28_spill] sm:$0xff] %v12116_v37 }
 0x36d   : > { %9846 = vmatmul.mubr.msk.f32.vlgmr.msra.gmra.mrb[4].mxu1 %vm279_vm2, %v4588_v13  ;;  %v12120_v13 = vld [vmem:[#allocation2 + $0x3a] sm:$0xff] }
 0x36e   : > { %9894 = vmatpush3.msra.mxu1 %v11974_v18  ;;  %9848 = vmatprep.mubr.msk.f32.mxu1 %vm279_vm2, %v12106_v56  ;;  %13014 = vst [vmem:[#allocation29_spill] sm:$0xff] %v12120_v13  ;;  %v12124_v18 = vld [vmem:[#allocation2 + $0x4a] sm:$0xff]  ;;  %v12128_v56 = vld [vmem:[#allocation2 + $0x52] sm:$0xff] }
 0x36f   : > { %9943 = vmatprep.subr.mxu1 %v12103_v14  ;;  %13015 = vst [vmem:[#allocation32_spill] sm:$0xff] %v12124_v18  ;;  %13016 = vst [vmem:[#allocation34_spill] sm:$0xff] %v12128_v56 }
 0x371   : > { %9849 = vmatmul.mubr.msk.f32.gmra.mrb[6].mxu1 %vm279_vm2, %v12112_v12  ;;  %v12132_v12 = vld [vmem:[#allocation2 + $0x62] sm:$0xff] }
 0x372   : > { %9851 = vmatprep.mubr.msk.f32.mxu1 %vm279_vm2, %v12116_v37  ;;  %13017 = vst [vmem:[#allocation4_spill] sm:$0xff] %v12132_v12  ;;  %v12136_v37 = vld [vmem:[#allocation2 + $0x6a] sm:$0xff] }
 0x373   : > { %13018 = vst [vmem:[#allocation5_spill] sm:$0xff] %v12136_v37 }
 0x375   : > { %9852 = vmatmul.mubr.msk.f32.gmra.mrb[8].mxu1 %vm279_vm2, %v12120_v13  ;;  %v12140_v13 = vld [vmem:[#allocation2 + $0x7a] sm:$0xff] }
 0x376   : > { %9854 = vmatprep.mubr.msk.f32.mxu1 %vm279_vm2, %v12124_v18  ;;  %13019 = vst [vmem:[#allocation31_spill] sm:$0xff] %v12140_v13  ;;  %v12144_v18 = vld [vmem:[#allocation2 + $0x82] sm:$0xff] }
 0x377   : > { %13020 = vst [vmem:[#allocation33_spill] sm:$0xff] %v12144_v18 }
 0x379   : > { %9855 = vmatmul.mubr.msk.f32.gmra.mrb[10].mxu1 %vm279_vm2, %v12128_v56  ;;  %v12148_v56 = vld [vmem:[#allocation2 + $0x92] sm:$0xff] }
 0x37a   : > { %9857 = vmatprep.mubr.msk.f32.mxu1 %vm279_vm2, %v12132_v12  ;;  %13021 = vst [vmem:[#allocation35_spill] sm:$0xff] %v12148_v56  ;;  %v12152_v12 = vld [vmem:[#allocation2 + $0x9a] sm:$0xff] }
 0x37b   : > { %13022 = vst [vmem:[#allocation36_spill] sm:$0xff] %v12152_v12 }
 0x37d   : > { %9858 = vmatmul.mubr.msk.f32.gmra.mrb[12].mxu1 %vm279_vm2, %v12136_v37  ;;  %v12156_v37 = vld [vmem:[#allocation2 + $0xaa] sm:$0xff] }
 0x37e   : > { %9860 = vmatprep.mubr.msk.f32.mxu1 %vm279_vm2, %v12140_v13  ;;  %13023 = vst [vmem:[#allocation38_spill] sm:$0xff] %v12156_v37  ;;  %v12160_v13 = vld [vmem:[#allocation2 + $0xb2] sm:$0xff] }
 0x37f   : > { %13024 = vst [vmem:[#allocation39_spill] sm:$0xff] %v12160_v13 }
 0x381   : > { %9861 = vmatmul.mubr.msk.f32.gmra.mrb[14].mxu1 %vm279_vm2, %v12144_v18  ;;  %v12164_v18 = vld [vmem:[#allocation2 + $0xc2] sm:$0xff] }
 0x382   : > { %9863 = vmatprep.mubr.msk.f32.mxu1 %vm279_vm2, %v12148_v56  ;;  %13025 = vst [vmem:[#allocation8_spill] sm:$0xff] %v12164_v18  ;;  %v12168_v56 = vld [vmem:[#allocation2 + $0xca] sm:$0xff] }
 0x383   : > { %13026 = vst [vmem:[#allocation9_spill] sm:$0xff] %v12168_v56 }
 0x385   : > { %9864 = vmatmul.mubr.msk.f32.gmra.mrb[16].mxu1 %vm279_vm2, %v12152_v12  ;;  %v12172_v12 = vld [vmem:[#allocation2 + $0xda] sm:$0xff] }
 0x386   : > { %9866 = vmatprep.mubr.msk.f32.mxu1 %vm279_vm2, %v12156_v37  ;;  %13027 = vst [vmem:[#allocation10_spill] sm:$0xff] %v12172_v12  ;;  %v12176_v37 = vld [vmem:[#allocation2 + $0xe2] sm:$0xff] }
 0x387   : > { %13028 = vst [vmem:[#allocation11_spill] sm:$0xff] %v12176_v37 }
 0x389   : > { %9867 = vmatmul.mubr.msk.f32.gmra.mrb[18].mxu1 %vm279_vm2, %v12160_v13  ;;  %v12180_v13 = vld [vmem:[#allocation2 + $0xf2] sm:$0xff] }
 0x38a   : > { %9869 = vmatprep.mubr.msk.f32.mxu1 %vm279_vm2, %v12164_v18  ;;  %13029 = vst [vmem:[#allocation12_spill] sm:$0xff] %v12180_v13  ;;  %v12184_v18 = vld [vmem:[#allocation2 + $0xfa] sm:$0xff] }
 0x38b   : > { %13030 = vst [vmem:[#allocation13_spill] sm:$0xff] %v12184_v18 }
 0x38d   : > { %9870 = vmatmul.mubr.msk.f32.gmra.mrb[20].mxu1 %vm279_vm2, %v12168_v56  ;;  %v12188_v56 = vld [vmem:[#allocation2 + $0x10a] sm:$0xff] }
 0x38e   : > { %9872 = vmatprep.mubr.msk.f32.mxu1 %vm279_vm2, %v12172_v12  ;;  %13031 = vst [vmem:[#allocation14_spill] sm:$0xff] %v12188_v56  ;;  %v12192_v12 = vld [vmem:[#allocation2 + $0x112] sm:$0xff] }
 0x38f   : > { %13032 = vst [vmem:[#allocation15_spill] sm:$0xff] %v12192_v12 }
 0x391   : > { %9873 = vmatmul.mubr.msk.f32.gmra.mrb[22].mxu1 %vm279_vm2, %v12176_v37  ;;  %v12196_v37 = vld [vmem:[#allocation2 + $0x122] sm:$0xff] }
 0x392   : > { %9875 = vmatprep.mubr.msk.f32.mxu1 %vm279_vm2, %v12180_v13  ;;  %13033 = vst [vmem:[#allocation16_spill] sm:$0xff] %v12196_v37  ;;  %v12200_v13 = vld [vmem:[#allocation2 + $0x12a] sm:$0xff] }
 0x393   : > { %13034 = vst [vmem:[#allocation17_spill] sm:$0xff] %v12200_v13 }
 0x395   : > { %9876 = vmatmul.mubr.msk.f32.gmra.mrb[24].mxu1 %vm279_vm2, %v12184_v18  ;;  %v12204_v18 = vld [vmem:[#allocation2 + $0x13a] sm:$0xff] }
 0x396   : > { %9878 = vmatprep.mubr.msk.f32.mxu1 %vm279_vm2, %v12188_v56  ;;  %13035 = vst [vmem:[#allocation18_spill] sm:$0xff] %v12204_v18  ;;  %v12208_v56 = vld [vmem:[#allocation2 + $0x142] sm:$0xff] }
 0x399   : > { %9879 = vmatmul.mubr.msk.f32.gmra.mrb[26].mxu1 %vm279_vm2, %v12192_v12  ;;  %v12212_v12 = vld [vmem:[#allocation2 + $0x152] sm:$0xff] }
 0x39a   : > { %9881 = vmatprep.mubr.msk.f32.mxu1 %vm279_vm2, %v12196_v37  ;;  %13036 = vst [vmem:[#allocation19_spill] sm:$0xff] %v12212_v12  ;;  %v12216_v37 = vld [vmem:[#allocation2 + $0x15a] sm:$0xff] }
 0x39b   : > { %13037 = vst [vmem:[#allocation20_spill] sm:$0xff] %v12216_v37 }
 0x39d   : > { %9882 = vmatmul.mubr.msk.f32.gmra.mrb[28].mxu1 %vm279_vm2, %v12200_v13  ;;  %v12220_v13 = vld [vmem:[#allocation2 + $0x16a] sm:$0xff] }
 0x39e   : > { %9884 = vmatprep.mubr.msk.f32.mxu1 %vm279_vm2, %v12204_v18  ;;  %13038 = vst [vmem:[#allocation21_spill] sm:$0xff] %v12220_v13  ;;  %v12224_v18 = vld [vmem:[#allocation2 + $0x172] sm:$0xff] }
 0x39f   : > { %13039 = vst [vmem:[#allocation22_spill] sm:$0xff] %v12224_v18 }
 0x3a1   : > { %9885 = vmatmul.mubr.msk.f32.gmra.mrb[30].mxu1 %vm279_vm2, %v12208_v56 }
 0x3a2   : > { %9887 = vmatprep.mubr.msk.f32.mxu1 %vm279_vm2, %v12212_v12  ;;  %v8512_v12 = vld [vmem:[%s12791_s3 + $0x28] sm:$0xff] }
 0x3a5   : > { %9888 = vmatmul.mubr.msk.f32.gmra.mrb[32].mxu1 %vm279_vm2, %v12216_v37 }
 0x3a6   : > { %9890 = vmatprep.mubr.msk.f32.mxu1 %vm279_vm2, %v12220_v13 }
 0x3a9   : > { %9891 = vmatmul.mubr.msk.f32.gmra.mrb[34].mxu1 %vm279_vm2, %v12224_v18 }
 0x3aa   : > { %9895 = vmatprep.mubr.msk.f32.mxu1 %vm279_vm2, %v11977_v20  ;;  %v12292_v20 = vld [vmem:[#allocation2 + $0x180] sm:$0xff] }
 0x3ad   : > { %9896 = vmatmul.mubr.msk.f32.vlgmr.msra.gmra.mrb[4].mxu1 %vm279_vm2, %v11983_v21  ;;  %v12296_v21 = vld [vmem:[#allocation2 + $0x188] sm:$0xff] }
 0x3ae   : > { %9944 = vmatpush3.msra.mxu1 %v12103_v14  ;;  %9898 = vmatprep.mubr.msk.f32.mxu1 %vm279_vm2, %v11987_v22  ;;  %v8545_v14 = vld [vmem:[%s12791_s3 + $0x30] sm:$0xff] }
 0x3af   : > { %9993 = vmatprep.subr.mxu1 %v8512_v12 }
 0x3b1   : > { %9899 = vmatmul.mubr.msk.f32.gmra.mrb[6].mxu1 %vm279_vm2, %v11991_v24 }
 0x3b2   : > { %9901 = vmatprep.mubr.msk.f32.mxu1 %vm279_vm2, %v11995_v55 }
 0x3b5   : > { %9902 = vmatmul.mubr.msk.f32.gmra.mrb[8].mxu1 %vm279_vm2, %v11999_v26 }
 0x3b6   : > { %9904 = vmatprep.mubr.msk.f32.mxu1 %vm279_vm2, %v12003_v28 }
 0x3b9   : > { %9905 = vmatmul.mubr.msk.f32.gmra.mrb[10].mxu1 %vm279_vm2, %v12007_v39 }
 0x3ba   : > { %9907 = vmatprep.mubr.msk.f32.mxu1 %vm279_vm2, %v12011_v41 }
 0x3bd   : > { %9908 = vmatmul.mubr.msk.f32.gmra.mrb[12].mxu1 %vm279_vm2, %v12015_v43 }
 0x3be   : > { %9910 = vmatprep.mubr.msk.f32.mxu1 %vm279_vm2, %v12019_v44 }
 0x3c1   : > { %9911 = vmatmul.mubr.msk.f32.gmra.mrb[14].mxu1 %vm279_vm2, %v12023_v45 }
 0x3c2   : > { %9913 = vmatprep.mubr.msk.f32.mxu1 %vm279_vm2, %v12027_v29 }
 0x3c5   : > { %9914 = vmatmul.mubr.msk.f32.gmra.mrb[16].mxu1 %vm279_vm2, %v12031_v49 }
 0x3c6   : > { %9916 = vmatprep.mubr.msk.f32.mxu1 %vm279_vm2, %v12035_v50 }
 0x3c9   : > { %9917 = vmatmul.mubr.msk.f32.gmra.mrb[18].mxu1 %vm279_vm2, %v12039_v57 }
 0x3ca   : > { %9919 = vmatprep.mubr.msk.f32.mxu1 %vm279_vm2, %v12043_v58 }
 0x3cd   : > { %9920 = vmatmul.mubr.msk.f32.gmra.mrb[20].mxu1 %vm279_vm2, %v12047_v59 }
 0x3ce   : > { %9922 = vmatprep.mubr.msk.f32.mxu1 %vm279_vm2, %v12051_v63 }
 0x3d1   : > { %9923 = vmatmul.mubr.msk.f32.gmra.mrb[22].mxu1 %vm279_vm2, %v12055_v31 }
 0x3d2   : > { %9925 = vmatprep.mubr.msk.f32.mxu1 %vm279_vm2, %v12059_v32 }
 0x3d5   : > { %9926 = vmatmul.mubr.msk.f32.gmra.mrb[24].mxu1 %vm279_vm2, %v12063_v51 }
 0x3d6   : > { %9928 = vmatprep.mubr.msk.f32.mxu1 %vm279_vm2, %v12067_v0 }
 0x3d9   : > { %9929 = vmatmul.mubr.msk.f32.gmra.mrb[26].mxu1 %vm279_vm2, %v12071_v33 }
 0x3da   : > { %9931 = vmatprep.mubr.msk.f32.mxu1 %vm279_vm2, %v12075_v6 }
 0x3dd   : > { %9932 = vmatmul.mubr.msk.f32.gmra.mrb[28].mxu1 %vm279_vm2, %v12079_v52 }
 0x3de   : > { %9934 = vmatprep.mubr.msk.f32.mxu1 %vm279_vm2, %v12083_v4 }
 0x3e1   : > { %9935 = vmatmul.mubr.msk.f32.gmra.mrb[30].mxu1 %vm279_vm2, %v12087_v3 }
 0x3e2   : > { %9937 = vmatprep.mubr.msk.f32.mxu1 %vm279_vm2, %v12091_v53 }
 0x3e5   : > { %9938 = vmatmul.mubr.msk.f32.gmra.mrb[32].mxu1 %vm279_vm2, %v12095_v54 }
 0x3e6   : > { %9940 = vmatprep.mubr.msk.f32.mxu1 %vm279_vm2, %v12292_v20 }
 0x3e9   : > { %9941 = vmatmul.mubr.msk.f32.gmra.mrb[34].mxu1 %vm279_vm2, %v12296_v21 }
 0x3ea   : > { %9945 = vmatprep.mubr.msk.f32.mxu1 %vm279_vm2, %v11794_v7  ;;  %v13040_v7 = vld [vmem:[#allocation6_spill] sm:$0xff] }
 0x3ed   : > { %9946 = vmatmul.mubr.msk.f32.vlgmr.msra.gmra.mrb[4].mxu1 %vm279_vm2, %v11800_v9  ;;  %v13041_v9 = vld [vmem:[#allocation7_spill] sm:$0xff] }
 0x3ee   : > { %9994 = vmatpush3.msra.mxu1 %v8512_v12  ;;  %9948 = vmatprep.mubr.msk.f32.mxu1 %vm279_vm2, %v11806_v15  ;;  %v12363_v15 = vld [vmem:[#allocation2 + $0x181] sm:$0xff] }
 0x3ef   : > { %10043 = vmatprep.subr.mxu1 %v8545_v14  ;;  %v13059_v12 = vld [vmem:[#allocation11_spill] sm:$0xff] }
 0x3f1   : > { %9949 = vmatmul.mubr.msk.f32.gmra.mrb[6].mxu1 %vm279_vm2, %v11812_v17  ;;  %v12367_v17 = vld [vmem:[#allocation2 + $0x189] sm:$0xff] }
 0x3f2   : > { %9951 = vmatprep.mubr.msk.f32.mxu1 %vm279_vm2, %v11818_v23  ;;  %v13042_v23 = vld [vmem:[#allocation25_spill] sm:$0xff] }
 0x3f5   : > { %9952 = vmatmul.mubr.msk.f32.gmra.mrb[8].mxu1 %vm279_vm2, %v11824_v25  ;;  %v8578_v25 = vld [vmem:[%s12791_s3 + $0x38] sm:$0xff] }
 0x3f6   : > { %9954 = vmatprep.mubr.msk.f32.mxu1 %vm279_vm2, %v11830_v40  ;;  %v13043_v40 = vld [vmem:[#allocation26_spill] sm:$0xff] }
 0x3f9   : > { %9955 = vmatmul.mubr.msk.f32.gmra.mrb[10].mxu1 %vm279_vm2, %v11836_v42  ;;  %v13044_v42 = vld [vmem:[#allocation28_spill] sm:$0xff] }
 0x3fa   : > { %9957 = vmatprep.mubr.msk.f32.mxu1 %vm279_vm2, %v11842_v47  ;;  %v13045_v47 = vld [vmem:[#allocation29_spill] sm:$0xff] }
 0x3fd   : > { %9958 = vmatmul.mubr.msk.f32.gmra.mrb[12].mxu1 %vm279_vm2, %v11848_v48  ;;  %v13046_v48 = vld [vmem:[#allocation32_spill] sm:$0xff] }
 0x3fe   : > { %9960 = vmatprep.mubr.msk.f32.mxu1 %vm279_vm2, %v11854_v60  ;;  %v13047_v60 = vld [vmem:[#allocation34_spill] sm:$0xff] }
 0x401   : > { %9961 = vmatmul.mubr.msk.f32.gmra.mrb[14].mxu1 %vm279_vm2, %v11860_v62  ;;  %v13048_v62 = vld [vmem:[#allocation4_spill] sm:$0xff] }
 0x402   : > { %9963 = vmatprep.mubr.msk.f32.mxu1 %vm279_vm2, %v11866_v1  ;;  %v13049_v1 = vld [vmem:[#allocation5_spill] sm:$0xff] }
 0x405   : > { %9964 = vmatmul.mubr.msk.f32.gmra.mrb[16].mxu1 %vm279_vm2, %v11872_v35  ;;  %v13050_v35 = vld [vmem:[#allocation31_spill] sm:$0xff] }
 0x406   : > { %9966 = vmatprep.mubr.msk.f32.mxu1 %vm279_vm2, %v11878_v36  ;;  %v13051_v36 = vld [vmem:[#allocation33_spill] sm:$0xff] }
 0x409   : > { %9967 = vmatmul.mubr.msk.f32.gmra.mrb[18].mxu1 %vm279_vm2, %v11884_v8  ;;  %v13052_v8 = vld [vmem:[#allocation35_spill] sm:$0xff] }
 0x40a   : > { %9969 = vmatprep.mubr.msk.f32.mxu1 %vm279_vm2, %v11890_v16  ;;  %v13053_v16 = vld [vmem:[#allocation36_spill] sm:$0xff] }
 0x40d   : > { %9970 = vmatmul.mubr.msk.f32.gmra.mrb[20].mxu1 %vm279_vm2, %v11896_v19  ;;  %v13054_v19 = vld [vmem:[#allocation38_spill] sm:$0xff] }
 0x40e   : > { %9972 = vmatprep.mubr.msk.f32.mxu1 %vm279_vm2, %v11902_v27  ;;  %v13055_v27 = vld [vmem:[#allocation39_spill] sm:$0xff] }
 0x411   : > { %9973 = vmatmul.mubr.msk.f32.gmra.mrb[22].mxu1 %vm279_vm2, %v11908_v38  ;;  %v13056_v38 = vld [vmem:[#allocation8_spill] sm:$0xff] }
 0x412   : > { %9975 = vmatprep.mubr.msk.f32.mxu1 %vm279_vm2, %v11914_v46  ;;  %v13057_v46 = vld [vmem:[#allocation9_spill] sm:$0xff] }
 0x415   : > { %9976 = vmatmul.mubr.msk.f32.gmra.mrb[24].mxu1 %vm279_vm2, %v11920_v30  ;;  %v13058_v30 = vld [vmem:[#allocation10_spill] sm:$0xff] }
 0x416   : > { %9978 = vmatprep.mubr.msk.f32.mxu1 %vm279_vm2, %v11926_v61 }
 0x419   : > { %9979 = vmatmul.mubr.msk.f32.gmra.mrb[26].mxu1 %vm279_vm2, %v11932_v2 }
 0x41a   : > { %9981 = vmatprep.mubr.msk.f32.mxu1 %vm279_vm2, %v11939_v5 }
 0x41d   : > { %9982 = vmatmul.mubr.msk.f32.gmra.mrb[28].mxu1 %vm279_vm2, %v11944_v34 }
 0x41e   : > { %9984 = vmatprep.mubr.msk.f32.mxu1 %vm279_vm2, %v11952_v10 }
 0x421   : > { %9985 = vmatmul.mubr.msk.f32.gmra.mrb[30].mxu1 %vm279_vm2, %v11956_v11 }
 0x422   : > { %9987 = vmatprep.mubr.msk.f32.mxu1 %vm279_vm2, %v13040_v7 }
 0x425   : > { %9988 = vmatmul.mubr.msk.f32.gmra.mrb[32].mxu1 %vm279_vm2, %v13041_v9 }
 0x426   : > { %9990 = vmatprep.mubr.msk.f32.mxu1 %vm279_vm2, %v12363_v15 }
 0x429   : > { %9991 = vmatmul.mubr.msk.f32.gmra.mrb[34].mxu1 %vm279_vm2, %v12367_v17 }
 0x42a   : > { %9995 = vmatprep.mubr.msk.f32.mxu1 %vm279_vm2, %v13042_v23  ;;  %v13061_v23 = vld [vmem:[#allocation13_spill] sm:$0xff] }
 0x42d   : > { %9996 = vmatmul.mubr.msk.f32.vlgmr.msra.gmra.mrb[4].mxu1 %vm279_vm2, %v13043_v40  ;;  %v13062_v40 = vld [vmem:[#allocation14_spill] sm:$0xff] }
 0x42e   : > { %10044 = vmatpush3.msra.mxu1 %v8545_v14  ;;  %9998 = vmatprep.mubr.msk.f32.mxu1 %vm279_vm2, %v13044_v42  ;;  %v13060_v14 = vld [vmem:[#allocation12_spill] sm:$0xff] }
 0x42f   : > { %10093 = vmatprep.subr.mxu1 %v8578_v25 }
 0x431   : > { %9999 = vmatmul.mubr.msk.f32.gmra.mrb[6].mxu1 %vm279_vm2, %v13045_v47 }
 0x432   : > { %10001 = vmatprep.mubr.msk.f32.mxu1 %vm279_vm2, %v13046_v48 }
 0x435   : > { %10002 = vmatmul.mubr.msk.f32.gmra.mrb[8].mxu1 %vm279_vm2, %v13047_v60 }
 0x436   : > { %10004 = vmatprep.mubr.msk.f32.mxu1 %vm279_vm2, %v13048_v62 }
 0x439   : > { %10005 = vmatmul.mubr.msk.f32.gmra.mrb[10].mxu1 %vm279_vm2, %v13049_v1 }
 0x43a   : > { %10007 = vmatprep.mubr.msk.f32.mxu1 %vm279_vm2, %v13050_v35 }
 0x43d   : > { %10008 = vmatmul.mubr.msk.f32.gmra.mrb[12].mxu1 %vm279_vm2, %v13051_v36 }
 0x43e   : > { %10010 = vmatprep.mubr.msk.f32.mxu1 %vm279_vm2, %v13052_v8 }
 0x441   : > { %10011 = vmatmul.mubr.msk.f32.gmra.mrb[14].mxu1 %vm279_vm2, %v13053_v16 }
 0x442   : > { %10013 = vmatprep.mubr.msk.f32.mxu1 %vm279_vm2, %v13054_v19 }
 0x445   : > { %10014 = vmatmul.mubr.msk.f32.gmra.mrb[16].mxu1 %vm279_vm2, %v13055_v27  ;;  %v13063_v27 = vld [vmem:[#allocation15_spill] sm:$0xff] }
 0x446   : > { %10016 = vmatprep.mubr.msk.f32.mxu1 %vm279_vm2, %v13056_v38  ;;  %v13064_v38 = vld [vmem:[#allocation16_spill] sm:$0xff] }
 0x449   : > { %10017 = vmatmul.mubr.msk.f32.gmra.mrb[18].mxu1 %vm279_vm2, %v13057_v46  ;;  %v13065_v46 = vld [vmem:[#allocation17_spill] sm:$0xff] }
 0x44a   : > { %10019 = vmatprep.mubr.msk.f32.mxu1 %vm279_vm2, %v13058_v30  ;;  %v13066_v30 = vld [vmem:[#allocation18_spill] sm:$0xff] }
 0x44d   : > { %10020 = vmatmul.mubr.msk.f32.gmra.mrb[20].mxu1 %vm279_vm2, %v13059_v12 }
 0x44e   : > { %10022 = vmatprep.mubr.msk.f32.mxu1 %vm279_vm2, %v13060_v14  ;;  %v13067_v14 = vld [vmem:[#allocation19_spill] sm:$0xff] }
 0x451   : > { %10023 = vmatmul.mubr.msk.f32.gmra.mrb[22].mxu1 %vm279_vm2, %v13061_v23 }
 0x452   : > { %10025 = vmatprep.mubr.msk.f32.mxu1 %vm279_vm2, %v13062_v40 }
 0x455   : > { %10026 = vmatmul.mubr.msk.f32.gmra.mrb[24].mxu1 %vm279_vm2, %v13063_v27 }
 0x456   : > { %10028 = vmatprep.mubr.msk.f32.mxu1 %vm279_vm2, %v13064_v38  ;;  %v12434_v38 = vld [vmem:[#allocation2 + $0x182] sm:$0xff] }
 0x457   : > { %13068 = vst [vmem:[#allocation23_spill] sm:$0xff] %v12434_v38 }
 0x459   : > { %10029 = vmatmul.mubr.msk.f32.gmra.mrb[26].mxu1 %vm279_vm2, %v13065_v46 }
 0x45a   : > { %10031 = vmatprep.mubr.msk.f32.mxu1 %vm279_vm2, %v13066_v30  ;;  %v12438_v30 = vld [vmem:[#allocation2 + $0x18a] sm:$0xff] }
 0x45b   : > { %13069 = vst [vmem:[#allocation24_spill] sm:$0xff] %v12438_v30 }
 0x45d   : > { %10032 = vmatmul.mubr.msk.f32.gmra.mrb[28].mxu1 %vm279_vm2, %v12208_v56 }
 0x45e   : > { %10034 = vmatprep.mubr.msk.f32.mxu1 %vm279_vm2, %v13067_v14 }
 0x461   : > { %10035 = vmatmul.mubr.msk.f32.gmra.mrb[30].mxu1 %vm279_vm2, %v12216_v37 }
 0x462   : > { %10037 = vmatprep.mubr.msk.f32.mxu1 %vm279_vm2, %v12220_v13  ;;  %v8648_v13 = vld [vmem:[%s10805_s10 + $0x61] ss:$2 sm:$0xff] }
 0x465   : > { %10038 = vmatmul.mubr.msk.f32.gmra.mrb[32].mxu1 %vm279_vm2, %v12224_v18  ;;  %v7591_v18 = vld [vmem:[%s12793_s5] sm:$0xf] }
 0x466   : > { %10040 = vmatprep.mubr.msk.f32.mxu1 %vm279_vm2, %v12434_v38  ;;  %10193 = vmatprep.subr.msk.mxu0 %vm489_vm0, %v7591_v18  ;;  %v12451_v38 = vld [vmem:[%s12791_s3 + $0x40] sm:$0xff] }
 0x467   : > { %10194 = vmatpush3.msk.msra.mxu0 %vm489_vm0, %v7591_v18  ;;  %v8661_v18 = vld [vmem:[%s10805_s10 + $0x1a] ss:$2 sm:$0xff] }
 0x469   : > { %10041 = vmatmul.mubr.msk.f32.gmra.mrb[34].mxu1 %vm279_vm2, %v12438_v30  ;;  %v8647_v30 = vld [vmem:[%s10805_s10 + $0x49] ss:$2 sm:$0xff] }
 0x46a   : > { %10045 = vmatprep.mubr.msk.f32.mxu1 %vm279_vm2, %v11987_v22  ;;  %v8645_v22 = vld [vmem:[%s10805_s10 + $0x19] ss:$2 sm:$0xff] }
 0x46d   : > { %10046 = vmatmul.mubr.msk.f32.vlgmr.msra.gmra.mrb[4].mxu1 %vm279_vm2, %v11991_v24  ;;  %v8646_v24 = vld [vmem:[%s10805_s10 + $0x31] ss:$2 sm:$0xff] }
 0x46e   : > { %10094 = vmatpush3.msra.mxu1 %v8578_v25  ;;  %10048 = vmatprep.mubr.msk.f32.mxu1 %vm279_vm2, %v11995_v55  ;;  %v8662_v55 = vld [vmem:[%s10805_s10 + $0x32] ss:$2 sm:$0xff]  ;;  %v7559_v25 = vadd.f32 %v8661_v18, %v8645_v22 }
 0x46f   : > { %10143 = vmatprep.subr.mxu1 %v12451_v38 }
 0x471   : > { %10049 = vmatmul.mubr.msk.f32.gmra.mrb[6].mxu1 %vm279_vm2, %v11999_v26  ;;  %v7560_v26 = vadd.f32 %v8662_v55, %v8646_v24  ;;  %v8667_v24 = vld [vmem:[%s10805_s10 + $0xaa] ss:$2 sm:$0xff] }
 0x472   : > { %10051 = vmatprep.mubr.msk.f32.mxu1 %vm279_vm2, %v12003_v28  ;;  %v8663_v28 = vld [vmem:[%s10805_s10 + $0x4a] ss:$2 sm:$0xff] }
 0x473   : > { %v7561_v37 = vadd.f32 %v8663_v28, %v8647_v30  ;;  %v7575_v14 = vadd.f32 %v7560_v26, %v7559_v25  ;;  %v8651_v30 = vld [vmem:[%s10805_s10 + $0xa9] ss:$2 sm:$0xff]  ;;  %v8669_v26 = vld [vmem:[%s10805_s10 + $0xda] ss:$2 sm:$0xff] }
 0x474   : > { %v7565_v18 = vadd.f32 %v8667_v24, %v8651_v30  ;;  %v8670_v28 = vld [vmem:[%s10805_s10 + $0xf2] ss:$2 sm:$0xff] }
 0x475   : > { %10052 = vmatmul.mubr.msk.f32.gmra.mrb[8].mxu1 %vm279_vm2, %v12007_v39  ;;  %v8664_v39 = vld [vmem:[%s10805_s10 + $0x62] ss:$2 sm:$0xff] }
 0x476   : > { %10054 = vmatprep.mubr.msk.f32.mxu1 %vm279_vm2, %v12011_v41  ;;  %v7562_v41 = vadd.f32 %v8664_v39, %v8648_v13  ;;  %v8666_v13 = vld [vmem:[%s10805_s10 + $0x92] ss:$2 sm:$0xff]  ;;  %v8655_v39 = vld [vmem:[%s10805_s10 + $0x109] ss:$2 sm:$0xff] }
 0x477   : > { %v8675_v24 = vld [vmem:[%s10805_s10 + $0x16a] ss:$2 sm:$0xff] }
 0x479   : > { %10055 = vmatmul.mubr.msk.f32.gmra.mrb[10].mxu1 %vm279_vm2, %v12015_v43  ;;  %v7576_v43 = vadd.f32 %v7562_v41, %v7561_v37  ;;  %v8665_v37 = vld [vmem:[%s10805_s10 + $0x7a] ss:$2 sm:$0xff]  ;;  %v8656_v41 = vld [vmem:[%s10805_s10 + $0x121] ss:$2 sm:$0xff] }
 0x47a   : > { %10057 = vmatprep.mubr.msk.f32.mxu1 %vm279_vm2, %v12019_v44  ;;  %v7583_v44 = vmul.f32 0.25, %v7575_v14  ;;  %v8652_v14 = vld [vmem:[%s10805_s10 + $0xc1] ss:$2 sm:$0xff] }
 0x47b   : > { %v7584_v22 = vmul.f32 0.25, %v7576_v43  ;;  %v8671_v43 = vld [vmem:[%s10805_s10 + $0x10a] ss:$2 sm:$0xff] }
 0x47c   : > { %10195 = vmatprep.mubr.msk.f32.mxu0 %vm392_vm1, %v7583_v44  ;;  %v8672_v44 = vld [vmem:[%s10805_s10 + $0x122] ss:$2 sm:$0xff] }
 0x47d   : > { %10058 = vmatmul.mubr.msk.f32.gmra.mrb[12].mxu1 %vm279_vm2, %v12023_v45  ;;  %10196 = vmatmul.mubr.msk.f32.vlgmr.msra.gmra.mrb[32].mxu0 %vm392_vm1, %v7584_v22  ;;  %v8649_v45 = vld [vmem:[%s10805_s10 + $0x79] ss:$2 sm:$0xff]  ;;  %v7570_v22 = vadd.f32 %v8672_v44, %v8656_v41 }
 0x47e   : > { %10060 = vmatprep.mubr.msk.f32.mxu1 %vm279_vm2, %v12027_v29  ;;  %v8650_v29 = vld [vmem:[%s10805_s10 + $0x91] ss:$2 sm:$0xff]  ;;  %v6535_v44 = vld [vmem:[#allocation2 + $0xc1] sm:$0xff] }
 0x47f   : > { %v6532_v41 = vld [vmem:[#allocation2 + $0x99] sm:$0xff] }
 0x481   : > { %10061 = vmatmul.mubr.msk.f32.gmra.mrb[14].mxu1 %vm279_vm2, %v12031_v49  ;;  %v7563_v49 = vadd.f32 %v8665_v37, %v8649_v45  ;;  %v8657_v37 = vld [vmem:[%s10805_s10 + $0x139] ss:$2 sm:$0xff] }
 0x482   : > { %10063 = vmatprep.mubr.msk.f32.mxu1 %vm279_vm2, %v12035_v50  ;;  %v7564_v50 = vadd.f32 %v8666_v13, %v8650_v29  ;;  %v8658_v13 = vld [vmem:[%s10805_s10 + $0x151] ss:$2 sm:$0xff] }
 0x484   : > { %v7577_v55 = vadd.f32 %v7564_v50, %v7563_v49  ;;  %v8673_v49 = vld [vmem:[%s10805_s10 + $0x13a] ss:$2 sm:$0xff]  ;;  %v8660_v50 = vld [vmem:[%s10805_s10 + $0x181] ss:$2 sm:$0xff] }
 0x485   : > { %10064 = vmatmul.mubr.msk.f32.gmra.mrb[16].mxu1 %vm279_vm2, %v12039_v57  ;;  %v8668_v57 = vld [vmem:[%s10805_s10 + $0xc2] ss:$2 sm:$0xff]  ;;  %v7571_v30 = vadd.f32 %v8673_v49, %v8657_v37 }
 0x486   : > { %10066 = vmatprep.mubr.msk.f32.mxu1 %vm279_vm2, %v12043_v58  ;;  %v7566_v58 = vadd.f32 %v8668_v57, %v8652_v14  ;;  %v8659_v14 = vld [vmem:[%s10805_s10 + $0x169] ss:$2 sm:$0xff]  ;;  %v8676_v57 = vld [vmem:[%s10805_s10 + $0x182] ss:$2 sm:$0xff] }
 0x489   : > { %10067 = vmatmul.mubr.msk.f32.gmra.mrb[18].mxu1 %vm279_vm2, %v12047_v59  ;;  %v7578_v59 = vadd.f32 %v7566_v58, %v7565_v18  ;;  %v7573_v18 = vadd.f32 %v8675_v24, %v8659_v14  ;;  %v6524_v58 = vld [vmem:[#allocation2 + $0x39] sm:$0xff] }
 0x48a   : > { %10069 = vmatprep.mubr.msk.f32.mxu1 %vm279_vm2, %v12051_v63  ;;  %v7585_v63 = vmul.f32 0.25, %v7577_v55 }
 0x48b   : > { %v7586_v25 = vmul.f32 0.25, %v7578_v59  ;;  %v6525_v59 = vld [vmem:[#allocation2 + $0x49] sm:$0xff] }
 0x48c   : > { %10198 = vmatprep.mubr.msk.f32.mxu0 %vm392_vm1, %v7585_v63 }
 0x48d   : > { %10070 = vmatmul.mubr.msk.f32.gmra.mrb[20].mxu1 %vm279_vm2, %v12055_v31  ;;  %10199 = vmatmul.mubr.msk.f32.gmra.mrb[34].mxu0 %vm392_vm1, %v7586_v25  ;;  %v8653_v31 = vld [vmem:[%s10805_s10 + $0xd9] ss:$2 sm:$0xff] }
 0x48e   : > { %10072 = vmatprep.mubr.msk.f32.mxu1 %vm279_vm2, %v12059_v32  ;;  %v8654_v32 = vld [vmem:[%s10805_s10 + $0xf1] ss:$2 sm:$0xff] }
 0x491   : > { %10073 = vmatmul.mubr.msk.f32.gmra.mrb[22].mxu1 %vm279_vm2, %v12063_v51  ;;  %v7567_v51 = vadd.f32 %v8669_v26, %v8653_v31  ;;  %v6527_v26 = vld [vmem:[#allocation2 + $0x61] sm:$0xff] }
 0x492   : > { %10075 = vmatprep.mubr.msk.f32.mxu1 %vm279_vm2, %v12067_v0  ;;  %v7568_v0 = vadd.f32 %v8670_v28, %v8654_v32  ;;  %v6526_v32 = vld [vmem:[#allocation2 + $0x51] sm:$0xff]  ;;  %v6528_v28 = vld [vmem:[#allocation2 + $0x69] sm:$0xff] }
 0x495   : > { %10076 = vmatmul.mubr.msk.f32.gmra.mrb[24].mxu1 %vm279_vm2, %v12071_v33  ;;  %v7569_v33 = vadd.f32 %v8671_v43, %v8655_v39  ;;  %v6531_v39 = vld [vmem:[#allocation2 + $0x91] sm:$0xff] }
 0x496   : > { %10078 = vmatprep.mubr.msk.f32.mxu1 %vm279_vm2, %v12075_v6  ;;  %v7579_v6 = vadd.f32 %v7568_v0, %v7567_v51  ;;  %v6529_v51 = vld [vmem:[#allocation2 + $0x79] sm:$0xff]  ;;  %v6533_v0 = vld [vmem:[#allocation2 + $0xa9] sm:$0xff]  ;;  %v6534_v43 = vld [vmem:[#allocation2 + $0xb1] sm:$0xff] }
 0x498   : > { %v7587_v45 = vmul.f32 0.25, %v7579_v6  ;;  %v6538_v6 = vld [vmem:[#allocation2 + $0xe1] sm:$0xff] }
 0x499   : > { %10079 = vmatmul.mubr.msk.f32.gmra.mrb[26].mxu1 %vm279_vm2, %v12079_v52  ;;  %v7580_v52 = vadd.f32 %v7570_v22, %v7569_v33  ;;  %v6536_v33 = vld [vmem:[#allocation2 + $0xc9] sm:$0xff]  ;;  %v6537_v22 = vld [vmem:[#allocation2 + $0xd9] sm:$0xff] }
 0x49a   : > { %10081 = vmatprep.mubr.msk.f32.mxu1 %vm279_vm2, %v12083_v4  ;;  %10201 = vmatprep.mubr.msk.f32.mxu0 %vm392_vm1, %v7587_v45  ;;  %v6166_v4 = vld [vmem:[#allocation2 + $0x198] sm:$0xff] }
 0x49b   : > { %v7588_v29 = vmul.f32 0.25, %v7580_v52  ;;  %v6539_v52 = vld [vmem:[#allocation2 + $0xf1] sm:$0xff]  ;;  %v6540_v45 = vld [vmem:[#allocation2 + $0xf9] sm:$0xff] }
 0x49d   : > { %10082 = vmatmul.mubr.msk.f32.gmra.mrb[28].mxu1 %vm279_vm2, %v12087_v3  ;;  %10202 = vmatmul.mubr.msk.f32.gmra.mrb[36].mxu0 %vm392_vm1, %v7588_v29  ;;  %v6167_v3 = vld [vmem:[#allocation2 + $0x1a0] sm:$0xff]  ;;  %v6541_v29 = vld [vmem:[#allocation2 + $0x109] sm:$0xff] }
 0x49e   : > { %10084 = vmatprep.mubr.msk.f32.mxu1 %vm279_vm2, %v12091_v53  ;;  %v6523_v53 = vld [vmem:[#allocation2 + $0x31] sm:$0xff] }
 0x4a1   : > { %10085 = vmatmul.mubr.msk.f32.gmra.mrb[30].mxu1 %vm279_vm2, %v12095_v54  ;;  %v8674_v54 = vld [vmem:[%s10805_s10 + $0x152] ss:$2 sm:$0xff] }
 0x4a2   : > { %10087 = vmatprep.mubr.msk.f32.mxu1 %vm279_vm2, %v12292_v20  ;;  %v7572_v20 = vadd.f32 %v8674_v54, %v8658_v13 }
 0x4a4   : > { %v7581_v55 = vadd.f32 %v7572_v20, %v7571_v30 }
 0x4a5   : > { %10088 = vmatmul.mubr.msk.f32.gmra.mrb[32].mxu1 %vm279_vm2, %v12296_v21  ;;  %v7574_v21 = vadd.f32 %v8676_v57, %v8660_v50 }
 0x4a6   : > { %10090 = vmatprep.mubr.msk.f32.mxu1 %vm279_vm2, %v6166_v4  ;;  %v7589_v25 = vmul.f32 0.25, %v7581_v55  ;;  %v6542_v4 = vld [vmem:[#allocation2 + $0x111] sm:$0xff] }
 0x4a7   : > { %v7582_v63 = vadd.f32 %v7574_v21, %v7573_v18 }
 0x4a8   : > { %10204 = vmatprep.mubr.msk.f32.mxu0 %vm392_vm1, %v7589_v25 }
 0x4a9   : > { %10091 = vmatmul.mubr.msk.f32.gmra.mrb[34].mxu1 %vm279_vm2, %v6167_v3  ;;  %v7590_v31 = vmul.f32 0.25, %v7582_v63 }
 0x4aa   : > { %10095 = vmatprep.mubr.msk.f32.mxu1 %vm279_vm2, %v6523_v53 }
 0x4ab   : > { %10205 = vmatmul.mubr.msk.f32.gmra.mrb[38].mxu0 %vm392_vm1, %v7590_v31 }
 0x4ad   : > { %10096 = vmatmul.mubr.msk.f32.vlgmr.msra.gmra.mrb[4].mxu1 %vm279_vm2, %v6524_v58 }
 0x4ae   : > { %10144 = vmatpush3.msra.mxu1 %v12451_v38  ;;  %10098 = vmatprep.mubr.msk.f32.mxu1 %vm279_vm2, %v6525_v59  ;;  %v6530_v38 = vld [vmem:[#allocation2 + $0x81] sm:$0xff] }
 0x4b1   : > { %10099 = vmatmul.mubr.msk.f32.gmra.mrb[6].mxu1 %vm279_vm2, %v6526_v32  ;;  %v12694_v32 = vld [vmem:[%s12794_s6] ss:$0 sm:$0xff] }
 0x4b2   : > { %10101 = vmatprep.mubr.msk.f32.mxu1 %vm279_vm2, %v6527_v26 }
 0x4b5   : > { %10102 = vmatmul.mubr.msk.f32.gmra.mrb[8].mxu1 %vm279_vm2, %v6528_v28 }
 0x4b6   : > { %10104 = vmatprep.mubr.msk.f32.mxu1 %vm279_vm2, %v6529_v51 }
 0x4b9   : > { %10105 = vmatmul.mubr.msk.f32.gmra.mrb[10].mxu1 %vm279_vm2, %v6530_v38 }
 0x4ba   : > { %10107 = vmatprep.mubr.msk.f32.mxu1 %vm279_vm2, %v6531_v39 }
 0x4bd   : > { %10108 = vmatmul.mubr.msk.f32.gmra.mrb[12].mxu1 %vm279_vm2, %v6532_v41 }
 0x4be   : > { %10110 = vmatprep.mubr.msk.f32.mxu1 %vm279_vm2, %v6533_v0 }
 0x4c1   : > { %10111 = vmatmul.mubr.msk.f32.gmra.mrb[14].mxu1 %vm279_vm2, %v6534_v43 }
 0x4c2   : > { %10113 = vmatprep.mubr.msk.f32.mxu1 %vm279_vm2, %v6535_v44 }
 0x4c5   : > { %10114 = vmatmul.mubr.msk.f32.gmra.mrb[16].mxu1 %vm279_vm2, %v6536_v33 }
 0x4c6   : > { %10116 = vmatprep.mubr.msk.f32.mxu1 %vm279_vm2, %v6537_v22 }
 0x4c9   : > { %10117 = vmatmul.mubr.msk.f32.gmra.mrb[18].mxu1 %vm279_vm2, %v6538_v6 }
 0x4ca   : > { %10119 = vmatprep.mubr.msk.f32.mxu1 %vm279_vm2, %v6539_v52 }
 0x4cd   : > { %10120 = vmatmul.mubr.msk.f32.gmra.mrb[20].mxu1 %vm279_vm2, %v6540_v45 }
 0x4ce   : > { %10122 = vmatprep.mubr.msk.f32.mxu1 %vm279_vm2, %v6541_v29 }
 0x4d1   : > { %10123 = vmatmul.mubr.msk.f32.gmra.mrb[22].mxu1 %vm279_vm2, %v6542_v4 }
 0x4d2   : > { %10125 = vmatprep.mubr.msk.f32.mxu1 %vm279_vm2, %v11926_v61  ;;  %v6553_v61 = vld [vmem:[#allocation2 + $0x199] sm:$0xff] }
 0x4d5   : > { %10126 = vmatmul.mubr.msk.f32.gmra.mrb[24].mxu1 %vm279_vm2, %v11932_v2  ;;  %v6554_v2 = vld [vmem:[#allocation2 + $0x1a1] sm:$0xff] }
 0x4d6   : > { %10128 = vmatprep.mubr.msk.f32.mxu1 %vm279_vm2, %v11939_v5  ;;  %v13070_v5 = vld [vmem:[#allocation39_spill] sm:$0xff] }
 0x4d9   : > { %10129 = vmatmul.mubr.msk.f32.gmra.mrb[26].mxu1 %vm279_vm2, %v11944_v34  ;;  %v13071_v34 = vld [vmem:[#allocation8_spill] sm:$0xff] }
 0x4da   : > { %10131 = vmatprep.mubr.msk.f32.mxu1 %vm279_vm2, %v11952_v10  ;;  %v13072_v10 = vld [vmem:[#allocation9_spill] sm:$0xff] }
 0x4dd   : > { %10132 = vmatmul.mubr.msk.f32.gmra.mrb[28].mxu1 %vm279_vm2, %v11956_v11  ;;  %v13073_v11 = vld [vmem:[#allocation10_spill] sm:$0xff] }
 0x4de   : > { %10134 = vmatprep.mubr.msk.f32.mxu1 %vm279_vm2, %v13040_v7  ;;  %v13074_v7 = vld [vmem:[#allocation12_spill] sm:$0xff] }
 0x4e1   : > { %10135 = vmatmul.mubr.msk.f32.gmra.mrb[30].mxu1 %vm279_vm2, %v13041_v9  ;;  %v13075_v9 = vld [vmem:[#allocation16_spill] sm:$0xff] }
 0x4e2   : > { %10137 = vmatprep.mubr.msk.f32.mxu1 %vm279_vm2, %v12363_v15  ;;  %v13076_v15 = vld [vmem:[#allocation18_spill] sm:$0xff] }
 0x4e5   : > { %10138 = vmatmul.mubr.msk.f32.gmra.mrb[32].mxu1 %vm279_vm2, %v12367_v17  ;;  %v13077_v17 = vld [vmem:[#allocation19_spill] sm:$0xff] }
 0x4e6   : > { %10140 = vmatprep.mubr.msk.f32.mxu1 %vm279_vm2, %v6553_v61 }
 0x4e9   : > { %10141 = vmatmul.mubr.msk.f32.gmra.mrb[34].mxu1 %vm279_vm2, %v6554_v2 }
 0x4ea   : > { %10145 = vmatprep.mubr.msk.f32.mxu1 %vm279_vm2, %v13044_v42  ;;  %v13078_v42 = vld [vmem:[#allocation20_spill] sm:$0xff] }
 0x4ed   : > { %10146 = vmatmul.mubr.msk.f32.vlgmr.msra.gmra.mrb[4].mxu1 %vm279_vm2, %v13045_v47  ;;  %v13079_v47 = vld [vmem:[#allocation21_spill] sm:$0xff] }
 0x4ee   : > { %10148 = vmatprep.mubr.msk.f32.mxu1 %vm279_vm2, %v13046_v48  ;;  %v13080_v48 = vld [vmem:[#allocation22_spill] sm:$0xff] }
 0x4f1   : > { %10149 = vmatmul.mubr.msk.f32.gmra.mrb[6].mxu1 %vm279_vm2, %v13047_v60  ;;  %v13081_v60 = vld [vmem:[#allocation23_spill] sm:$0xff] }
 0x4f2   : > { %10151 = vmatprep.mubr.msk.f32.mxu1 %vm279_vm2, %v13048_v62  ;;  %v6940_v62 = vld [vmem:[#allocation2 + $0x19a] sm:$0xff] }
 0x4f5   : > { %10152 = vmatmul.mubr.msk.f32.gmra.mrb[8].mxu1 %vm279_vm2, %v13049_v1  ;;  %v13082_v1 = vld [vmem:[#allocation24_spill] sm:$0xff] }
 0x4f6   : > { %10154 = vmatprep.mubr.msk.f32.mxu1 %vm279_vm2, %v13050_v35 }
 0x4f9   : > { %10155 = vmatmul.mubr.msk.f32.gmra.mrb[10].mxu1 %vm279_vm2, %v13051_v36 }
 0x4fa   : > { %10157 = vmatprep.mubr.msk.f32.mxu1 %vm279_vm2, %v13052_v8 }
 0x4fd   : > { %10158 = vmatmul.mubr.msk.f32.gmra.mrb[12].mxu1 %vm279_vm2, %v13053_v16 }
 0x4fe   : > { %10160 = vmatprep.mubr.msk.f32.mxu1 %vm279_vm2, %v13054_v19 }
 0x501   : > { %10161 = vmatmul.mubr.msk.f32.gmra.mrb[14].mxu1 %vm279_vm2, %v13070_v5 }
 0x502   : > { %10163 = vmatprep.mubr.msk.f32.mxu1 %vm279_vm2, %v13071_v34 }
 0x505   : > { %10164 = vmatmul.mubr.msk.f32.gmra.mrb[16].mxu1 %vm279_vm2, %v13072_v10 }
 0x506   : > { %10166 = vmatprep.mubr.msk.f32.mxu1 %vm279_vm2, %v13073_v11 }
 0x509   : > { %10167 = vmatmul.mubr.msk.f32.gmra.mrb[18].mxu1 %vm279_vm2, %v13059_v12 }
 0x50a   : > { %10169 = vmatprep.mubr.msk.f32.mxu1 %vm279_vm2, %v13074_v7 }
 0x50d   : > { %10170 = vmatmul.mubr.msk.f32.gmra.mrb[20].mxu1 %vm279_vm2, %v13061_v23  ;;  %v12677_v23 = vld [vmem:[%s12792_s4] ss:$0 sm:$0xff] }
 0x50e   : > { %10172 = vmatprep.mubr.msk.f32.mxu1 %vm279_vm2, %v13062_v40 }
 0x511   : > { %10173 = vmatmul.mubr.msk.f32.gmra.mrb[22].mxu1 %vm279_vm2, %v13063_v27 }
 0x512   : > { %10175 = vmatprep.mubr.msk.f32.mxu1 %vm279_vm2, %v13075_v9 }
 0x515   : > { %10176 = vmatmul.mubr.msk.f32.gmra.mrb[24].mxu1 %vm279_vm2, %v13065_v46 }
 0x516   : > { %10178 = vmatprep.mubr.msk.f32.mxu1 %vm279_vm2, %v13076_v15 }
 0x519   : > { %10179 = vmatmul.mubr.msk.f32.gmra.mrb[26].mxu1 %vm279_vm2, %v12208_v56  ;;  %v6941_v56 = vld [vmem:[#allocation2 + $0x1a2] sm:$0xff] }
 0x51a   : > { %10181 = vmatprep.mubr.msk.f32.mxu1 %vm279_vm2, %v13077_v17 }
 0x51d   : > { %10182 = vmatmul.mubr.msk.f32.gmra.mrb[28].mxu1 %vm279_vm2, %v13078_v42 }
 0x51e   : > { %10184 = vmatprep.mubr.msk.f32.mxu1 %vm279_vm2, %v13079_v47 }
 0x521   : > { %10185 = vmatmul.mubr.msk.f32.gmra.mrb[30].mxu1 %vm279_vm2, %v13080_v48 }
 0x522   : > { %10187 = vmatprep.mubr.msk.f32.mxu1 %vm279_vm2, %v13081_v60 }
 0x525   : > { %10188 = vmatmul.mubr.msk.f32.gmra.mrb[32].mxu1 %vm279_vm2, %v13082_v1 }
 0x526   : > { %10190 = vmatprep.mubr.msk.f32.mxu1 %vm279_vm2, %v6940_v62 }
 0x529   : > { %10191 = vmatmul.mubr.msk.f32.gmra.mrb[34].mxu1 %vm279_vm2, %v6941_v56 }
 0x550   : > { %v12660_v35 = vpop.f32.mrb[32].mxu0 }
 0x551   : > { %v7692_v36 = vpop.f32.mrb[33].mxu0  ;;  %v7698_v42 = vadd.f32 %v12660_v35, %v12694_v32 }
 0x552   : > { %v7693_v0 = vadd.f32 %v12694_v32, %v7692_v36 }
 0x554   : > { %v7731_v2 = vmax.f32 %v7693_v0, 0.0 }
 0x560   : > { %v12662_v8 = vpop.f32.mrb[34].mxu0 }
 0x561   : > { %v12664_v16 = vpop.f32.mrb[35].mxu0 }
 0x570   : > { %v12666_v19 = vpop.f32.mrb[36].mxu0 }
 0x571   : > { %v12668_v27 = vpop.f32.mrb[37].mxu0 }
 0x57e   : > { %v12670_v46 = vpop.f32.mrb[38].mxu0 }
 0x57f   : > { %v12672_v12 = vpop.f32.mrb[39].mxu0 }
 0x5c0   : > { %v10147_v40 = vpop.f32.mrb[4].mxu1 }
 0x5c1   : > { %v7305_v3 = vadd.f32 %v10147_v40, %v12677_v23  ;;  %v7106_v53 = vpop.f32.mrb[5].mxu1 }
 0x5c2   : > { %v7304_v37 = vadd.f32 %v12677_v23, %v7106_v53 }
 0x5c3   : > { %v7337_v13 = vmax.f32 %v7305_v3, 0.0 }
 0x5c4   : > { %v7336_v49 = vmax.f32 %v7304_v37, 0.0  ;;  %v10150_v54 = vpop.f32.mrb[6].mxu1 }
 0x5c5   : > { %7369 = vst.msk [vmem:[#allocation3 + $0x8] sm:$0xff] %vm279_vm2, %v7337_v13  ;;  %v7307_v30 = vadd.f32 %v10150_v54, %v12677_v23  ;;  %v7116_v14 = vpop.f32.mrb[7].mxu1  ;;  %v7732_v13 = vmax.f32 %v7698_v42, 0.0 }
 0x5c6   : > { %7368 = vst.msk [vmem:[#allocation3] sm:$0xff] %vm279_vm2, %v7336_v49  ;;  %v7306_v50 = vadd.f32 %v12677_v23, %v7116_v14 }
 0x5c7   : > { %v7339_v20 = vmax.f32 %v7307_v30, 0.0 }
 0x5c8   : > { %v7338_v24 = vmax.f32 %v7306_v50, 0.0  ;;  %v10153_v57 = vpop.f32.mrb[8].mxu1 }
 0x5c9   : > { %7371 = vst.msk [vmem:[#allocation3 + $0x18] sm:$0xff] %vm279_vm2, %v7339_v20  ;;  %v7309_v18 = vadd.f32 %v10153_v57, %v12677_v23  ;;  %v7126_v21 = vpop.f32.mrb[9].mxu1 }
 0x5ca   : > { %7370 = vst.msk [vmem:[#allocation3 + $0x10] sm:$0xff] %vm279_vm2, %v7338_v24  ;;  %v7308_v58 = vadd.f32 %v12677_v23, %v7126_v21 }
 0x5cb   : > { %v7341_v55 = vmax.f32 %v7309_v18, 0.0 }
 0x5cc   : > { %v7340_v59 = vmax.f32 %v7308_v58, 0.0  ;;  %v10156_v63 = vpop.f32.mrb[10].mxu1 }
 0x5cd   : > { %7373 = vst.msk [vmem:[#allocation3 + $0x28] sm:$0xff] %vm279_vm2, %v7341_v55  ;;  %v7311_v25 = vadd.f32 %v10156_v63, %v12677_v23  ;;  %v7136_v31 = vpop.f32.mrb[11].mxu1  ;;  %v7400_v51 = vld [vmem:[#allocation3] ss:$2 sm:$0xff]  ;;  %v7432_v38 = vld [vmem:[#allocation3 + $0x1] ss:$2 sm:$0xff] }
 0x5ce   : > { %7372 = vst.msk [vmem:[#allocation3 + $0x20] sm:$0xff] %vm279_vm2, %v7340_v59  ;;  %v7310_v26 = vadd.f32 %v12677_v23, %v7136_v31  ;;  %v7463_v52 = vadd.f32 %v7432_v38, %v7400_v51  ;;  %v7703_v59 = vadd.f32 %v12694_v32, %v12664_v16 }
 0x5cf   : > { %v7343_v28 = vmax.f32 %v7311_v25, 0.0 }
 0x5d0   : > { %v7342_v39 = vmax.f32 %v7310_v26, 0.0  ;;  %v10159_v41 = vpop.f32.mrb[12].mxu1 }
 0x5d1   : > { %7375 = vst.msk [vmem:[#allocation3 + $0x38] sm:$0xff] %vm279_vm2, %v7343_v28  ;;  %v7313_v43 = vadd.f32 %v10159_v41, %v12677_v23  ;;  %v7146_v44 = vpop.f32.mrb[13].mxu1  ;;  %v7402_v33 = vld [vmem:[#allocation3 + $0x10] ss:$2 sm:$0xff]  ;;  %v7434_v22 = vld [vmem:[#allocation3 + $0x11] ss:$2 sm:$0xff] }
 0x5d2   : > { %7374 = vst.msk [vmem:[#allocation3 + $0x30] sm:$0xff] %vm279_vm2, %v7342_v39  ;;  %v7312_v6 = vadd.f32 %v12677_v23, %v7146_v44  ;;  %v7464_v45 = vadd.f32 %v7434_v22, %v7402_v33 }
 0x5d3   : > { %v7345_v29 = vmax.f32 %v7313_v43, 0.0  ;;  %v7733_v43 = vmax.f32 %v7703_v59, 0.0 }
 0x5d4   : > { %v7344_v4 = vmax.f32 %v7312_v6, 0.0  ;;  %v7479_v61 = vadd.f32 %v7464_v45, %v7463_v52  ;;  %v10162_v5 = vpop.f32.mrb[14].mxu1 }
 0x5d5   : > { %7377 = vst.msk [vmem:[#allocation3 + $0x48] sm:$0xff] %vm279_vm2, %v7345_v29  ;;  %v7315_v34 = vadd.f32 %v10162_v5, %v12677_v23  ;;  %v7156_v10 = vpop.f32.mrb[15].mxu1  ;;  %v7404_v9 = vld [vmem:[#allocation3 + $0x20] ss:$2 sm:$0xff]  ;;  %v7436_v15 = vld [vmem:[#allocation3 + $0x21] ss:$2 sm:$0xff] }
 0x5d6   : > { %7376 = vst.msk [vmem:[#allocation3 + $0x40] sm:$0xff] %vm279_vm2, %v7344_v4  ;;  %v7487_v11 = vmul.f32 0.25, %v7479_v61  ;;  %v7314_v7 = vadd.f32 %v12677_v23, %v7156_v10  ;;  %v7465_v40 = vadd.f32 %v7436_v15, %v7404_v9  ;;  %v7708_v4 = vadd.f32 %v12662_v8, %v12694_v32 }
 0x5d7   : > { %v7347_v17 = vmax.f32 %v7315_v34, 0.0 }
 0x5d8   : > { %v7739_v47 = vadd.f32 %v7731_v2, %v7487_v11  ;;  %v7346_v48 = vmax.f32 %v7314_v7, 0.0  ;;  %v10165_v60 = vpop.f32.mrb[16].mxu1 }
 0x5d9   : > { %v7406_v62 = vld [vmem:[#allocation3 + $0x30] ss:$2 sm:$0xff]  ;;  %v7438_v1 = vld [vmem:[#allocation3 + $0x31] ss:$2 sm:$0xff]  ;;  %7379 = vst.msk [vmem:[#allocation3 + $0x58] sm:$0xff] %vm279_vm2, %v7347_v17  ;;  %v7317_v56 = vadd.f32 %v10165_v60, %v12677_v23  ;;  %v7166_v36 = vpop.f32.mrb[17].mxu1 }
 0x5da   : > { %v7466_v3 = vadd.f32 %v7438_v1, %v7406_v62  ;;  %7747 = vst.msk [vmem:[%s12711_s13] sm:$0xff] %vm279_vm2, %v7739_v47  ;;  %7378 = vst.msk [vmem:[#allocation3 + $0x50] sm:$0xff] %vm279_vm2, %v7346_v48  ;;  %v7316_v53 = vadd.f32 %v12677_v23, %v7166_v36  ;;  %v7734_v47 = vmax.f32 %v7708_v4, 0.0 }
 0x5db   : > { %v7349_v37 = vmax.f32 %v7317_v56, 0.0 }
 0x5dc   : > { %v7480_v35 = vadd.f32 %v7466_v3, %v7465_v40  ;;  %v7348_v49 = vmax.f32 %v7316_v53, 0.0  ;;  %v10168_v54 = vpop.f32.mrb[18].mxu1 }
 0x5dd   : > { %7381 = vst.msk [vmem:[#allocation3 + $0x68] sm:$0xff] %vm279_vm2, %v7349_v37  ;;  %v7319_v30 = vadd.f32 %v10168_v54, %v12677_v23  ;;  %v7176_v14 = vpop.f32.mrb[19].mxu1  ;;  %v7408_v57 = vld [vmem:[#allocation3 + $0x40] ss:$2 sm:$0xff]  ;;  %v7440_v18 = vld [vmem:[#allocation3 + $0x41] ss:$2 sm:$0xff] }
 0x5de   : > { %v7488_v50 = vmul.f32 0.25, %v7480_v35  ;;  %7380 = vst.msk [vmem:[#allocation3 + $0x60] sm:$0xff] %vm279_vm2, %v7348_v49  ;;  %v7318_v20 = vadd.f32 %v12677_v23, %v7176_v14  ;;  %v7467_v51 = vadd.f32 %v7440_v18, %v7408_v57  ;;  %v7713_v49 = vadd.f32 %v12694_v32, %v12668_v27 }
 0x5df   : > { %v7351_v24 = vmax.f32 %v7319_v30, 0.0 }
 0x5e0   : > { %v7740_v21 = vadd.f32 %v7732_v13, %v7488_v50  ;;  %v7350_v58 = vmax.f32 %v7318_v20, 0.0  ;;  %v10171_v55 = vpop.f32.mrb[20].mxu1 }
 0x5e1   : > { %7383 = vst.msk [vmem:[#allocation3 + $0x78] sm:$0xff] %vm279_vm2, %v7351_v24  ;;  %v7321_v63 = vadd.f32 %v10171_v55, %v12677_v23  ;;  %v7186_v25 = vpop.f32.mrb[21].mxu1  ;;  %v7410_v31 = vld [vmem:[#allocation3 + $0x50] ss:$2 sm:$0xff]  ;;  %v7442_v26 = vld [vmem:[#allocation3 + $0x51] ss:$2 sm:$0xff] }
 0x5e2   : > { %7748 = vst.msk [vmem:[%s12711_s13 + $0x8] sm:$0xff] %vm279_vm2, %v7740_v21  ;;  %7382 = vst.msk [vmem:[#allocation3 + $0x70] sm:$0xff] %vm279_vm2, %v7350_v58  ;;  %v7320_v28 = vadd.f32 %v12677_v23, %v7186_v25  ;;  %v7468_v38 = vadd.f32 %v7442_v26, %v7410_v31  ;;  %v7735_v55 = vmax.f32 %v7713_v49, 0.0 }
 0x5e3   : > { %v7353_v39 = vmax.f32 %v7321_v63, 0.0 }
 0x5e4   : > { %v7352_v41 = vmax.f32 %v7320_v28, 0.0  ;;  %v7481_v0 = vadd.f32 %v7468_v38, %v7467_v51  ;;  %v10174_v16 = vpop.f32.mrb[22].mxu1  ;;  %v7718_v38 = vadd.f32 %v12666_v19, %v12694_v32 }
 0x5e5   : > { %7385 = vst.msk [vmem:[#allocation3 + $0x88] sm:$0xff] %vm279_vm2, %v7353_v39  ;;  %v7323_v44 = vadd.f32 %v10174_v16, %v12677_v23  ;;  %v7196_v33 = vpop.f32.mrb[23].mxu1  ;;  %v7412_v52 = vld [vmem:[#allocation3 + $0x60] ss:$2 sm:$0xff]  ;;  %v7444_v45 = vld [vmem:[#allocation3 + $0x61] ss:$2 sm:$0xff] }
 0x5e6   : > { %7384 = vst.msk [vmem:[#allocation3 + $0x80] sm:$0xff] %vm279_vm2, %v7352_v41  ;;  %v7489_v22 = vmul.f32 0.25, %v7481_v0  ;;  %v7322_v6 = vadd.f32 %v12677_v23, %v7196_v33  ;;  %v7469_v9 = vadd.f32 %v7444_v45, %v7412_v52 }
 0x5e7   : > { %v7355_v29 = vmax.f32 %v7323_v44, 0.0 }
 0x5e8   : > { %v7741_v61 = vadd.f32 %v7733_v43, %v7489_v22  ;;  %v7354_v2 = vmax.f32 %v7322_v6, 0.0  ;;  %v10177_v5 = vpop.f32.mrb[24].mxu1 }
 0x5e9   : > { %v7414_v34 = vld [vmem:[#allocation3 + $0x70] ss:$2 sm:$0xff]  ;;  %v7446_v10 = vld [vmem:[#allocation3 + $0x71] ss:$2 sm:$0xff]  ;;  %7387 = vst.msk [vmem:[#allocation3 + $0x98] sm:$0xff] %vm279_vm2, %v7355_v29  ;;  %v7325_v11 = vadd.f32 %v10177_v5, %v12677_v23  ;;  %v7206_v7 = vpop.f32.mrb[25].mxu1 }
 0x5ea   : > { %v7470_v15 = vadd.f32 %v7446_v10, %v7414_v34  ;;  %7749 = vst.msk [vmem:[%s12711_s13 + $0x10] sm:$0xff] %vm279_vm2, %v7741_v61  ;;  %7386 = vst.msk [vmem:[#allocation3 + $0x90] sm:$0xff] %vm279_vm2, %v7354_v2  ;;  %v7324_v17 = vadd.f32 %v12677_v23, %v7206_v7  ;;  %v7736_v29 = vmax.f32 %v7718_v38, 0.0 }
 0x5eb   : > { %v7357_v42 = vmax.f32 %v7325_v11, 0.0 }
 0x5ec   : > { %v7482_v8 = vadd.f32 %v7470_v15, %v7469_v9  ;;  %v7356_v48 = vmax.f32 %v7324_v17, 0.0  ;;  %v10180_v60 = vpop.f32.mrb[26].mxu1 }
 0x5ed   : > { %7389 = vst.msk [vmem:[#allocation3 + $0xa8] sm:$0xff] %vm279_vm2, %v7357_v42  ;;  %v7327_v62 = vadd.f32 %v10180_v60, %v12677_v23  ;;  %v7216_v1 = vpop.f32.mrb[27].mxu1  ;;  %v7416_v3 = vld [vmem:[#allocation3 + $0x80] ss:$2 sm:$0xff]  ;;  %v7448_v53 = vld [vmem:[#allocation3 + $0x81] ss:$2 sm:$0xff]  ;;  %v7723_v42 = vadd.f32 %v12694_v32, %v12672_v12  ;;  %v7728_v12 = vadd.f32 %v12670_v46, %v12694_v32 }
 0x5ee   : > { %v7490_v56 = vmul.f32 0.25, %v7482_v8  ;;  %7388 = vst.msk [vmem:[#allocation3 + $0xa0] sm:$0xff] %vm279_vm2, %v7356_v48  ;;  %v7326_v36 = vadd.f32 %v12677_v23, %v7216_v1  ;;  %v7471_v24 = vadd.f32 %v7448_v53, %v7416_v3 }
 0x5ef   : > { %v7359_v40 = vmax.f32 %v7327_v62, 0.0  ;;  %v7737_v62 = vmax.f32 %v7723_v42, 0.0  ;;  %v7738_v49 = vmax.f32 %v7728_v12, 0.0 }
 0x5f0   : > { %v7742_v37 = vadd.f32 %v7734_v47, %v7490_v56  ;;  %v7358_v35 = vmax.f32 %v7326_v36, 0.0  ;;  %v10183_v13 = vpop.f32.mrb[28].mxu1 }
 0x5f1   : > { %7391 = vst.msk [vmem:[#allocation3 + $0xb8] sm:$0xff] %vm279_vm2, %v7359_v40  ;;  %v7329_v54 = vadd.f32 %v10183_v13, %v12677_v23  ;;  %v7226_v30 = vpop.f32.mrb[29].mxu1  ;;  %v7418_v14 = vld [vmem:[#allocation3 + $0x90] ss:$2 sm:$0xff]  ;;  %v7450_v50 = vld [vmem:[#allocation3 + $0x91] ss:$2 sm:$0xff] }
 0x5f2   : > { %7750 = vst.msk [vmem:[%s12711_s13 + $0x18] sm:$0xff] %vm279_vm2, %v7742_v37  ;;  %7390 = vst.msk [vmem:[#allocation3 + $0xb0] sm:$0xff] %vm279_vm2, %v7358_v35  ;;  %v7328_v20 = vadd.f32 %v12677_v23, %v7226_v30  ;;  %v7472_v57 = vadd.f32 %v7450_v50, %v7418_v14 }
 0x5f3   : > { %v7361_v18 = vmax.f32 %v7329_v54, 0.0 }
 0x5f4   : > { %v7360_v21 = vmax.f32 %v7328_v20, 0.0  ;;  %v7483_v58 = vadd.f32 %v7472_v57, %v7471_v24  ;;  %v10186_v27 = vpop.f32.mrb[30].mxu1 }
 0x5f5   : > { %7393 = vst.msk [vmem:[#allocation3 + $0xc8] sm:$0xff] %vm279_vm2, %v7361_v18  ;;  %v7331_v59 = vadd.f32 %v10186_v27, %v12677_v23  ;;  %v7236_v63 = vpop.f32.mrb[31].mxu1  ;;  %v7420_v26 = vld [vmem:[#allocation3 + $0xa0] ss:$2 sm:$0xff]  ;;  %v7452_v28 = vld [vmem:[#allocation3 + $0xa1] ss:$2 sm:$0xff] }
 0x5f6   : > { %7392 = vst.msk [vmem:[#allocation3 + $0xc0] sm:$0xff] %vm279_vm2, %v7360_v21  ;;  %v7491_v25 = vmul.f32 0.25, %v7483_v58  ;;  %v7330_v31 = vadd.f32 %v12677_v23, %v7236_v63  ;;  %v7473_v22 = vadd.f32 %v7452_v28, %v7420_v26 }
 0x5f7   : > { %v7363_v51 = vmax.f32 %v7331_v59, 0.0 }
 0x5f8   : > { %v7743_v39 = vadd.f32 %v7735_v55, %v7491_v25  ;;  %v7362_v41 = vmax.f32 %v7330_v31, 0.0  ;;  %v10189_v0 = vpop.f32.mrb[32].mxu1 }
 0x5f9   : > { %v7422_v43 = vld [vmem:[#allocation3 + $0xb0] ss:$2 sm:$0xff]  ;;  %v7454_v16 = vld [vmem:[#allocation3 + $0xb1] ss:$2 sm:$0xff]  ;;  %7395 = vst.msk [vmem:[#allocation3 + $0xd8] sm:$0xff] %vm279_vm2, %v7363_v51  ;;  %v7333_v44 = vadd.f32 %v10189_v0, %v12677_v23  ;;  %v7246_v33 = vpop.f32.mrb[33].mxu1 }
 0x5fa   : > { %v7474_v6 = vadd.f32 %v7454_v16, %v7422_v43  ;;  %7751 = vst.msk [vmem:[%s12711_s13 + $0x20] sm:$0xff] %vm279_vm2, %v7743_v39  ;;  %7394 = vst.msk [vmem:[#allocation3 + $0xd0] sm:$0xff] %vm279_vm2, %v7362_v41  ;;  %v7332_v52 = vadd.f32 %v12677_v23, %v7246_v33 }
 0x5fb   : > { %v7365_v45 = vmax.f32 %v7333_v44, 0.0 }
 0x5fc   : > { %v7484_v19 = vadd.f32 %v7474_v6, %v7473_v22  ;;  %v7364_v4 = vmax.f32 %v7332_v52, 0.0  ;;  %v10192_v61 = vpop.f32.mrb[34].mxu1 }
 0x5fd   : > { %7397 = vst.msk [vmem:[#allocation3 + $0xe8] sm:$0xff] %vm279_vm2, %v7365_v45  ;;  %v7335_v2 = vadd.f32 %v10192_v61, %v12677_v23  ;;  %v7256_v5 = vpop.f32.mrb[35].mxu1  ;;  %v7424_v7 = vld [vmem:[#allocation3 + $0xc0] ss:$2 sm:$0xff]  ;;  %v7456_v9 = vld [vmem:[#allocation3 + $0xc1] ss:$2 sm:$0xff] }
 0x5fe   : > { %v7492_v34 = vmul.f32 0.25, %v7484_v19  ;;  %7396 = vst.msk [vmem:[#allocation3 + $0xe0] sm:$0xff] %vm279_vm2, %v7364_v4  ;;  %v7334_v10 = vadd.f32 %v12677_v23, %v7256_v5  ;;  %v7475_v48 = vadd.f32 %v7456_v9, %v7424_v7 }
 0x5ff   : > { %v7367_v11 = vmax.f32 %v7335_v2, 0.0 }
 0x600   : > { %v7744_v15 = vadd.f32 %v7736_v29, %v7492_v34  ;;  %v7366_v17 = vmax.f32 %v7334_v10, 0.0 }
 0x601   : > { %7399 = vst.msk [vmem:[#allocation3 + $0xf8] sm:$0xff] %vm279_vm2, %v7367_v11  ;;  %v7426_v8 = vld [vmem:[#allocation3 + $0xd0] ss:$2 sm:$0xff]  ;;  %v7458_v47 = vld [vmem:[#allocation3 + $0xd1] ss:$2 sm:$0xff] }
 0x602   : > { %7752 = vst.msk [vmem:[%s12711_s13 + $0x28] sm:$0xff] %vm279_vm2, %v7744_v15  ;;  %7398 = vst.msk [vmem:[#allocation3 + $0xf0] sm:$0xff] %vm279_vm2, %v7366_v17  ;;  %v7476_v60 = vadd.f32 %v7458_v47, %v7426_v8 }
 0x604   : > { %v7485_v23 = vadd.f32 %v7476_v60, %v7475_v48 }
 0x605   : > { %v7428_v56 = vld [vmem:[#allocation3 + $0xe0] ss:$2 sm:$0xff]  ;;  %v7460_v36 = vld [vmem:[#allocation3 + $0xe1] ss:$2 sm:$0xff] }
 0x606   : > { %v7493_v1 = vmul.f32 0.25, %v7485_v23  ;;  %v7477_v37 = vadd.f32 %v7460_v36, %v7428_v56 }
 0x608   : > { %v7745_v40 = vadd.f32 %v7737_v62, %v7493_v1 }
 0x609   : > { %v7430_v3 = vld [vmem:[#allocation3 + $0xf0] ss:$2 sm:$0xff]  ;;  %v7462_v53 = vld [vmem:[#allocation3 + $0xf1] ss:$2 sm:$0xff] }
 0x60a   : > { %v7478_v35 = vadd.f32 %v7462_v53, %v7430_v3  ;;  %7753 = vst.msk [vmem:[%s12711_s13 + $0x30] sm:$0xff] %vm279_vm2, %v7745_v40 }
 0x60c   : > { %v7486_v13 = vadd.f32 %v7478_v35, %v7477_v37 }
 0x60e   : > { %v7494_v54 = vmul.f32 0.25, %v7486_v13 }
 0x610   : > { %v7746_v30 = vadd.f32 %v7738_v49, %v7494_v54 }
 0x612   : > { %7754 = vst.msk [vmem:[%s12711_s13 + $0x38] sm:$0xff] %vm279_vm2, %v7746_v30 }
 0x613 PF: > { %s17_s24 = sadd.s32 1, %s10737_s24  }
 0x614   : > { %p14_p4 = scmp.ge.s32.totalorder %s17_s24, 4  }
 0x616   :  { %16 = sbr.rel (!%p14_p4) target bundleno = 1 (0x1), region = 162 }

</bundles_post_ra>
